<compile_context>
chip_gen: v7x
topology: tpu7x:2x2x1
jax: 0.10.0
libtpu: 0.0.40
codegen_flags: <defaults>
</compile_context>

<pallas_src>
import functools
from typing import NamedTuple

import numpy as np

import jax
import jax.numpy as jnp
from jax.experimental import pallas as pl
from jax.experimental.pallas import tpu as pltpu


# ----------------------------------------------------------------------------
# Pallas kernels
# ----------------------------------------------------------------------------
def ngcf_layer_kernel(kidx_ref, knnz_ref, a_ref, ek_ref, ei_ref,
                      w1_ref, w2_ref, b_ref,
                      ego_out_ref, norm_out_ref, acc_ref):
    """One NGCF propagation layer, tiled over (row blocks, non-zero K blocks).

    Scalar-prefetch refs (SMEM):
      kidx_ref : (n_row_blocks * max_nnz,) int32 -- compacted non-zero k-block ids
      knnz_ref : (n_row_blocks,)           int32 -- non-zero block count per row block
    VMEM refs:
      a_ref   : (tm, tk)            bf16 non-zero tile of the normalized adjacency
      ek_ref  : (tk, din_pad)       bf16 ego embeddings (K operand of A @ E)
      ei_ref  : (tm, din_pad)       f32  ego embeddings (row operand, affinity)
      w1_ref  : (din_pad, dout_pad) f32  W1 (acts on weighted_sum_emb)
      w2_ref  : (din_pad, dout_pad) f32  W2 (acts on affinity_emb)
      b_ref   : (1, dout_pad)       f32  b1 + b2
      ego_out_ref, norm_out_ref : (tm, dout_pad) f32
      acc_ref : (tm, din_pad) f32 VMEM accumulator for ws = A @ E
    """
    i = pl.program_id(0)
    k = pl.program_id(1)

    @pl.when(k == 0)
    def _():
        acc_ref[...] = jnp.zeros_like(acc_ref)

    # Skip MXU work on padded (duplicate) K steps of short rows.  Their A / E
    # index maps repeat the last valid block index, so no extra DMA is issued.
    @pl.when(k < knnz_ref[i])
    def _():
        acc_ref[...] += jnp.dot(a_ref[...], ek_ref[...],
                                preferred_element_type=jnp.float32)

    @pl.when(k == pl.num_programs(1) - 1)
    def _():
        ws = acc_ref[...]                      # weighted_sum_emb (f32)
        ego_in = ei_ref[...]                   # ego embeddings for this row block
        aff = ego_in * ws                      # affinity_emb

        # t1 + t2 = ws @ W1 + aff @ W2 + (b1 + b2)   -- two MXU dots, no concat
        x = (jnp.dot(ws, w1_ref[...], preferred_element_type=jnp.float32)
             + jnp.dot(aff, w2_ref[...], preferred_element_type=jnp.float32)
             + b_ref[...])

        # F.leaky_relu default negative_slope = 0.01
        ego = jnp.where(x >= 0.0, x, 0.01 * x)
        ego_out_ref[...] = ego

        # F.normalize(p=2, dim=1, eps=1e-12): x / max(||x||_2, eps)
        # == x * rsqrt(max(sum(x^2), eps^2))   (rsqrt -> EUP slot)
        ssq = jnp.sum(ego * ego, axis=1, keepdims=True)
        norm_out_ref[...] = ego * jax.lax.rsqrt(jnp.maximum(ssq, 1e-24))


def bpr_loss_kernel(u_ref, p_ref, n_ref, loss_ref, *, reg):
    """BPR loss on gathered embeddings (numerically stable log-sigmoid)."""
    u = u_ref[...]
    p = p_ref[...]
    n = n_ref[...]

    d = (jnp.sum(u * p, axis=1, keepdims=True)
         - jnp.sum(u * n, axis=1, keepdims=True))          # (B, 1)
    # log(sigmoid(d)) = min(d, 0) - log1p(exp(-|d|))
    log_prob = jnp.minimum(d, 0.0) - jnp.log1p(jnp.exp(-jnp.abs(d)))
    loss = -jnp.mean(log_prob)
    if reg > 0.0:
        b = u.shape[0]
        l2 = 0.5 * (jnp.sum(u * u) + jnp.sum(p * p) + jnp.sum(n * n)) / b
        loss = loss + reg * l2
    loss_ref[...] = jnp.broadcast_to(loss, (1, 1)).astype(jnp.float32)


# ----------------------------------------------------------------------------
# Tiling / host-side adjacency preprocessing
# ----------------------------------------------------------------------------
_VMEM_SPEC = pl.BlockSpec(memory_space=pltpu.MemorySpace.VMEM)


def _round_up(x, m):
    return ((x + m - 1) // m) * m


def _choose_tiles(n):
    """Pick (n_pad, tm, tk) with tm | n_pad, tk | n_pad, (8,128)-friendly tiles,
    <~1.6% padding, and >=2 row blocks once n_pad >= 512 (v7x megacore)."""
    base = _round_up(n, 128)
    n_pad, tk = base, 128
    for cand in (1024, 512, 256):
        cand_pad = _round_up(n, cand)
        if (cand_pad - base) * 64 <= cand_pad:        # accept <= ~1.6% extra padding
            n_pad, tk = cand_pad, cand
            break
    tm = 128
    for cand in (1024, 512, 256, 128):
        if n_pad % cand == 0 and (n_pad // cand >= 2 or n_pad == cand):
            tm = cand
            break
    if n_pad // tm < 2 and n_pad >= 512:
        tm = n_pad // 2          # keep both v7x TensorCores busy (multiple of 64)
    return n_pad, tm, tk


class AdjacencyData(NamedTuple):
    a_bf16: jax.Array      # (n_pad, n_pad) bf16, padded once on the host
    kidx: jax.Array        # (n_row_blocks * max_nnz,) int32
    knnz: jax.Array        # (n_row_blocks,) int32
    n_nodes: int
    n_pad: int
    tm: int
    tk: int
    max_nnz: int


def preprocess_adjacency(A):
    """Pad/cast the static normalized adjacency once and extract its (tm, tk)
    block-sparsity structure.  Runs on the host, OUTSIDE jit (per review: hoist
    the per-call pad/cast; skip all-zero adjacency tiles)."""
    A_np = np.asarray(jax.device_get(A), dtype=np.float32)
    n = A_np.shape[0]
    n_pad, tm, tk = _choose_tiles(n)

    a_pad = np.zeros((n_pad, n_pad), np.float32)
    a_pad[:n, :n] = A_np

    nrb, nkb = n_pad // tm, n_pad // tk
    nz = np.abs(a_pad).reshape(nrb, tm, nkb, tk).sum(axis=(1, 3)) > 0.0  # (nrb, nkb)
    nnz = nz.sum(axis=1).astype(np.int32)
    max_nnz = max(int(nnz.max()), 1)

    kidx = np.zeros((nrb, max_nnz), np.int32)
    for r in range(nrb):
        idx = np.nonzero(nz[r])[0].astype(np.int32)
        fill = idx[-1] if idx.size else np.int32(0)
        kidx[r, :idx.size] = idx
        kidx[r, idx.size:] = fill          # repeat last -> no extra DMA on padded steps

    return AdjacencyData(
        a_bf16=jnp.asarray(a_pad, dtype=jnp.bfloat16),
        kidx=jnp.asarray(kidx.reshape(-1)),    # flattened: avoids 2-D SMEM padding
        knnz=jnp.asarray(nnz),
        n_nodes=n, n_pad=n_pad, tm=tm, tk=tk, max_nnz=max_nnz)


# ----------------------------------------------------------------------------
# Wrappers around pallas_call
# ----------------------------------------------------------------------------
def ngcf_layer(a_bf16, kidx, knnz, ego, w1_pad, w2_pad, b_sum, *, tm, tk, max_nnz):
    """One NGCF layer on padded inputs.  Returns (ego_next, norm), both padded."""
    n_pad, din_pad = ego.shape
    dout_pad = w1_pad.shape[1]
    ego_bf = ego.astype(jnp.bfloat16)      # K operand of A @ E (halves HBM traffic)

    nrb = n_pad // tm
    grid = (nrb, max_nnz)

    a_map = lambda i, k, kidx_ref, knnz_ref: (i, kidx_ref[i * max_nnz + k])
    ek_map = lambda i, k, kidx_ref, knnz_ref: (kidx_ref[i * max_nnz + k], 0)
    row_map = lambda i, k, kidx_ref, knnz_ref: (i, 0)
    const_map = lambda i, k, kidx_ref, knnz_ref: (0, 0)

    # Rough double-buffered VMEM footprint -> explicit scoped limit (keeps the
    # kernel comfortably inside v5e's 16 MiB default and v7x's 64 MiB physical).
    vmem_bytes = (2 * tm * tk * 2                     # A tiles (bf16)
                  + 2 * tk * din_pad * 2              # E K-operand (bf16)
                  + 2 * tm * din_pad * 4              # E row operand (f32)
                  + 2 * 2 * din_pad * dout_pad * 4    # W1, W2
                  + 2 * dout_pad * 4                  # bias
                  + 2 * 2 * tm * dout_pad * 4         # two outputs
                  + tm * din_pad * 4)                 # accumulator scratch
    vmem_limit = int(min(max(2 * vmem_bytes, 32 * 1024 * 1024), 60 * 1024 * 1024))

    return pl.pallas_call(
        ngcf_layer_kernel,
        out_shape=(jax.ShapeDtypeStruct((n_pad, dout_pad), jnp.float32),
                   jax.ShapeDtypeStruct((n_pad, dout_pad), jnp.float32)),
        grid_spec=pltpu.PrefetchScalarGridSpec(
            num_scalar_prefetch=2,
            grid=grid,
            in_specs=[
                pl.BlockSpec((tm, tk), a_map),                 # A tile (bf16)
                pl.BlockSpec((tk, din_pad), ek_map),           # E (bf16, K operand)
                pl.BlockSpec((tm, din_pad), row_map),          # E (f32, row operand)
                pl.BlockSpec((din_pad, dout_pad), const_map),  # W1
                pl.BlockSpec((din_pad, dout_pad), const_map),  # W2
                pl.BlockSpec((1, dout_pad), const_map),        # b1 + b2
            ],
            out_specs=(pl.BlockSpec((tm, dout_pad), row_map),
                       pl.BlockSpec((tm, dout_pad), row_map)),
            scratch_shapes=[pltpu.VMEM((tm, din_pad), jnp.float32)],
        ),
        compiler_params=pltpu.CompilerParams(
            dimension_semantics=("parallel", "arbitrary"),
            vmem_limit_bytes=vmem_limit),
    )(kidx, knnz, a_bf16, ego_bf, ego, w1_pad, w2_pad, b_sum)


def bpr_loss(u_emb, p_emb, n_emb, reg):
    out = pl.pallas_call(
        functools.partial(bpr_loss_kernel, reg=float(reg)),
        out_shape=jax.ShapeDtypeStruct((1, 1), jnp.float32),
        in_specs=[_VMEM_SPEC] * 3,
        out_specs=_VMEM_SPEC,
    )(u_emb, p_emb, n_emb)
    return out[0, 0]


def ngcf_forward(params, a_bf16, kidx, knnz, u_idx, i_idx, j_idx, *,
                 n_users, n_nodes, tm, tk, max_nnz, reg):
    """Reproduces NGCF.forward (returns the scalar BPR loss)."""
    ego0 = jnp.concatenate([params["u_embeddings"], params["i_embeddings"]],
                           axis=0).astype(jnp.float32)
    emb_dim = ego0.shape[1]
    n_pad = a_bf16.shape[0]

    din_pad = _round_up(emb_dim, 128)
    ego = jnp.zeros((n_pad, din_pad), jnp.float32)
    ego = ego.at[:n_nodes, :emb_dim].set(ego0)

    pred_parts = [ego0]
    for (W1, b1, W2, b2) in params["layers"]:
        din, dout = W1.shape
        din_pad = _round_up(din, 128)
        dout_pad = _round_up(dout, 128)
        w1_pad = jnp.zeros((din_pad, dout_pad), jnp.float32).at[:din, :dout].set(W1)
        w2_pad = jnp.zeros((din_pad, dout_pad), jnp.float32).at[:din, :dout].set(W2)
        b_sum = jnp.zeros((1, dout_pad), jnp.float32).at[:, :dout].set(b1 + b2)

        ego, norm = ngcf_layer(a_bf16, kidx, knnz, ego, w1_pad, w2_pad, b_sum,
                               tm=tm, tk=tk, max_nnz=max_nnz)
        pred_parts.append(norm[:n_nodes, :dout])

    pred = jnp.concatenate(pred_parts, axis=1)
    u_g = pred[:n_users]
    i_g = pred[n_users:]
    # TODO(synk): at large n_nodes/batch, write each layer's norm slice directly
    # into a preallocated pred buffer and gather u/p/n rows inside bpr_loss via
    # scalar-prefetched indices instead of wrapper-side concat + fancy indexing.
    u_emb = u_g[u_idx]
    p_emb = i_g[i_idx]
    n_emb = i_g[j_idx]
    return bpr_loss(u_emb, p_emb, n_emb, reg)


# ----------------------------------------------------------------------------
# Pure-JAX reference (f32 adjacency) for tolerance-checking
# ----------------------------------------------------------------------------
def ngcf_reference(params, A, u_idx, i_idx, j_idx, *, n_users, reg):
    ego = jnp.concatenate([params["u_embeddings"], params["i_embeddings"]], axis=0)
    parts = [ego]
    for (W1, b1, W2, b2) in params["layers"]:
        ws = A @ ego
        aff = ego * ws
        x = ws @ W1 + b1 + aff @ W2 + b2
        ego = jnp.where(x >= 0.0, x, 0.01 * x)
        nrm = ego / jnp.maximum(jnp.linalg.norm(ego, axis=1, keepdims=True), 1e-12)
        parts.append(nrm)
    pred = jnp.concatenate(parts, axis=1)
    u_g, i_g = pred[:n_users], pred[n_users:]
    u, p, n = u_g[u_idx], i_g[i_idx], i_g[j_idx]
    d = jnp.sum(u * p, axis=1) - jnp.sum(u * n, axis=1)
    loss = -jnp.mean(jnp.minimum(d, 0.0) - jnp.log1p(jnp.exp(-jnp.abs(d))))
    if reg > 0.0:
        l2 = 0.5 * (jnp.sum(u * u) + jnp.sum(p * p) + jnp.sum(n * n)) / u.shape[0]
        loss = loss + reg * l2
    return loss


# ----------------------------------------------------------------------------
# Deterministic parameter / input construction
# ----------------------------------------------------------------------------
def xavier_uniform(key, shape):
    fan_in, fan_out = shape[0], shape[1]
    bound = (6.0 / (fan_in + fan_out)) ** 0.5
    return jax.random.uniform(key, shape, jnp.float32, -bound, bound)


def make_params(key, n_users, n_items, emb_dim, layer_sizes):
    keys = jax.random.split(key, 2 + 4 * len(layer_sizes))
    params = {
        "u_embeddings": xavier_uniform(keys[0], (n_users, emb_dim)),
        "i_embeddings": xavier_uniform(keys[1], (n_items, emb_dim)),
        "layers": [],
    }
    features = [emb_dim] + list(layer_sizes)
    for k in range(len(layer_sizes)):
        din, dout = features[k], features[k + 1]
        kw1, kb1, kw2, kb2 = keys[2 + 4 * k: 6 + 4 * k]
        W1 = xavier_uniform(kw1, (din, dout))        # stored as (in, out)
        W2 = xavier_uniform(kw2, (din, dout))
        bnd = 1.0 / (din ** 0.5)                     # nn.Linear default bias init
        b1 = jax.random.uniform(kb1, (1, dout), jnp.float32, -bnd, bnd)
        b2 = jax.random.uniform(kb2, (1, dout), jnp.float32, -bnd, bnd)
        params["layers"].append((W1, b1, W2, b2))
    return params


def make_norm_adjacency(key, n_users, n_items):
    """Dense symmetric user-item bipartite graph, degree-normalized."""
    N = n_users + n_items
    R = (jax.random.uniform(key, (n_users, n_items)) < 0.15).astype(jnp.float32)
    A = jnp.zeros((N, N), jnp.float32)
    A = A.at[:n_users, n_users:].set(R)
    A = A.at[n_users:, :n_users].set(R.T)
    A = A + jnp.eye(N, dtype=jnp.float32)            # self loops (A + I)
    deg = jnp.sum(A, axis=1, keepdims=True)
    return A / jnp.maximum(deg, 1.0)                 # D^-1 (A + I)


# ----------------------------------------------------------------------------
if __name__ == "__main__":
    n_users, n_items = 100, 180       # 280 nodes -> 3 row blocks, exercises block skip
    emb_dim = 16
    layer_sizes = [16, 16]
    reg = 1e-5
    batch = 8

    root = jax.random.PRNGKey(0)
    k_par, k_adj, k_u, k_i, k_j = jax.random.split(root, 5)

    params = make_params(k_par, n_users, n_items, emb_dim, layer_sizes)
    A_hat = make_norm_adjacency(k_adj, n_users, n_items)

    u_idx = jax.random.randint(k_u, (batch,), 0, n_users)
    i_idx = jax.random.randint(k_i, (batch,), 0, n_items)
    j_idx = jax.random.randint(k_j, (batch,), 0, n_items)

    # Static adjacency preprocessing: pad + bf16 cast + block-sparsity metadata,
    # done ONCE on the host (A is constant across training steps).
    adj = preprocess_adjacency(A_hat)

    fwd = jax.jit(functools.partial(
        ngcf_forward,
        n_users=n_users, n_nodes=adj.n_nodes,
        tm=adj.tm, tk=adj.tk, max_nnz=adj.max_nnz, reg=reg))
    loss = fwd(params, adj.a_bf16, adj.kidx, adj.knnz, u_idx, i_idx, j_idx)
    jax.block_until_ready(loss)

    # Pure-JAX f32 reference; loose tolerance covers the bf16 A / E cast.
    ref = ngcf_reference(params, A_hat, u_idx, i_idx, j_idx,
                         n_users=n_users, reg=reg)
    assert loss.shape == () and bool(jnp.isfinite(loss))
    assert abs(float(loss) - float(ref)) < 5e-2, (float(loss), float(ref))
    print("KERNEL_OK")
</pallas_src>

<mosaic_0001>
module attributes {stable_mosaic.version = 11 : i64} {
  func.func @ngcf_layer_kernel(%arg0: i32, %arg1: i32, %arg2: memref<9xi32, #tpu.memory_space<smem>>, %arg3: memref<3xi32, #tpu.memory_space<smem>>, %arg4: memref<128x128xbf16, #tpu.memory_space<vmem>>, %arg5: memref<128x128xbf16, #tpu.memory_space<vmem>>, %arg6: memref<128x128xf32, #tpu.memory_space<vmem>>, %arg7: memref<128x128xf32, #tpu.memory_space<vmem>>, %arg8: memref<128x128xf32, #tpu.memory_space<vmem>>, %arg9: memref<1x128xf32, #tpu.memory_space<vmem>>, %arg10: memref<128x128xf32, #tpu.memory_space<vmem>>, %arg11: memref<128x128xf32, #tpu.memory_space<vmem>>, %arg12: memref<128x128xf32, #tpu.memory_space<vmem>>) attributes {dimension_semantics = [#tpu.dimension_semantics<parallel>, #tpu.dimension_semantics<arbitrary>], iteration_bounds = array<i64: 3, 3>, scalar_prefetch = 2 : i64, scratch_operands = 1 : i64, tpu.core_type = #tpu.core_type<tc>, window_params = [{transform_indices = @transform_0, window_bounds = array<i64: 128, 128>}, {transform_indices = @transform_1, window_bounds = array<i64: 128, 128>}, {transform_indices = @transform_2, window_bounds = array<i64: 128, 128>}, {pipeline_mode = #tpu.pipeline_mode<synchronous>, transform_indices = @transform_3, window_bounds = array<i64: 128, 128>}, {pipeline_mode = #tpu.pipeline_mode<synchronous>, transform_indices = @transform_4, window_bounds = array<i64: 128, 128>}, {pipeline_mode = #tpu.pipeline_mode<synchronous>, transform_indices = @transform_5, window_bounds = array<i64: 1, 128>}, {transform_indices = @transform_6, window_bounds = array<i64: 128, 128>}, {transform_indices = @transform_7, window_bounds = array<i64: 128, 128>}]} {
    %c0_i32 = arith.constant 0 : i32
    %0 = arith.cmpi eq, %arg1, %c0_i32 : i32
    %1 = arith.extui %0 : i1 to i32
    %c0_i32_0 = arith.constant 0 : i32
    %2 = arith.cmpi ne, %1, %c0_i32_0 : i32
    scf.if %2 {
      %cst = arith.constant 0.000000e+00 : f32
      %11 = vector.broadcast %cst : f32 to vector<128x128xf32>
      %c0 = arith.constant 0 : index
      %c0_3 = arith.constant 0 : index
      %12 = vector.load %arg12[%c0, %c0_3] : memref<128x128xf32, #tpu.memory_space<vmem>>, vector<128x128xf32>
      tpu.vector_store %arg12[%c0, %c0_3], %11 {strides = array<i32>} : memref<128x128xf32, #tpu.memory_space<vmem>>, vector<128x128xf32>,
    } else {
    }
    %3 = arith.index_cast %arg0 : i32 to index
    %4 = memref.load %arg3[%3] : memref<3xi32, #tpu.memory_space<smem>>
    %5 = arith.cmpi slt, %arg1, %4 : i32
    %6 = arith.extui %5 : i1 to i32
    %c0_i32_1 = arith.constant 0 : i32
    %7 = arith.cmpi ne, %6, %c0_i32_1 : i32
    scf.if %7 {
      %c0 = arith.constant 0 : index
      %c0_3 = arith.constant 0 : index
      %11 = vector.load %arg12[%c0, %c0_3] : memref<128x128xf32, #tpu.memory_space<vmem>>, vector<128x128xf32>
      %c0_4 = arith.constant 0 : index
      %c0_5 = arith.constant 0 : index
      %12 = vector.load %arg4[%c0_4, %c0_5] : memref<128x128xbf16, #tpu.memory_space<vmem>>, vector<128x128xbf16>
      %c0_6 = arith.constant 0 : index
      %c0_7 = arith.constant 0 : index
      %13 = vector.load %arg5[%c0_6, %c0_7] : memref<128x128xbf16, #tpu.memory_space<vmem>>, vector<128x128xbf16>
      %cst = arith.constant dense<0.000000e+00> : vector<128x128xf32>
      %14 = tpu.matmul %12, %13, %cst {dimension_numbers = #tpu.dot_dimension_numbers<[1], [0], [0], [1], [0, 0, 1, 1], [], []>} : vector<128x128xbf16>, vector<128x128xbf16>, vector<128x128xf32> -> vector<128x128xf32>
      %15 = arith.addf %11, %14 : vector<128x128xf32>
      %c0_8 = arith.constant 0 : index
      %c0_9 = arith.constant 0 : index
      %16 = vector.load %arg12[%c0_8, %c0_9] : memref<128x128xf32, #tpu.memory_space<vmem>>, vector<128x128xf32>
      tpu.vector_store %arg12[%c0_8, %c0_9], %15 {strides = array<i32>} : memref<128x128xf32, #tpu.memory_space<vmem>>, vector<128x128xf32>,
    } else {
    }
    %c2_i32 = arith.constant 2 : i32
    %8 = arith.cmpi eq, %arg1, %c2_i32 : i32
    %9 = arith.extui %8 : i1 to i32
    %c0_i32_2 = arith.constant 0 : i32
    %10 = arith.cmpi ne, %9, %c0_i32_2 : i32
    scf.if %10 {
      %c0 = arith.constant 0 : index
      %c0_3 = arith.constant 0 : index
      %11 = vector.load %arg12[%c0, %c0_3] : memref<128x128xf32, #tpu.memory_space<vmem>>, vector<128x128xf32>
      %c0_4 = arith.constant 0 : index
      %c0_5 = arith.constant 0 : index
      %12 = vector.load %arg6[%c0_4, %c0_5] : memref<128x128xf32, #tpu.memory_space<vmem>>, vector<128x128xf32>
      %13 = arith.mulf %12, %11 : vector<128x128xf32>
      %c0_6 = arith.constant 0 : index
      %c0_7 = arith.constant 0 : index
      %14 = vector.load %arg7[%c0_6, %c0_7] : memref<128x128xf32, #tpu.memory_space<vmem>>, vector<128x128xf32>
      %cst = arith.constant dense<0.000000e+00> : vector<128x128xf32>
      %15 = tpu.matmul %11, %14, %cst {dimension_numbers = #tpu.dot_dimension_numbers<[1], [0], [0], [1], [0, 0, 1, 1], [], []>} : vector<128x128xf32>, vector<128x128xf32>, vector<128x128xf32> -> vector<128x128xf32>
      %c0_8 = arith.constant 0 : index
      %c0_9 = arith.constant 0 : index
      %16 = vector.load %arg8[%c0_8, %c0_9] : memref<128x128xf32, #tpu.memory_space<vmem>>, vector<128x128xf32>
      %cst_10 = arith.constant dense<0.000000e+00> : vector<128x128xf32>
      %17 = tpu.matmul %13, %16, %cst_10 {dimension_numbers = #tpu.dot_dimension_numbers<[1], [0], [0], [1], [0, 0, 1, 1], [], []>} : vector<128x128xf32>, vector<128x128xf32>, vector<128x128xf32> -> vector<128x128xf32>
      %18 = arith.addf %15, %17 : vector<128x128xf32>
      %c0_11 = arith.constant 0 : index
      %c0_12 = arith.constant 0 : index
      %19 = vector.load %arg9[%c0_11, %c0_12] : memref<1x128xf32, #tpu.memory_space<vmem>>, vector<1x128xf32>
      %20 = vector.broadcast %19 : vector<1x128xf32> to vector<128x128xf32>
      %21 = arith.addf %18, %20 : vector<128x128xf32>
      %cst_13 = arith.constant 0.000000e+00 : f32
      %22 = vector.broadcast %cst_13 : f32 to vector<128x128xf32>
      %23 = arith.cmpf oge, %21, %22 : vector<128x128xf32>
      %cst_14 = arith.constant 0.00999999977 : f32
      %24 = vector.broadcast %cst_14 : f32 to vector<128x128xf32>
      %25 = arith.mulf %24, %21 : vector<128x128xf32>
      %26 = arith.select %23, %21, %25 : vector<128x128xi1>, vector<128x128xf32>
      %c0_15 = arith.constant 0 : index
      %c0_16 = arith.constant 0 : index
      %27 = vector.load %arg10[%c0_15, %c0_16] : memref<128x128xf32, #tpu.memory_space<vmem>>, vector<128x128xf32>
      tpu.vector_store %arg10[%c0_15, %c0_16], %26 {strides = array<i32>} : memref<128x128xf32, #tpu.memory_space<vmem>>, vector<128x128xf32>,
      %28 = arith.mulf %26, %26 : vector<128x128xf32>
      %cst_17 = arith.constant dense<0.000000e+00> : vector<128xf32>
      %29 = vector.multi_reduction <add>, %28, %cst_17 [1] : vector<128x128xf32> to vector<128xf32>
      %30 = vector.shape_cast %29 : vector<128xf32> to vector<128x1xf32>
      %cst_18 = arith.constant 1.000000e-24 : f32
      %31 = vector.broadcast %cst_18 : f32 to vector<128x1xf32>
      %32 = arith.maximumf %30, %31 : vector<128x1xf32>
      %33 = math.rsqrt %32 : vector<128x1xf32>
      %34 = vector.broadcast %33 : vector<128x1xf32> to vector<128x128xf32>
      %35 = arith.mulf %26, %34 : vector<128x128xf32>
      %c0_19 = arith.constant 0 : index
      %c0_20 = arith.constant 0 : index
      %36 = vector.load %arg11[%c0_19, %c0_20] : memref<128x128xf32, #tpu.memory_space<vmem>>, vector<128x128xf32>
      tpu.vector_store %arg11[%c0_19, %c0_20], %35 {strides = array<i32>} : memref<128x128xf32, #tpu.memory_space<vmem>>, vector<128x128xf32>,
    } else {
    }
    return
  }
  func.func @transform_0(%arg0: i32, %arg1: i32, %arg2: memref<9xi32, #tpu.memory_space<smem>>, %arg3: memref<3xi32, #tpu.memory_space<smem>>) -> (i32, i32) {
    %c3_i32 = arith.constant 3 : i32
    %0 = arith.muli %arg0, %c3_i32 : i32
    %1 = arith.addi %0, %arg1 : i32
    %2 = arith.index_cast %1 : i32 to index
    %3 = memref.load %arg2[%2] : memref<9xi32, #tpu.memory_space<smem>>
    %c0_i32 = arith.constant 0 : i32
    return %arg0, %3 : i32, i32
  }
  func.func @transform_1(%arg0: i32, %arg1: i32, %arg2: memref<9xi32, #tpu.memory_space<smem>>, %arg3: memref<3xi32, #tpu.memory_space<smem>>) -> (i32, i32) {
    %c3_i32 = arith.constant 3 : i32
    %0 = arith.muli %arg0, %c3_i32 : i32
    %1 = arith.addi %0, %arg1 : i32
    %2 = arith.index_cast %1 : i32 to index
    %3 = memref.load %arg2[%2] : memref<9xi32, #tpu.memory_space<smem>>
    %c0_i32 = arith.constant 0 : i32
    %c0_i32_0 = arith.constant 0 : i32
    return %3, %c0_i32 : i32, i32
  }
  func.func @transform_2(%arg0: i32, %arg1: i32, %arg2: memref<9xi32, #tpu.memory_space<smem>>, %arg3: memref<3xi32, #tpu.memory_space<smem>>) -> (i32, i32) {
    %c0_i32 = arith.constant 0 : i32
    %c0_i32_0 = arith.constant 0 : i32
    return %arg0, %c0_i32 : i32, i32
  }
  func.func @transform_3(%arg0: i32, %arg1: i32, %arg2: memref<9xi32, #tpu.memory_space<smem>>, %arg3: memref<3xi32, #tpu.memory_space<smem>>) -> (i32, i32) {
    %c0_i32 = arith.constant 0 : i32
    %c0_i32_0 = arith.constant 0 : i32
    %c0_i32_1 = arith.constant 0 : i32
    return %c0_i32, %c0_i32_0 : i32, i32
  }
  func.func @transform_4(%arg0: i32, %arg1: i32, %arg2: memref<9xi32, #tpu.memory_space<smem>>, %arg3: memref<3xi32, #tpu.memory_space<smem>>) -> (i32, i32) {
    %c0_i32 = arith.constant 0 : i32
    %c0_i32_0 = arith.constant 0 : i32
    %c0_i32_1 = arith.constant 0 : i32
    return %c0_i32, %c0_i32_0 : i32, i32
  }
  func.func @transform_5(%arg0: i32, %arg1: i32, %arg2: memref<9xi32, #tpu.memory_space<smem>>, %arg3: memref<3xi32, #tpu.memory_space<smem>>) -> (i32, i32) {
    %c0_i32 = arith.constant 0 : i32
    %c0_i32_0 = arith.constant 0 : i32
    %c0_i32_1 = arith.constant 0 : i32
    return %c0_i32, %c0_i32_0 : i32, i32
  }
  func.func @transform_6(%arg0: i32, %arg1: i32, %arg2: memref<9xi32, #tpu.memory_space<smem>>, %arg3: memref<3xi32, #tpu.memory_space<smem>>) -> (i32, i32) {
    %c0_i32 = arith.constant 0 : i32
    %c0_i32_0 = arith.constant 0 : i32
    return %arg0, %c0_i32 : i32, i32
  }
  func.func @transform_7(%arg0: i32, %arg1: i32, %arg2: memref<9xi32, #tpu.memory_space<smem>>, %arg3: memref<3xi32, #tpu.memory_space<smem>>) -> (i32, i32) {
    %c0_i32 = arith.constant 0 : i32
    %c0_i32_0 = arith.constant 0 : i32
    return %arg0, %c0_i32 : i32, i32
  }
}

module attributes {stable_mosaic.version = 11 : i64} {
  func.func @ngcf_layer_kernel(%arg0: i32, %arg1: i32, %arg2: memref<9xi32, #tpu.memory_space<smem>>, %arg3: memref<3xi32, #tpu.memory_space<smem>>, %arg4: memref<128x128xbf16, #tpu.memory_space<vmem>>, %arg5: memref<128x128xbf16, #tpu.memory_space<vmem>>, %arg6: memref<128x128xf32, #tpu.memory_space<vmem>>, %arg7: memref<128x128xf32, #tpu.memory_space<vmem>>, %arg8: memref<128x128xf32, #tpu.memory_space<vmem>>, %arg9: memref<1x128xf32, #tpu.memory_space<vmem>>, %arg10: memref<128x128xf32, #tpu.memory_space<vmem>>, %arg11: memref<128x128xf32, #tpu.memory_space<vmem>>, %arg12: memref<128x128xf32, #tpu.memory_space<vmem>>) attributes {dimension_semantics = [#tpu.dimension_semantics<parallel>, #tpu.dimension_semantics<arbitrary>], iteration_bounds = array<i64: 3, 3>, scalar_prefetch = 2 : i64, scratch_operands = 1 : i64, tpu.core_type = #tpu.core_type<tc>, window_params = [{transform_indices = @transform_0, window_bounds = array<i64: 128, 128>}, {transform_indices = @transform_1, window_bounds = array<i64: 128, 128>}, {transform_indices = @transform_2, window_bounds = array<i64: 128, 128>}, {pipeline_mode = #tpu.pipeline_mode<synchronous>, transform_indices = @transform_3, window_bounds = array<i64: 128, 128>}, {pipeline_mode = #tpu.pipeline_mode<synchronous>, transform_indices = @transform_4, window_bounds = array<i64: 128, 128>}, {pipeline_mode = #tpu.pipeline_mode<synchronous>, transform_indices = @transform_5, window_bounds = array<i64: 1, 128>}, {transform_indices = @transform_6, window_bounds = array<i64: 128, 128>}, {transform_indices = @transform_7, window_bounds = array<i64: 128, 128>}]} {
    %c0_i32 = arith.constant 0 : i32
    %0 = arith.cmpi eq, %arg1, %c0_i32 : i32
    %1 = arith.extui %0 : i1 to i32
    %c0_i32_0 = arith.constant 0 : i32
    %2 = arith.cmpi ne, %1, %c0_i32_0 : i32
    scf.if %2 {
      %cst = arith.constant 0.000000e+00 : f32
      %11 = vector.broadcast %cst : f32 to vector<128x128xf32>
      %c0 = arith.constant 0 : index
      %c0_3 = arith.constant 0 : index
      %12 = vector.load %arg12[%c0, %c0_3] : memref<128x128xf32, #tpu.memory_space<vmem>>, vector<128x128xf32>
      tpu.vector_store %arg12[%c0, %c0_3], %11 {strides = array<i32>} : memref<128x128xf32, #tpu.memory_space<vmem>>, vector<128x128xf32>,
    } else {
    }
    %3 = arith.index_cast %arg0 : i32 to index
    %4 = memref.load %arg3[%3] : memref<3xi32, #tpu.memory_space<smem>>
    %5 = arith.cmpi slt, %arg1, %4 : i32
    %6 = arith.extui %5 : i1 to i32
    %c0_i32_1 = arith.constant 0 : i32
    %7 = arith.cmpi ne, %6, %c0_i32_1 : i32
    scf.if %7 {
      %c0 = arith.constant 0 : index
      %c0_3 = arith.constant 0 : index
      %11 = vector.load %arg12[%c0, %c0_3] : memref<128x128xf32, #tpu.memory_space<vmem>>, vector<128x128xf32>
      %c0_4 = arith.constant 0 : index
      %c0_5 = arith.constant 0 : index
      %12 = vector.load %arg4[%c0_4, %c0_5] : memref<128x128xbf16, #tpu.memory_space<vmem>>, vector<128x128xbf16>
      %c0_6 = arith.constant 0 : index
      %c0_7 = arith.constant 0 : index
      %13 = vector.load %arg5[%c0_6, %c0_7] : memref<128x128xbf16, #tpu.memory_space<vmem>>, vector<128x128xbf16>
      %cst = arith.constant dense<0.000000e+00> : vector<128x128xf32>
      %14 = tpu.matmul %12, %13, %cst {dimension_numbers = #tpu.dot_dimension_numbers<[1], [0], [0], [1], [0, 0, 1, 1], [], []>} : vector<128x128xbf16>, vector<128x128xbf16>, vector<128x128xf32> -> vector<128x128xf32>
      %15 = arith.addf %11, %14 : vector<128x128xf32>
      %c0_8 = arith.constant 0 : index
      %c0_9 = arith.constant 0 : index
      %16 = vector.load %arg12[%c0_8, %c0_9] : memref<128x128xf32, #tpu.memory_space<vmem>>, vector<128x128xf32>
      tpu.vector_store %arg12[%c0_8, %c0_9], %15 {strides = array<i32>} : memref<128x128xf32, #tpu.memory_space<vmem>>, vector<128x128xf32>,
    } else {
    }
    %c2_i32 = arith.constant 2 : i32
    %8 = arith.cmpi eq, %arg1, %c2_i32 : i32
    %9 = arith.extui %8 : i1 to i32
    %c0_i32_2 = arith.constant 0 : i32
    %10 = arith.cmpi ne, %9, %c0_i32_2 : i32
    scf.if %10 {
      %c0 = arith.constant 0 : index
      %c0_3 = arith.constant 0 : index
      %11 = vector.load %arg12[%c0, %c0_3] : memref<128x128xf32, #tpu.memory_space<vmem>>, vector<128x128xf32>
      %c0_4 = arith.constant 0 : index
      %c0_5 = arith.constant 0 : index
      %12 = vector.load %arg6[%c0_4, %c0_5] : memref<128x128xf32, #tpu.memory_space<vmem>>, vector<128x128xf32>
      %13 = arith.mulf %12, %11 : vector<128x128xf32>
      %c0_6 = arith.constant 0 : index
      %c0_7 = arith.constant 0 : index
      %14 = vector.load %arg7[%c0_6, %c0_7] : memref<128x128xf32, #tpu.memory_space<vmem>>, vector<128x128xf32>
      %cst = arith.constant dense<0.000000e+00> : vector<128x128xf32>
      %15 = tpu.matmul %11, %14, %cst {dimension_numbers = #tpu.dot_dimension_numbers<[1], [0], [0], [1], [0, 0, 1, 1], [], []>} : vector<128x128xf32>, vector<128x128xf32>, vector<128x128xf32> -> vector<128x128xf32>
      %c0_8 = arith.constant 0 : index
      %c0_9 = arith.constant 0 : index
      %16 = vector.load %arg8[%c0_8, %c0_9] : memref<128x128xf32, #tpu.memory_space<vmem>>, vector<128x128xf32>
      %cst_10 = arith.constant dense<0.000000e+00> : vector<128x128xf32>
      %17 = tpu.matmul %13, %16, %cst_10 {dimension_numbers = #tpu.dot_dimension_numbers<[1], [0], [0], [1], [0, 0, 1, 1], [], []>} : vector<128x128xf32>, vector<128x128xf32>, vector<128x128xf32> -> vector<128x128xf32>
      %18 = arith.addf %15, %17 : vector<128x128xf32>
      %c0_11 = arith.constant 0 : index
      %c0_12 = arith.constant 0 : index
      %19 = vector.load %arg9[%c0_11, %c0_12] : memref<1x128xf32, #tpu.memory_space<vmem>>, vector<1x128xf32>
      %20 = vector.broadcast %19 : vector<1x128xf32> to vector<128x128xf32>
      %21 = arith.addf %18, %20 : vector<128x128xf32>
      %cst_13 = arith.constant 0.000000e+00 : f32
      %22 = vector.broadcast %cst_13 : f32 to vector<128x128xf32>
      %23 = arith.cmpf oge, %21, %22 : vector<128x128xf32>
      %cst_14 = arith.constant 0.00999999977 : f32
      %24 = vector.broadcast %cst_14 : f32 to vector<128x128xf32>
      %25 = arith.mulf %24, %21 : vector<128x128xf32>
      %26 = arith.select %23, %21, %25 : vector<128x128xi1>, vector<128x128xf32>
      %c0_15 = arith.constant 0 : index
      %c0_16 = arith.constant 0 : index
      %27 = vector.load %arg10[%c0_15, %c0_16] : memref<128x128xf32, #tpu.memory_space<vmem>>, vector<128x128xf32>
      tpu.vector_store %arg10[%c0_15, %c0_16], %26 {strides = array<i32>} : memref<128x128xf32, #tpu.memory_space<vmem>>, vector<128x128xf32>,
      %28 = arith.mulf %26, %26 : vector<128x128xf32>
      %cst_17 = arith.constant dense<0.000000e+00> : vector<128xf32>
      %29 = vector.multi_reduction <add>, %28, %cst_17 [1] : vector<128x128xf32> to vector<128xf32>
      %30 = vector.shape_cast %29 : vector<128xf32> to vector<128x1xf32>
      %cst_18 = arith.constant 1.000000e-24 : f32
      %31 = vector.broadcast %cst_18 : f32 to vector<128x1xf32>
      %32 = arith.maximumf %30, %31 : vector<128x1xf32>
      %33 = math.rsqrt %32 : vector<128x1xf32>
      %34 = vector.broadcast %33 : vector<128x1xf32> to vector<128x128xf32>
      %35 = arith.mulf %26, %34 : vector<128x128xf32>
      %c0_19 = arith.constant 0 : index
      %c0_20 = arith.constant 0 : index
      %36 = vector.load %arg11[%c0_19, %c0_20] : memref<128x128xf32, #tpu.memory_space<vmem>>, vector<128x128xf32>
      tpu.vector_store %arg11[%c0_19, %c0_20], %35 {strides = array<i32>} : memref<128x128xf32, #tpu.memory_space<vmem>>, vector<128x128xf32>,
    } else {
    }
    return
  }
  func.func @transform_0(%arg0: i32, %arg1: i32, %arg2: memref<9xi32, #tpu.memory_space<smem>>, %arg3: memref<3xi32, #tpu.memory_space<smem>>) -> (i32, i32) {
    %c3_i32 = arith.constant 3 : i32
    %0 = arith.muli %arg0, %c3_i32 : i32
    %1 = arith.addi %0, %arg1 : i32
    %2 = arith.index_cast %1 : i32 to index
    %3 = memref.load %arg2[%2] : memref<9xi32, #tpu.memory_space<smem>>
    %c0_i32 = arith.constant 0 : i32
    return %arg0, %3 : i32, i32
  }
  func.func @transform_1(%arg0: i32, %arg1: i32, %arg2: memref<9xi32, #tpu.memory_space<smem>>, %arg3: memref<3xi32, #tpu.memory_space<smem>>) -> (i32, i32) {
    %c3_i32 = arith.constant 3 : i32
    %0 = arith.muli %arg0, %c3_i32 : i32
    %1 = arith.addi %0, %arg1 : i32
    %2 = arith.index_cast %1 : i32 to index
    %3 = memref.load %arg2[%2] : memref<9xi32, #tpu.memory_space<smem>>
    %c0_i32 = arith.constant 0 : i32
    %c0_i32_0 = arith.constant 0 : i32
    return %3, %c0_i32 : i32, i32
  }
  func.func @transform_2(%arg0: i32, %arg1: i32, %arg2: memref<9xi32, #tpu.memory_space<smem>>, %arg3: memref<3xi32, #tpu.memory_space<smem>>) -> (i32, i32) {
    %c0_i32 = arith.constant 0 : i32
    %c0_i32_0 = arith.constant 0 : i32
    return %arg0, %c0_i32 : i32, i32
  }
  func.func @transform_3(%arg0: i32, %arg1: i32, %arg2: memref<9xi32, #tpu.memory_space<smem>>, %arg3: memref<3xi32, #tpu.memory_space<smem>>) -> (i32, i32) {
    %c0_i32 = arith.constant 0 : i32
    %c0_i32_0 = arith.constant 0 : i32
    %c0_i32_1 = arith.constant 0 : i32
    return %c0_i32, %c0_i32_0 : i32, i32
  }
  func.func @transform_4(%arg0: i32, %arg1: i32, %arg2: memref<9xi32, #tpu.memory_space<smem>>, %arg3: memref<3xi32, #tpu.memory_space<smem>>) -> (i32, i32) {
    %c0_i32 = arith.constant 0 : i32
    %c0_i32_0 = arith.constant 0 : i32
    %c0_i32_1 = arith.constant 0 : i32
    return %c0_i32, %c0_i32_0 : i32, i32
  }
  func.func @transform_5(%arg0: i32, %arg1: i32, %arg2: memref<9xi32, #tpu.memory_space<smem>>, %arg3: memref<3xi32, #tpu.memory_space<smem>>) -> (i32, i32) {
    %c0_i32 = arith.constant 0 : i32
    %c0_i32_0 = arith.constant 0 : i32
    %c0_i32_1 = arith.constant 0 : i32
    return %c0_i32, %c0_i32_0 : i32, i32
  }
  func.func @transform_6(%arg0: i32, %arg1: i32, %arg2: memref<9xi32, #tpu.memory_space<smem>>, %arg3: memref<3xi32, #tpu.memory_space<smem>>) -> (i32, i32) {
    %c0_i32 = arith.constant 0 : i32
    %c0_i32_0 = arith.constant 0 : i32
    return %arg0, %c0_i32 : i32, i32
  }
  func.func @transform_7(%arg0: i32, %arg1: i32, %arg2: memref<9xi32, #tpu.memory_space<smem>>, %arg3: memref<3xi32, #tpu.memory_space<smem>>) -> (i32, i32) {
    %c0_i32 = arith.constant 0 : i32
    %c0_i32_0 = arith.constant 0 : i32
    return %arg0, %c0_i32 : i32, i32
  }
}

module attributes {stable_mosaic.version = 11 : i64} {
  func.func @bpr_loss_kernel(%arg0: memref<8x48xf32, #tpu.memory_space<vmem>>, %arg1: memref<8x48xf32, #tpu.memory_space<vmem>>, %arg2: memref<8x48xf32, #tpu.memory_space<vmem>>, %arg3: memref<1x1xf32, #tpu.memory_space<vmem>>) attributes {dimension_semantics = [], scalar_prefetch = 0 : i64, scratch_operands = 0 : i64, tpu.core_type = #tpu.core_type<tc>} {
    %c0 = arith.constant 0 : index
    %c0_0 = arith.constant 0 : index
    %0 = vector.load %arg0[%c0, %c0_0] : memref<8x48xf32, #tpu.memory_space<vmem>>, vector<8x48xf32>
    %c0_1 = arith.constant 0 : index
    %c0_2 = arith.constant 0 : index
    %1 = vector.load %arg1[%c0_1, %c0_2] : memref<8x48xf32, #tpu.memory_space<vmem>>, vector<8x48xf32>
    %c0_3 = arith.constant 0 : index
    %c0_4 = arith.constant 0 : index
    %2 = vector.load %arg2[%c0_3, %c0_4] : memref<8x48xf32, #tpu.memory_space<vmem>>, vector<8x48xf32>
    %3 = arith.mulf %0, %1 : vector<8x48xf32>
    %cst = arith.constant dense<0.000000e+00> : vector<8xf32>
    %4 = vector.multi_reduction <add>, %3, %cst [1] : vector<8x48xf32> to vector<8xf32>
    %5 = vector.shape_cast %4 : vector<8xf32> to vector<8x1xf32>
    %6 = arith.mulf %0, %2 : vector<8x48xf32>
    %cst_5 = arith.constant dense<0.000000e+00> : vector<8xf32>
    %7 = vector.multi_reduction <add>, %6, %cst_5 [1] : vector<8x48xf32> to vector<8xf32>
    %8 = vector.shape_cast %7 : vector<8xf32> to vector<8x1xf32>
    %9 = arith.subf %5, %8 : vector<8x1xf32>
    %cst_6 = arith.constant 0.000000e+00 : f32
    %10 = vector.broadcast %cst_6 : f32 to vector<8x1xf32>
    %11 = arith.minimumf %9, %10 : vector<8x1xf32>
    %12 = math.absf %9 : vector<8x1xf32>
    %cst_7 = arith.constant 0.000000e+00 : f32
    %13 = vector.broadcast %cst_7 : f32 to vector<8x1xf32>
    %14 = arith.subf %13, %12 : vector<8x1xf32>
    %15 = math.exp %14 : vector<8x1xf32>
    %16 = math.log1p %15 : vector<8x1xf32>
    %17 = arith.subf %11, %16 : vector<8x1xf32>
    %18 = vector.shape_cast %17 : vector<8x1xf32> to vector<1x8x1xf32>
    %cst_8 = arith.constant dense<0.000000e+00> : vector<1xf32>
    %19 = vector.multi_reduction <add>, %18, %cst_8 [1, 2] : vector<1x8x1xf32> to vector<1xf32>
    %20 = vector.shape_cast %19 : vector<1xf32> to vector<1x1x1xf32>
    %21 = vector.extract %20[0, 0, 0] : f32 from vector<1x1x1xf32>
    %cst_9 = arith.constant 8.000000e+00 : f32
    %22 = arith.divf %21, %cst_9 : f32
    %cst_10 = arith.constant 0.000000e+00 : f32
    %23 = arith.subf %cst_10, %22 : f32
    %24 = arith.mulf %0, %0 : vector<8x48xf32>
    %25 = vector.shape_cast %24 : vector<8x48xf32> to vector<1x8x48xf32>
    %cst_11 = arith.constant dense<0.000000e+00> : vector<1xf32>
    %26 = vector.multi_reduction <add>, %25, %cst_11 [1, 2] : vector<1x8x48xf32> to vector<1xf32>
    %27 = vector.shape_cast %26 : vector<1xf32> to vector<1x1x1xf32>
    %28 = vector.extract %27[0, 0, 0] : f32 from vector<1x1x1xf32>
    %29 = arith.mulf %1, %1 : vector<8x48xf32>
    %30 = vector.shape_cast %29 : vector<8x48xf32> to vector<1x8x48xf32>
    %cst_12 = arith.constant dense<0.000000e+00> : vector<1xf32>
    %31 = vector.multi_reduction <add>, %30, %cst_12 [1, 2] : vector<1x8x48xf32> to vector<1xf32>
    %32 = vector.shape_cast %31 : vector<1xf32> to vector<1x1x1xf32>
    %33 = vector.extract %32[0, 0, 0] : f32 from vector<1x1x1xf32>
    %34 = arith.addf %28, %33 : f32
    %35 = arith.mulf %2, %2 : vector<8x48xf32>
    %36 = vector.shape_cast %35 : vector<8x48xf32> to vector<1x8x48xf32>
    %cst_13 = arith.constant dense<0.000000e+00> : vector<1xf32>
    %37 = vector.multi_reduction <add>, %36, %cst_13 [1, 2] : vector<1x8x48xf32> to vector<1xf32>
    %38 = vector.shape_cast %37 : vector<1xf32> to vector<1x1x1xf32>
    %39 = vector.extract %38[0, 0, 0] : f32 from vector<1x1x1xf32>
    %40 = arith.addf %34, %39 : f32
    %cst_14 = arith.constant 5.000000e-01 : f32
    %41 = arith.mulf %cst_14, %40 : f32
    %cst_15 = arith.constant 8.000000e+00 : f32
    %42 = arith.divf %41, %cst_15 : f32
    %cst_16 = arith.constant 9.99999974E-6 : f32
    %43 = arith.mulf %cst_16, %42 : f32
    %44 = arith.addf %23, %43 : f32
    %45 = vector.broadcast %44 : f32 to vector<1x1xf32>
    %c0_17 = arith.constant 0 : index
    %c0_18 = arith.constant 0 : index
    %46 = vector.load %arg3[%c0_17, %c0_18] : memref<1x1xf32, #tpu.memory_space<vmem>>, vector<1x1xf32>
    tpu.vector_store %arg3[%c0_17, %c0_18], %45 {strides = array<i32>} : memref<1x1xf32, #tpu.memory_space<vmem>>, vector<1x1xf32>,
    return
  }
}

</mosaic_0001>

<bundles_post_ra>
// kernel: ngcf_forward.5
= control target key start
LH: loop header
LB: loop body
LE: loop exit
PB: predicated region body
PF: predicated region fallthrough
CT: control target
= control target key end

     0   :  { %vm19_vm0 = vcmask 392192   ;;  %s200_s0 = inlined_call_operand.vmem [shape: f32[8,48], index: 0, kind: input, shape index: {}]   ;;  %s201_s1 = inlined_call_operand.vmem [shape: f32[8,48], index: 1, kind: input, shape index: {}]   ;;  %s202_s2 = inlined_call_operand.vmem [shape: f32[8,48], index: 2, kind: input, shape index: {}]   ;;  %s203_s3 = inlined_call_operand.hbm [shape: f32[1,1], index: 3, kind: output, shape index: {}]  }
   0x1   :  { %v15_v0 = vld [vmem:[%s200_s0] sm:$0xff] }
   0x2   :  { %v16_v1 = vld [vmem:[%s201_s1] sm:$0xff] }
   0x3   :  { %v17_v2 = vld [vmem:[%s202_s2] sm:$0xff]  ;;  %v18_v3 = vmul.f32 %v16_v1, %v15_v0 }
   0x4   :  { %v23_v4 = vmul.f32 %v17_v2, %v15_v0 }
   0x5   :  { %8 = vsyncpa [#allocation3], 0  ;;  %v20_v5 = vsel %vm19_vm0, %v18_v3, 0.0  ;;  %v58_v7 = vmul.f32 %v15_v0, %v15_v0  ;;  %v69_v8 = vmul.f32 %v16_v1, %v16_v1  ;;  %v81_v11 = vmul.f32 %v17_v2, %v17_v2  ;;  %s153_s24 = smov [#allocation2]  }
   0x6   :  { %21 = vadd.xlane.f32.xlu0 %v20_v5  ;;  %v24_v6 = vsel %vm19_vm0, %v23_v4, 0.0  ;;  %vm43_vm2 = vcmask 7168   ;;  %s108_s25 = sshll.u32 %s153_s24, 4  ;;  %vm100_vm3 = vcmask 0   ;;  %s109_s25 = int_to_ptr.vmem [resolvable:$true] %s108_s25 }
   0x7   :  { %v59_v9 = vsel %vm19_vm0, %v58_v7, 0.0  ;;  %v70_v10 = vsel %vm19_vm0, %v69_v8, 0.0  ;;  %v82_v12 = vsel %vm19_vm0, %v81_v11, 0.0  ;;  %s129_s29 = scalar_lea.vmem %s109_s25, 16  ;;  %s133_s30 = scalar_lea.vmem %s109_s25, 32 }
   0x8   :  { %60 = vadd.xlane.f32.xlu1 %v59_v9  ;;  %p130_p0 = scmp.ne.s32.totalorder %s109_s25, %s129_s29  ;;  %p134_p1 = scmp.lt.s32.totalorder %s109_s25, %s109_s25 }
   0x9   :  { %p135_p2 = scmp.lt.s32.totalorder %s133_s30, %s129_s29 }
   0xa   :  { %25 = vadd.xlane.f32.xlu0 %v24_v6 }
   0xb   :  { %p136_p3 = por %p135_p2, %p134_p1 }
   0xd   :  { %p137_p4 = pnand %p136_p3, %p130_p0 }
   0xe   :  { %71 = vadd.xlane.f32.xlu0 %v70_v10 }
  0x93   :  { %v22_v13 = vpop.xlane.xlu0 %21 }
  0x95   :  { %v61_v31 = vpop.xlane.xlu1 %60 }
  0x96   :  { %v62_v33 = vrot.slane %v61_v31, 4 }
  0x97   :  { %v26_v14 = vpop.xlane.xlu0 %25 }
  0x98   :  { %v27_v15 = vsub.f32 %v22_v13, %v26_v14  ;;  %v63_v35 = vadd.f32 %v62_v33, %v61_v31 }
  0x9a   :  { %v29_v16 = vand.u32 2147483647, %v27_v15  ;;  %v28_v27 = vmin.f32 %v27_v15, 0.0  ;;  %v64_v37 = vrot.slane %v63_v35, 2 }
  0x9b   :  { %v72_v32 = vpop.xlane.xlu0 %71 }
  0x9c   :  { %v30_v17 = vsub.f32 0.0, %v29_v16  ;;  %v73_v34 = vrot.slane %v72_v32, 4  ;;  %v65_v43 = vadd.f32 %v64_v37, %v63_v35 }
  0x9e   :  { %v31_v18 = vmul.f32 1.442695, %v30_v17  ;;  %v74_v36 = vadd.f32 %v73_v34, %v72_v32  ;;  %v66_v49 = vrot.slane %v65_v43, 1 }
  0xa0   :  { %125 = vpow2.f32 %v31_v18  ;;  %v75_v39 = vrot.slane %v74_v36, 2  ;;  %v67_v55 = vadd.f32 %v66_v49, %v65_v43 }
  0xa2   :  { %v76_v44 = vadd.f32 %v75_v39, %v74_v36 }
  0xa4   :  { %v77_v52 = vrot.slane %v76_v44, 1 }
  0xa6   :  { %v78_v56 = vadd.f32 %v77_v52, %v76_v44 }
  0xaa   :  { %v126_v19 = vpop.eup %125 }
  0xab   :  { %v33_v20 = vadd.f32 1.0, %v126_v19  ;;  %v36_v21 = vmul.f32 -0.5, %v126_v19  ;;  %v39_v23 = vand.u32 2147483647, %v126_v19 }
  0xad   :  { %127 = vlog2.f32 %v33_v20  ;;  %v37_v22 = vadd.f32 1.0, %v36_v21  ;;  %vm40_vm1 = vcmp.lt.f32.partialorder %v39_v23, 0.0004427343 }
  0xaf   :  { %v38_v26 = vmul.f32 %v126_v19, %v37_v22 }
  0xb7   :  { %v128_v24 = vpop.eup %127 }
  0xb8   :  { %v35_v25 = vmul.f32 0.6931472, %v128_v24 }
  0xba   :  { %v41_v28 = vsel %vm40_vm1, %v38_v26, %v35_v25 }
  0xbb   :  { %v42_v29 = vsub.f32 %v28_v27, %v41_v28 }
  0xbd   :  { %v44_v30 = vsel %vm43_vm2, %v42_v29, 0.0 }
  0xbe   :  { %45 = vadd.xlane.f32.xlu1 %v44_v30 }
  0xc2   :  { %83 = vadd.xlane.f32.xlu1 %v82_v12 }
 0x14b   :  { %v46_v38 = vpop.xlane.xlu1 %45 }
 0x14c   :  { %v47_v40 = vrot.slane %v46_v38, 4 }
 0x14e   :  { %v48_v41 = vadd.f32 %v47_v40, %v46_v38 }
 0x14f   :  { %v84_v42 = vpop.xlane.xlu1 %83 }
 0x150   :  { %v49_v45 = vrot.slane %v48_v41, 2  ;;  %v85_v46 = vrot.slane %v84_v42, 4 }
 0x152   :  { %v86_v47 = vadd.f32 %v85_v46, %v84_v42  ;;  %v50_v48 = vadd.f32 %v49_v45, %v48_v41 }
 0x154   :  { %v87_v50 = vrot.slane %v86_v47, 2  ;;  %v51_v51 = vrot.slane %v50_v48, 1 }
 0x156   :  { %v88_v53 = vadd.f32 %v87_v50, %v86_v47  ;;  %v52_v54 = vadd.f32 %v51_v51, %v50_v48 }
 0x158   :  { %116 = vpush %v52_v54  ;;  %v89_v57 = vrot.slane %v88_v53, 1 }
 0x159   :  { %118 = vpush %v67_v55 }
 0x15a   :  { %120 = vpush %v78_v56  ;;  %v90_v58 = vadd.f32 %v89_v57, %v88_v53 }
 0x15c   :  { %122 = vpush %v90_v58 }
 0x189   :  { %s117_s0 = spop %116 }
 0x18a   :  { %s119_s1 = spop %118  ;;  %s56_s21 = smul.f32 0.125, %s117_s0 }
 0x18b   :  { %s121_s2 = spop %120 }
 0x18c   :  { %s80_s18 = sadd.f32 %s121_s2, %s119_s1 }
 0x18d   :  { %s123_s19 = spop %122  ;;  %s57_s26 = ssub.f32 0.0, %s56_s21 }
 0x18e   :  { %s92_s20 = sadd.f32 %s123_s19, %s80_s18 }
 0x190   :  { %s93_s22 = smul.f32 0.5, %s92_s20 }
 0x192   :  { %s96_s23 = smul.f32 0.125, %s93_s22 }
 0x194   :  { %s97_s27 = smul.f32 1e-05, %s96_s23 }
 0x196   :  { %s98_s28 = sadd.f32 %s97_s27, %s57_s26 }
 0x198   :  { %v99_v59 = vstv %s98_s28 }
 0x199   :  { %101 = vst.msk [vmem:[#allocation2] sm:$0x1] %vm100_vm3, %v99_v59 }
 0x19a   :  { %140 = shalt.err (!%p137_p4)
}
 0x19b   :  { %s141_s6 = scalar_lea.hbm %s203_s3, 16 }
 0x19c   :  { %p142_p5 = scmp.ne.s32.totalorder %s203_s3, %s141_s6  ;;  %p145_p6 = scmp.lt.u32.totalorder %s141_s6, %s203_s3 }
 0x19e   :  { %p147_p7 = pnand %p145_p6, %p142_p5 }
 0x1a0   :  { %150 = shalt.err (!%p147_p7)
}
 0x1a1   :  { %111 = dma.vmem_to_hbm [thread:$0]  %s109_s25, 16, %s203_s3, [#allocation3]  }
 0x1a2   :  { %151 = dma.done.wait [#allocation3], 16  }
 0x1a3   :  { %152 = vsyncadd [#allocation3], 4294967280 }
 0x1a4   :  { %115 = vsyncpa [#allocation3], 1 }

// kernel: ngcf_forward.4
= control target key start
LH: loop header
LB: loop body
LE: loop exit
PB: predicated region body
PF: predicated region fallthrough
CT: control target
= control target key end

     0   :  { %s2725_s0 = inlined_call_operand.vmem [shape: s32[9], index: 0, kind: input, shape index: {}]   ;;  %s2726_s2 = inlined_call_operand.vmem [shape: bf16[384,384], index: 2, kind: input, shape index: {}]   ;;  %s2727_s3 = inlined_call_operand.vmem [shape: bf16[384,128], index: 3, kind: input, shape index: {}]   ;;  %s2728_s4 = inlined_call_operand.vmem [shape: f32[384,128], index: 4, kind: input, shape index: {}]   ;;  %s2729_s5 = inlined_call_operand.vmem [shape: f32[128,128], index: 5, kind: input, shape index: {}]   ;;  %s2730_s6 = inlined_call_operand.vmem [shape: f32[128,128], index: 6, kind: input, shape index: {}]   ;;  %s2731_s7 = inlined_call_operand.vmem [shape: f32[1,128], index: 7, kind: input, shape index: {}]   ;;  %s2732_s8 = inlined_call_operand.hbm [shape: f32[384,128], index: 8, kind: output, shape index: {0}]   ;;  %s2733_s9 = inlined_call_operand.vmem [shape: f32[384,128], index: 9, kind: output, shape index: {1}]   ;;  %s2734_s1 = inlined_call_operand.vmem [shape: s32[3], index: 1, kind: input, shape index: {}]  }
   0x1   :  { %2742 = sst [smem:[#allocation16_spill]] %s2726_s2  ;;  %s15_s11 = sshll.u32 %s2725_s0, 4  ;;  %s16_s11 = int_to_ptr.vmem [resolvable:$true] %s15_s11 }
   0x2   :  { %2743 = sst [smem:[#allocation17_spill]] %s2729_s5  ;;  %s19_s14 = sshll.u32 %s2734_s1, 4  ;;  %s20_s14 = int_to_ptr.vmem [resolvable:$true] %s19_s14 }
   0x3   :  { %2744 = sst [smem:[#allocation18_spill]] %s2731_s7  ;;  %s2029_s15 = scalar_lea.vmem %s16_s11, 16 }
   0x4   :  { %2745 = sst [smem:[#allocation19_spill]] %s2732_s8  ;;  %p2030_p0 = scmp.ne.s32.totalorder %s16_s11, %s2029_s15 }
   0x5   :  { %p2034_p1 = scmp.lt.s32.totalorder %s16_s11, %s16_s11  ;;  %p2035_p2 = scmp.lt.s32.totalorder %s2029_s15, %s2029_s15 }
   0x7   :  { %p2036_p3 = por %p2035_p2, %p2034_p1 }
   0x9   :  { %p2037_p4 = pnand %p2036_p3, %p2030_p0 }
   0xb   :  { %2040 = shalt.err (!%p2037_p4)  }
   0xc   :  { %s2167_s16 = smov [#allocation4]   ;;  %s2041_s17 = scalar_lea.vmem %s20_s14, 16 }
   0xd   :  { %18 = dma.vmem_to_smem %s16_s11, 16, %s2167_s16, [#allocation3] }
   0xe   :  { %p2042_p5 = scmp.ne.s32.totalorder %s20_s14, %s2041_s17  ;;  %p2046_p6 = scmp.lt.s32.totalorder %s20_s14, %s20_s14 }
   0xf   :  { %p2047_p7 = scmp.lt.s32.totalorder %s2041_s17, %s2041_s17 }
  0x11   :  { %p2048_p8 = por %p2047_p7, %p2046_p6 }
  0x13   :  { %p2049_p9 = pnand %p2048_p8, %p2042_p5 }
  0x15   :  { %2052 = shalt.err (!%p2049_p9)  }
  0x16   :  { %s2168_s0 = smov [#allocation5]  }
  0x17   :  { %22 = dma.vmem_to_smem %s20_s14, 16, %s2168_s0, [#allocation3] }
  0x18   :  { %2121 = dma.done.wait [#allocation3], 32 }
  0x19   :  { %2122 = vsyncadd [#allocation3], 4294967264 }
  0x1a   :  { %24 = sfence }
  0x1b   :  { %25 = vsyncpa [#allocation8], 0 }
  0x1c   :  { %27 = vsyncpa [#allocation8 + $0x1], 0  ;;  %s2229_s1 = smov 0   ;;  %s2231_s18 = smov 0  }
  0x1d   :  { %s2233_s19 = smov 0   ;;  %s2235_s20 = smov 0  }
  0x1e   :  { %s2237_s21 = smov 0   ;;  %s2239_s22 = smov 0  }
  0x1f   :  { %s2241_s23 = smov 0   ;;  %s2243_s24 = smov 0  }
  0x20   :  { %s2245_s25 = smov 0   ;;  %s2247_s26 = smov 0  }
  0x21 LB: > { %2746 = sst [smem:[#allocation11_spill]] %s2157_s24  ;;  %s1525_s27 = sadd.s32 4294967295, %s2165_s26   ;;  %s2165_s26 = sphi %s2247_s26, %s33_s26   ;;  %s2161_s25 = sphi %s2245_s25, %s2763_s25   ;;  %s2157_s24 = sphi %s2243_s24, %s2762_s24   ;;  %s2153_s23 = sphi %s2241_s23, %s2761_s23   ;;  %s2149_s22 = sphi %s2239_s22, %s2760_s22   ;;  %s2145_s21 = sphi %s2237_s21, %s2768_s21   ;;  %s2141_s20 = sphi %s2235_s20, %s2767_s20   ;;  %s2137_s19 = sphi %s2233_s19, %s2766_s19   ;;  %s2133_s18 = sphi %s2231_s18, %s2765_s18   ;;  %s2129_s1 = sphi %s2229_s1, %s2764_s1  }
  0x22   : > { %2747 = sst [smem:[#allocation12_spill]] %s2161_s25  ;;  %s42_s28 = sadd.s32 1, %s2157_s24 }
  0x23   : > { %s45_s29 = sadd.s32 1, %s2161_s25  ;;  %p43_p10 = scmp.ge.s32.totalorder %s42_s28, 3 }
  0x24   : > { %s49_s30 = smul.u32 3, %s2161_s25  ;;  %s1526_s10 = sadd.s32 4294967294, %s2165_s26  }
  0x25   : > { %p67_p11 = scmp.ne.s32.totalorder %s2145_s21, %s2141_s20  ;;  %s2770_s28 = smov (%p43_p10, %s42_s28), 0 }
  0x26   : > { %2748 = sst [smem:[#allocation13_spill]] %s2770_s28  ;;  %s2772_s29 = smov (!%p43_p10, %s45_s29), %s2161_s25 }
  0x27   : > { %s50_s11 = sadd.s32 %s2157_s24, %s49_s30  ;;  %p68_p12 = scmp.eq.s32.totalorder %s2165_s26, 0 }
  0x28   : > { %p47_p13 = scmp.ge.s32.totalorder %s2772_s29, 3  ;;  %s51_s12 = sld [smem:[#allocation4 + %s50_s11]] }
  0x29   : > { %p2291_p0 = por %p68_p12, %p67_p11  ;;  %s207_s14 = sadd.s32 1, %s2137_s19 }
  0x2a   : > { %s2774_s29 = smov (%p47_p13, %s2772_s29), 0  ;;  %p217_p1 = scmp.ne.s32.totalorder %s2137_s19, %s2133_s18 }
  0x2b   : > { %2750 = sst [smem:[#allocation14_spill]] %s2774_s29  ;;  %p218_p2 = scmp.eq.s32.totalorder %s1525_s27, 8 }
  0x2c   : > { %s52_s15 = smul.u32 3, %s2774_s29  ;;  %s55_s16 = ssub.s32 %s2161_s25, %s2774_s29 }
  0x2d   : > { %p205_p3 = scmp.eq.s32.totalorder %s55_s16, 0  ;;  %p2303_p4 = por %p218_p2, %p217_p1 }
  0x2e   : > { %s53_s0 = sadd.s32 %s52_s15, %s2770_s28  ;;  %p223_p5 = scmp.ne.s32.totalorder %s2133_s18, %s2129_s1 }
  0x2f   : > { %s54_s30 = sld [smem:[#allocation4 + %s53_s0]]  ;;  %p224_p6 = scmp.eq.s32.totalorder %s1526_s10, 8 }
  0x30   : > { %s2311_s24 = scalar_select %p205_p3, %s2137_s19, %s207_s14  }
  0x31   : > { %p2313_p7 = por %p224_p6, %p223_p5  ;;  %s60_s27 = sadd.s32 1, %s2145_s21 }
  0x32   : > { %2752 = sst [smem:[#allocation15_spill]] %s2311_s24  ;;  %p1528_p9 = scmp.ge.s32.totalorder %s2165_s26, 9 }
  0x34   : > { %275 = sbr.rel (%p1528_p9) target bundleno = 79 (0x4f), region = 28 }
  0x35   : > { %s56_s7 = ssub.s32 %s51_s12, %s54_s30 }
  0x36   : > { %s57_s5 = sor.u32 %s56_s7, %s55_s16 }
  0x37   : > { %p58_p8 = scmp.eq.s32.totalorder %s57_s5, 0 }
  0x39   : > { %s2319_s29 = scalar_select %p58_p8, %s2145_s21, %s60_s27  }
  0x3b   : > { %278 = sbr.rel (!%p2291_p0) target bundleno = 79 (0x4f), region = 32  ;;  %s285_s15 = sld [smem:[#allocation4 + %s50_s11]] (%p2291_p0) }
  0x3c   : > { %s280_s10 = sand.u32 (%p2291_p0), 1, %s2145_s21   ;;  %s1888_s14 = smul.u32 (%p2291_p0), 48, %s2161_s25 }
  0x3d   : > { %s1529_s0 = sshll.u32 (%p2291_p0), %s280_s10, 6  ;;  %s2754_s2 = sld [smem:[#allocation16_spill]] (%p2291_p0) }
  0x3e   : > { %s282_s11 = scalar_lea.vmem (%p2291_p0), [#allocation6], %s1529_s0 }
  0x41   : > { %s288_s28 = sadd.s32 (%p2291_p0), %s1888_s14, %s285_s15 }
  0x42   : > { %s1532_s24 = sshll.u32 %s288_s28, 2 }
  0x43   : > { %s2329_s5 = scalar_lea.vmem %s2754_s2, %s1532_s24 }
  0x44   : > { %v306_v0 = vld [vmem:[%s2329_s5] sm:$0xf]  ;;  %v308_v1 = vld [vmem:[%s2329_s5 + $0xc] sm:$0xf]  ;;  %v310_v2 = vld [vmem:[%s2329_s5 + $0x18] sm:$0xf] }
  0x45   : > { %307 = vst [vmem:[%s282_s11] sm:$0xf] %v306_v0  ;;  %309 = vst [vmem:[%s282_s11 + $0x4] sm:$0xf] %v308_v1  ;;  %v312_v3 = vld [vmem:[%s2329_s5 + $0x24] sm:$0xf] }
  0x46   : > { %311 = vst [vmem:[%s282_s11 + $0x8] sm:$0xf] %v310_v2  ;;  %v314_v4 = vld [vmem:[%s2329_s5 + $0x30] sm:$0xf]  ;;  %v316_v5 = vld [vmem:[%s2329_s5 + $0x3c] sm:$0xf] }
  0x47   : > { %313 = vst [vmem:[%s282_s11 + $0xc] sm:$0xf] %v312_v3  ;;  %315 = vst [vmem:[%s282_s11 + $0x10] sm:$0xf] %v314_v4  ;;  %v318_v6 = vld [vmem:[%s2329_s5 + $0x48] sm:$0xf] }
  0x48   : > { %317 = vst [vmem:[%s282_s11 + $0x14] sm:$0xf] %v316_v5  ;;  %v320_v7 = vld [vmem:[%s2329_s5 + $0x54] sm:$0xf]  ;;  %v322_v8 = vld [vmem:[%s2329_s5 + $0x60] sm:$0xf] }
  0x49   : > { %319 = vst [vmem:[%s282_s11 + $0x18] sm:$0xf] %v318_v6  ;;  %321 = vst [vmem:[%s282_s11 + $0x1c] sm:$0xf] %v320_v7  ;;  %v324_v9 = vld [vmem:[%s2329_s5 + $0x6c] sm:$0xf] }
  0x4a   : > { %323 = vst [vmem:[%s282_s11 + $0x20] sm:$0xf] %v322_v8  ;;  %v326_v10 = vld [vmem:[%s2329_s5 + $0x78] sm:$0xf]  ;;  %v328_v11 = vld [vmem:[%s2329_s5 + $0x84] sm:$0xf] }
  0x4b   : > { %325 = vst [vmem:[%s282_s11 + $0x24] sm:$0xf] %v324_v9  ;;  %327 = vst [vmem:[%s282_s11 + $0x28] sm:$0xf] %v326_v10  ;;  %v330_v12 = vld [vmem:[%s2329_s5 + $0x90] sm:$0xf] }
  0x4c   : > { %329 = vst [vmem:[%s282_s11 + $0x2c] sm:$0xf] %v328_v11  ;;  %v332_v13 = vld [vmem:[%s2329_s5 + $0x9c] sm:$0xf]  ;;  %v334_v14 = vld [vmem:[%s2329_s5 + $0xa8] sm:$0xf] }
  0x4d   : > { %331 = vst [vmem:[%s282_s11 + $0x30] sm:$0xf] %v330_v12  ;;  %333 = vst [vmem:[%s282_s11 + $0x34] sm:$0xf] %v332_v13  ;;  %v336_v15 = vld [vmem:[%s2329_s5 + $0xb4] sm:$0xf] }
  0x4e   : > { %335 = vst [vmem:[%s282_s11 + $0x38] sm:$0xf] %v334_v14  ;;  %337 = vst [vmem:[%s282_s11 + $0x3c] sm:$0xf] %v336_v15 }
  0x4f PF: > { %p1533_p10 = scmp.ge.s32.totalorder %s2165_s26, 1  ;;  %p415_p11 = scmp.lt.s32.totalorder %s2165_s26, 10 }
  0x51   : > { %p416_p12 = pnand %p1533_p10, %p415_p11 }
  0x52   : > { %s422_s24 = sand.u32 (!%p416_p12), 1, %s2141_s20   ;;  %s2740_s28 = sand.u32 (!%p416_p12), 1, %s2133_s18  }
  0x53   : > { %419 = sbr.rel (%p416_p12) target bundleno = 846 (0x34e), region = 81  ;;  %s1534_s13 = sshll.u32 (!%p416_p12), %s422_s24, 6 }
  0x54   : > { %s1535_s16 = sshll.u32 (!%p416_p12), %s2740_s28, 7  ;;  %s475_s30 = smul.u32 (!%p416_p12), 3, %s2153_s23 }
  0x55   : > { %s1538_s27 = sshll.u32 (!%p416_p12), %s2153_s23, 4  ;;  %p1542_p1 = scmp.ne.s32.totalorder (!%p416_p12), %s2149_s22, 0 }
  0x56   : > { %p488_p13 = scmp.lt.s32.totalorder (!%p416_p12), %s1538_s27, 47  ;;  %s476_s15 = sadd.s32 (!%p416_p12), %s2149_s22, %s475_s30 }
  0x57   : > { %s477_s10 = sld [smem:[#allocation4 + %s476_s15]] (!%p416_p12)  ;;  %s2373_s15 = scalar_lea.vmem (!%p416_p12), [#allocation7], %s1535_s16 }
  0x5a   : > { %s2776_s27 = smov (!%p488_p13, %s1538_s27), 47  ;;  %v2169_v16 = vmov (!%p1542_p1), 0.0  }
  0x5b   : > { %s1539_s14 = sshll.u32 %s2776_s27, 3  ;;  %s2371_s27 = scalar_lea.vmem [#allocation6], %s1534_s13  ;;  %505 = vst [vmem:[#allocation2] sm:$0xff] (!%p1542_p1), %v2169_v16  ;;  %506 = vst [vmem:[#allocation2 + $0x8] sm:$0xff] (!%p1542_p1), %v2169_v16 }
  0x5c   : > { %s2359_s7 = scalar_lea.vmem %s2728_s4, %s1539_s14  ;;  %s2364_s20 = scalar_lea.vmem %s2733_s9, %s1539_s14  ;;  %507 = vst [vmem:[#allocation2 + $0x10] sm:$0xff] (!%p1542_p1), %v2169_v16  ;;  %508 = vst [vmem:[#allocation2 + $0x18] sm:$0xff] (!%p1542_p1), %v2169_v16 }
  0x5d   : > { %s1536_s24 = sshll.u32 %s477_s10, 4  ;;  %504 = sbr.rel (%p1542_p1) target bundleno = 100 (0x64), region = 89  ;;  %509 = vst [vmem:[#allocation2 + $0x20] sm:$0xff] (!%p1542_p1), %v2169_v16  ;;  %510 = vst [vmem:[#allocation2 + $0x28] sm:$0xff] (!%p1542_p1), %v2169_v16 }
  0x5e   : > { %p479_p0 = scmp.lt.s32.totalorder %s1536_s24, 47  ;;  %511 = vst [vmem:[#allocation2 + $0x30] sm:$0xff] (!%p1542_p1), %v2169_v16  ;;  %512 = vst [vmem:[#allocation2 + $0x38] sm:$0xff] (!%p1542_p1), %v2169_v16 }
  0x5f   : > { %513 = vst [vmem:[#allocation2 + $0x40] sm:$0xff] (!%p1542_p1), %v2169_v16  ;;  %514 = vst [vmem:[#allocation2 + $0x48] sm:$0xff] (!%p1542_p1), %v2169_v16 }
  0x60   : > { %s2778_s24 = smov (!%p479_p0, %s1536_s24), 47  ;;  %515 = vst [vmem:[#allocation2 + $0x50] sm:$0xff] (!%p1542_p1), %v2169_v16  ;;  %516 = vst [vmem:[#allocation2 + $0x58] sm:$0xff] (!%p1542_p1), %v2169_v16 }
  0x61   : > { %s1537_s28 = sshll.u32 %s2778_s24, 2  ;;  %517 = vst [vmem:[#allocation2 + $0x60] sm:$0xff] (!%p1542_p1), %v2169_v16  ;;  %518 = vst [vmem:[#allocation2 + $0x68] sm:$0xff] (!%p1542_p1), %v2169_v16 }
  0x62   : > { %s2369_s30 = scalar_lea.vmem %s2727_s3, %s1537_s28  ;;  %519 = vst [vmem:[#allocation2 + $0x70] sm:$0xff] (!%p1542_p1), %v2169_v16  ;;  %520 = vst [vmem:[#allocation2 + $0x78] sm:$0xff] (!%p1542_p1), %v2169_v16 }
  0x64 PF: > { %s521_s2 = sld [smem:[#allocation5 + %s2153_s23]] }
  0x6a   : > { %p1543_p2 = scmp.ge.s32.totalorder %s2149_s22, %s521_s2 }
  0x6b   : > { %v1981_v17 = vld [vmem:[%s2369_s30] sm:$0xff] (!%p1543_p2)   ;;  %v1982_v18 = vld [vmem:[%s2369_s30 + $0x8] sm:$0xff] (!%p1543_p2)   ;;  %v1983_v19 = vld [vmem:[%s2369_s30 + $0x10] sm:$0xff] (!%p1543_p2)  }
  0x6c   : > { %525 = sbr.rel (%p1543_p2) target bundleno = 366 (0x16e), region = 93  ;;  %1648 = vmatprep.subr.bf16.mxu0 (!%p1543_p2), %v1981_v17  ;;  %1856 = vmatprep.subr.bf16.mxu1 (!%p1543_p2), %v1981_v17  ;;  %v1984_v20 = vld [vmem:[%s2369_s30 + $0x18] sm:$0xff] (!%p1543_p2)   ;;  %v1989_v21 = vld [vmem:[%s2371_s27] sm:$0xff] (!%p1543_p2)   ;;  %v1986_v24 = vld [vmem:[%s2369_s30 + $0x28] sm:$0xff] (!%p1543_p2)  }
  0x6d   : > { %1649 = vmatpush3.bf16.msra.mxu0 (!%p1543_p2), %v1981_v17  ;;  %1864 = vmatpush3.bf16.msra.mxu1 (!%p1543_p2), %v1981_v17  ;;  %v1990_v22 = vld [vmem:[%s2371_s27 + $0x20] sm:$0xff] (!%p1543_p2)   ;;  %v1987_v25 = vld [vmem:[%s2369_s30 + $0x30] sm:$0xff] (!%p1543_p2)   ;;  %v1988_v26 = vld [vmem:[%s2369_s30 + $0x38] sm:$0xff] (!%p1543_p2)  }
  0x6e   : > { %1650 = vmatprep.subr.bf16.mxu0 (!%p1543_p2), %v1982_v18  ;;  %1857 = vmatprep.subr.bf16.mxu1 (!%p1543_p2), %v1982_v18  ;;  %v1985_v23 = vld [vmem:[%s2369_s30 + $0x20] sm:$0xff] (!%p1543_p2)   ;;  %v1991_v27 = vld [vmem:[%s2371_s27 + $0x8] sm:$0xff] (!%p1543_p2)   ;;  %v1993_v29 = vld [vmem:[%s2371_s27 + $0x10] sm:$0xff] (!%p1543_p2)  }
  0x6f   : > { %1664 = vmatprep.mubr.bf16.mxu0 (!%p1543_p2), %v1989_v21  ;;  %1672 = vmatprep.mubr.bf16.mxu1 (!%p1543_p2), %v1990_v22  ;;  %v1992_v28 = vld [vmem:[%s2371_s27 + $0x28] sm:$0xff] (!%p1543_p2)   ;;  %v1994_v30 = vld [vmem:[%s2371_s27 + $0x30] sm:$0xff] (!%p1543_p2)   ;;  %v1995_v31 = vld [vmem:[%s2371_s27 + $0x18] sm:$0xff] (!%p1543_p2)  }
  0x70   : > { %v1996_v32 = vld [vmem:[%s2371_s27 + $0x38] sm:$0xff] (!%p1543_p2)   ;;  %v528_v33 = vld [vmem:[#allocation2 + $0x10] sm:$0xff] (!%p1543_p2)  ;;  %v526_v35 = vld [vmem:[#allocation2] sm:$0xff] (!%p1543_p2) }
  0x71   : > { %1651 = vmatpush3.bf16.msra.mxu0 (!%p1543_p2), %v1982_v18  ;;  %1865 = vmatpush3.bf16.msra.mxu1 (!%p1543_p2), %v1982_v18  ;;  %v536_v34 = vld [vmem:[#allocation2 + $0x50] sm:$0xff] (!%p1543_p2)  ;;  %v534_v36 = vld [vmem:[#allocation2 + $0x40] sm:$0xff] (!%p1543_p2)  ;;  %v529_v39 = vld [vmem:[#allocation2 + $0x18] sm:$0xff] (!%p1543_p2) }
  0x72   : > { %1652 = vmatprep.subr.bf16.mxu0 (!%p1543_p2), %v1983_v19  ;;  %1858 = vmatprep.subr.bf16.mxu1 (!%p1543_p2), %v1983_v19  ;;  %v537_v40 = vld [vmem:[#allocation2 + $0x58] sm:$0xff] (!%p1543_p2)  ;;  %v527_v45 = vld [vmem:[#allocation2 + $0x8] sm:$0xff] (!%p1543_p2)  ;;  %v532_v57 = vld [vmem:[#allocation2 + $0x30] sm:$0xff] (!%p1543_p2) }
  0x73   : > { %v535_v46 = vld [vmem:[#allocation2 + $0x48] sm:$0xff]  ;;  %v540_v58 = vld [vmem:[#allocation2 + $0x70] sm:$0xff]  ;;  %v530_v59 = vld [vmem:[#allocation2 + $0x20] sm:$0xff] }
  0x74   : > { %v538_v60 = vld [vmem:[#allocation2 + $0x60] sm:$0xff]  ;;  %v533_v63 = vld [vmem:[#allocation2 + $0x38] sm:$0xff]  ;;  %v531_v5 = vld [vmem:[#allocation2 + $0x28] sm:$0xff] }
  0x75   : > { %1653 = vmatpush3.bf16.msra.mxu0 %v1983_v19  ;;  %1866 = vmatpush3.bf16.msra.mxu1 %v1983_v19  ;;  %v541_v0 = vld [vmem:[#allocation2 + $0x78] sm:$0xff]  ;;  %v539_v6 = vld [vmem:[#allocation2 + $0x68] sm:$0xff] }
  0x76   : > { %1654 = vmatprep.subr.bf16.mxu0 %v1984_v20  ;;  %1859 = vmatprep.subr.bf16.mxu1 %v1984_v20 }
  0x79   : > { %1655 = vmatpush3.bf16.msra.mxu0 %v1984_v20  ;;  %1867 = vmatpush3.bf16.msra.mxu1 %v1984_v20 }
  0x7a   : > { %1656 = vmatprep.subr.bf16.mxu0 %v1985_v23  ;;  %1860 = vmatprep.subr.bf16.mxu1 %v1985_v23 }
  0x7d   : > { %1657 = vmatpush3.bf16.msra.mxu0 %v1985_v23  ;;  %1868 = vmatpush3.bf16.msra.mxu1 %v1985_v23 }
  0x7e   : > { %1658 = vmatprep.subr.bf16.mxu0 %v1986_v24  ;;  %1861 = vmatprep.subr.bf16.mxu1 %v1986_v24 }
  0x81   : > { %1659 = vmatpush3.bf16.msra.mxu0 %v1986_v24  ;;  %1869 = vmatpush3.bf16.msra.mxu1 %v1986_v24 }
  0x82   : > { %1660 = vmatprep.subr.bf16.mxu0 %v1987_v25  ;;  %1862 = vmatprep.subr.bf16.mxu1 %v1987_v25 }
  0x85   : > { %1661 = vmatpush3.bf16.msra.mxu0 %v1987_v25  ;;  %1870 = vmatpush3.bf16.msra.mxu1 %v1987_v25 }
  0x86   : > { %1662 = vmatprep.subr.bf16.mxu0 %v1988_v26  ;;  %1863 = vmatprep.subr.bf16.mxu1 %v1988_v26 }
  0x89   : > { %1663 = vmatpush3.bf16.msra.mxu0 %v1988_v26  ;;  %1871 = vmatpush3.bf16.msra.mxu1 %v1988_v26 }
  0x8c   : > { %1665 = vmatmul.mubr.bf16.vlgmr.msra.gmra.mrb[0].mxu0 %v1991_v27  ;;  %1673 = vmatmul.mubr.bf16.vlgmr.msra.gmra.mrb[0].mxu1 %v1992_v28 }
  0x8d   : > { %1668 = vmatprep.mubr.bf16.mxu0 %v1993_v29  ;;  %1676 = vmatprep.mubr.bf16.mxu1 %v1994_v30 }
  0x94   : > { %1669 = vmatmul.mubr.bf16.gmra.mrb[4].mxu0 %v1995_v31  ;;  %1677 = vmatmul.mubr.bf16.gmra.mrb[4].mxu1 %v1996_v32 }
 0x15f   : > { %v1666_v37 = vpop.f32.mrb[0].mxu0  ;;  %v1674_v38 = vpop.f32.mrb[0].mxu1 }
 0x160   : > { %v769_v41 = vadd.f32 %v1666_v37, %v528_v33  ;;  %v777_v42 = vadd.f32 %v1674_v38, %v536_v34  ;;  %v704_v43 = vpop.f32.mrb[1].mxu0  ;;  %v736_v44 = vpop.f32.mrb[1].mxu1 }
 0x161   : > { %v767_v47 = vadd.f32 %v704_v43, %v526_v35  ;;  %v775_v48 = vadd.f32 %v736_v44, %v534_v36  ;;  %v1667_v49 = vpop.f32.mrb[2].mxu0  ;;  %v1675_v50 = vpop.f32.mrb[2].mxu1 }
 0x162   : > { %785 = vst [vmem:[#allocation2 + $0x10] sm:$0xff] %v769_v41  ;;  %793 = vst [vmem:[#allocation2 + $0x50] sm:$0xff] %v777_v42  ;;  %v770_v51 = vadd.f32 %v1667_v49, %v529_v39  ;;  %v778_v52 = vadd.f32 %v1675_v50, %v537_v40  ;;  %v707_v53 = vpop.f32.mrb[3].mxu0  ;;  %v739_v54 = vpop.f32.mrb[3].mxu1 }
 0x163   : > { %783 = vst [vmem:[#allocation2] sm:$0xff] %v767_v47  ;;  %791 = vst [vmem:[#allocation2 + $0x40] sm:$0xff] %v775_v48  ;;  %v768_v55 = vadd.f32 %v707_v53, %v527_v45  ;;  %v776_v56 = vadd.f32 %v739_v54, %v535_v46 }
 0x164   : > { %786 = vst [vmem:[#allocation2 + $0x18] sm:$0xff] %v770_v51  ;;  %794 = vst [vmem:[#allocation2 + $0x58] sm:$0xff] %v778_v52 }
 0x165   : > { %784 = vst [vmem:[#allocation2 + $0x8] sm:$0xff] %v768_v55  ;;  %792 = vst [vmem:[#allocation2 + $0x48] sm:$0xff] %v776_v56 }
 0x167   : > { %v1670_v61 = vpop.f32.mrb[4].mxu0  ;;  %v1678_v62 = vpop.f32.mrb[4].mxu1 }
 0x168   : > { %v773_v1 = vadd.f32 %v1670_v61, %v532_v57  ;;  %v781_v2 = vadd.f32 %v1678_v62, %v540_v58  ;;  %v720_v3 = vpop.f32.mrb[5].mxu0  ;;  %v752_v4 = vpop.f32.mrb[5].mxu1 }
 0x169   : > { %v771_v7 = vadd.f32 %v720_v3, %v530_v59  ;;  %v779_v8 = vadd.f32 %v752_v4, %v538_v60  ;;  %v1671_v9 = vpop.f32.mrb[6].mxu0  ;;  %v1679_v10 = vpop.f32.mrb[6].mxu1 }
 0x16a   : > { %789 = vst [vmem:[#allocation2 + $0x30] sm:$0xff] %v773_v1  ;;  %797 = vst [vmem:[#allocation2 + $0x70] sm:$0xff] %v781_v2  ;;  %v774_v11 = vadd.f32 %v1671_v9, %v533_v63  ;;  %v782_v12 = vadd.f32 %v1679_v10, %v541_v0  ;;  %v723_v13 = vpop.f32.mrb[7].mxu0  ;;  %v755_v14 = vpop.f32.mrb[7].mxu1 }
 0x16b   : > { %787 = vst [vmem:[#allocation2 + $0x20] sm:$0xff] %v771_v7  ;;  %795 = vst [vmem:[#allocation2 + $0x60] sm:$0xff] %v779_v8  ;;  %v772_v15 = vadd.f32 %v723_v13, %v531_v5  ;;  %v780_v16 = vadd.f32 %v755_v14, %v539_v6 }
 0x16c   : > { %790 = vst [vmem:[#allocation2 + $0x38] sm:$0xff] %v774_v11  ;;  %798 = vst [vmem:[#allocation2 + $0x78] sm:$0xff] %v782_v12 }
 0x16d   : > { %788 = vst [vmem:[#allocation2 + $0x28] sm:$0xff] %v772_v15  ;;  %796 = vst [vmem:[#allocation2 + $0x68] sm:$0xff] %v780_v16 }
 0x16e PF: > { %p1560_p3 = scmp.ne.s32.totalorder %s2149_s22, 2 }
 0x16f   : > { %v867_v17 = vld [vmem:[%s2730_s6] sm:$0xff] (!%p1560_p3)  ;;  %v868_v18 = vld [vmem:[%s2730_s6 + $0x8] sm:$0xff] (!%p1560_p3)  ;;  %s2755_s0 = sld [smem:[#allocation17_spill]] (!%p1560_p3)  ;;  %v869_v22 = vld [vmem:[%s2730_s6 + $0x10] sm:$0xff] (!%p1560_p3)  ;;  %s2756_s24 = sld [smem:[#allocation18_spill]] (!%p1560_p3) }
 0x170   : > { %802 = sbr.rel (%p1560_p3) target bundleno = 819 (0x333), region = 97  ;;  %v1792_v20 = vpack.c.bf16 (!%p1560_p3), %v868_v18, %v867_v17  ;;  %v870_v23 = vld [vmem:[%s2730_s6 + $0x18] sm:$0xff] (!%p1560_p3)  ;;  %v871_v28 = vld [vmem:[%s2730_s6 + $0x20] sm:$0xff] (!%p1560_p3)  ;;  %v872_v30 = vld [vmem:[%s2730_s6 + $0x28] sm:$0xff] (!%p1560_p3) }
 0x171   : > { %v1796_v25 = vpack.c.bf16 (!%p1560_p3), %v870_v23, %v869_v22  ;;  %v1800_v33 = vpack.c.bf16 (!%p1560_p3), %v872_v30, %v871_v28  ;;  %v873_v35 = vld [vmem:[%s2730_s6 + $0x30] sm:$0xff] (!%p1560_p3)  ;;  %v874_v36 = vld [vmem:[%s2730_s6 + $0x38] sm:$0xff] (!%p1560_p3)  ;;  %v875_v41 = vld [vmem:[%s2730_s6 + $0x40] sm:$0xff] (!%p1560_p3) }
 0x172   : > { %1793 = vmatprep.subr.bf16.mxu1 (!%p1560_p3), %v1792_v20  ;;  %v1804_v39 = vpack.c.bf16 (!%p1560_p3), %v874_v36, %v873_v35  ;;  %v876_v42 = vld [vmem:[%s2730_s6 + $0x48] sm:$0xff] (!%p1560_p3)  ;;  %v803_v43 = vld [vmem:[#allocation2] sm:$0xff] (!%p1560_p3)  ;;  %v877_v50 = vld [vmem:[%s2730_s6 + $0x50] sm:$0xff] (!%p1560_p3) }
 0x173   : > { %1795 = vmatpush3.bf16.msra.mxu1 (!%p1560_p3), %v1792_v20  ;;  %v819_v46 = vld [vmem:[%s2359_s7] sm:$0xff] (!%p1560_p3)  ;;  %1768 = vmatprep.mubr.f32.mxu0 (!%p1560_p3), %v803_v43  ;;  %v1808_v48 = vpack.c.bf16 (!%p1560_p3), %v876_v42, %v875_v41  ;;  %v878_v51 = vld [vmem:[%s2730_s6 + $0x58] sm:$0xff] (!%p1560_p3)  ;;  %v880_v57 = vld [vmem:[%s2730_s6 + $0x68] sm:$0xff] (!%p1560_p3) }
 0x174   : > { %1797 = vmatprep.subr.bf16.mxu1 (!%p1560_p3), %v1796_v25  ;;  %v835_v47 = vmul.f32 (!%p1560_p3), %v819_v46, %v803_v43  ;;  %v1812_v54 = vpack.c.bf16 (!%p1560_p3), %v878_v51, %v877_v50  ;;  %v879_v56 = vld [vmem:[%s2730_s6 + $0x60] sm:$0xff] (!%p1560_p3)  ;;  %v881_v62 = vld [vmem:[%s2730_s6 + $0x70] sm:$0xff] (!%p1560_p3)  ;;  %v882_v63 = vld [vmem:[%s2730_s6 + $0x78] sm:$0xff] (!%p1560_p3) }
 0x175   : > { %v851_v19 = vld [vmem:[%s2755_s0] sm:$0xff] (!%p1560_p3)  ;;  %v852_v21 = vld [vmem:[%s2755_s0 + $0x8] sm:$0xff] (!%p1560_p3)  ;;  %v853_v26 = vld [vmem:[%s2755_s0 + $0x10] sm:$0xff] (!%p1560_p3)  ;;  %v1816_v60 = vpack.c.bf16 (!%p1560_p3), %v880_v57, %v879_v56  ;;  %v1820_v2 = vpack.c.bf16 (!%p1560_p3), %v882_v63, %v881_v62 }
 0x176   : > { %v1824_v24 = vpack.c.bf16 (!%p1560_p3), %v852_v21, %v851_v19  ;;  %v854_v27 = vld [vmem:[%s2755_s0 + $0x18] sm:$0xff] (!%p1560_p3)  ;;  %v855_v31 = vld [vmem:[%s2755_s0 + $0x20] sm:$0xff] (!%p1560_p3)  ;;  %v856_v32 = vld [vmem:[%s2755_s0 + $0x28] sm:$0xff] (!%p1560_p3)  ;;  %1712 = vmatprep.mubr.f32.mxu1 (!%p1560_p3), %v835_v47 }
 0x177   : > { %v1828_v29 = vpack.c.bf16 %v854_v27, %v853_v26  ;;  %v1832_v34 = vpack.c.bf16 %v856_v32, %v855_v31  ;;  %v857_v37 = vld [vmem:[%s2755_s0 + $0x30] sm:$0xff]  ;;  %v858_v38 = vld [vmem:[%s2755_s0 + $0x38] sm:$0xff]  ;;  %1799 = vmatpush3.bf16.msra.mxu1 %v1796_v25  ;;  %v859_v44 = vld [vmem:[%s2755_s0 + $0x40] sm:$0xff] }
 0x178   : > { %1825 = vmatprep.subr.bf16.mxu0 %v1824_v24  ;;  %1801 = vmatprep.subr.bf16.mxu1 %v1800_v33  ;;  %v1836_v40 = vpack.c.bf16 %v858_v38, %v857_v37  ;;  %v860_v45 = vld [vmem:[%s2755_s0 + $0x48] sm:$0xff]  ;;  %v861_v52 = vld [vmem:[%s2755_s0 + $0x50] sm:$0xff]  ;;  %v862_v53 = vld [vmem:[%s2755_s0 + $0x58] sm:$0xff] }
 0x179   : > { %1827 = vmatpush3.bf16.msra.mxu0 %v1824_v24  ;;  %v1840_v49 = vpack.c.bf16 %v860_v45, %v859_v44  ;;  %v1844_v55 = vpack.c.bf16 %v862_v53, %v861_v52  ;;  %v863_v58 = vld [vmem:[%s2755_s0 + $0x60] sm:$0xff]  ;;  %v864_v59 = vld [vmem:[%s2755_s0 + $0x68] sm:$0xff]  ;;  %v865_v0 = vld [vmem:[%s2755_s0 + $0x70] sm:$0xff] }
 0x17a   : > { %1829 = vmatprep.subr.bf16.mxu0 %v1828_v29  ;;  %v1848_v61 = vpack.c.bf16 %v864_v59, %v863_v58  ;;  %v866_v1 = vld [vmem:[%s2755_s0 + $0x78] sm:$0xff]  ;;  %v804_v4 = vld [vmem:[#allocation2 + $0x8] sm:$0xff]  ;;  %v805_v6 = vld [vmem:[#allocation2 + $0x10] sm:$0xff] }
 0x17b   : > { %1803 = vmatpush3.bf16.msra.mxu1 %v1800_v33  ;;  %v1852_v3 = vpack.c.bf16 %v866_v1, %v865_v0  ;;  %v820_v5 = vld [vmem:[%s2359_s7 + $0x8] sm:$0xff]  ;;  %v821_v7 = vld [vmem:[%s2359_s7 + $0x10] sm:$0xff]  ;;  %v806_v10 = vld [vmem:[#allocation2 + $0x18] sm:$0xff] }
 0x17c   : > { %1805 = vmatprep.subr.bf16.mxu1 %v1804_v39  ;;  %v836_v8 = vmul.f32 %v820_v5, %v804_v4  ;;  %v837_v9 = vmul.f32 %v821_v7, %v805_v6  ;;  %v822_v11 = vld [vmem:[%s2359_s7 + $0x18] sm:$0xff]  ;;  %v807_v12 = vld [vmem:[#allocation2 + $0x20] sm:$0xff]  ;;  %v808_v16 = vld [vmem:[#allocation2 + $0x28] sm:$0xff] }
 0x17d   : > { %1831 = vmatpush3.bf16.msra.mxu0 %v1828_v29  ;;  %v823_v13 = vld [vmem:[%s2359_s7 + $0x20] sm:$0xff]  ;;  %v838_v14 = vmul.f32 %v822_v11, %v806_v10  ;;  %v824_v17 = vld [vmem:[%s2359_s7 + $0x28] sm:$0xff]  ;;  %v809_v18 = vld [vmem:[#allocation2 + $0x30] sm:$0xff] }
 0x17e   : > { %1833 = vmatprep.subr.bf16.mxu0 %v1832_v34  ;;  %v839_v15 = vmul.f32 %v823_v13, %v807_v12  ;;  %v825_v19 = vld [vmem:[%s2359_s7 + $0x30] sm:$0xff]  ;;  %v840_v20 = vmul.f32 %v824_v17, %v808_v16  ;;  %v810_v22 = vld [vmem:[#allocation2 + $0x38] sm:$0xff]  ;;  %v811_v24 = vld [vmem:[#allocation2 + $0x40] sm:$0xff] }
 0x17f   : > { %1807 = vmatpush3.bf16.msra.mxu1 %v1804_v39  ;;  %v841_v21 = vmul.f32 %v825_v19, %v809_v18  ;;  %v826_v23 = vld [vmem:[%s2359_s7 + $0x38] sm:$0xff]  ;;  %v827_v25 = vld [vmem:[%s2359_s7 + $0x40] sm:$0xff]  ;;  %v812_v28 = vld [vmem:[#allocation2 + $0x48] sm:$0xff] }
 0x180   : > { %1809 = vmatprep.subr.bf16.mxu1 %v1808_v48  ;;  %v842_v26 = vmul.f32 %v826_v23, %v810_v22  ;;  %v843_v27 = vmul.f32 %v827_v25, %v811_v24  ;;  %v828_v29 = vld [vmem:[%s2359_s7 + $0x48] sm:$0xff]  ;;  %v813_v30 = vld [vmem:[#allocation2 + $0x50] sm:$0xff]  ;;  %v830_v35 = vld [vmem:[%s2359_s7 + $0x58] sm:$0xff] }
 0x181   : > { %1835 = vmatpush3.bf16.msra.mxu0 %v1832_v34  ;;  %v829_v31 = vld [vmem:[%s2359_s7 + $0x50] sm:$0xff]  ;;  %v844_v32 = vmul.f32 %v828_v29, %v812_v28  ;;  %v814_v34 = vld [vmem:[#allocation2 + $0x58] sm:$0xff]  ;;  %v815_v36 = vld [vmem:[#allocation2 + $0x60] sm:$0xff] }
 0x182   : > { %1837 = vmatprep.subr.bf16.mxu0 %v1836_v40  ;;  %v845_v33 = vmul.f32 %v829_v31, %v813_v30  ;;  %v831_v37 = vld [vmem:[%s2359_s7 + $0x60] sm:$0xff]  ;;  %v846_v38 = vmul.f32 %v830_v35, %v814_v34  ;;  %v832_v41 = vld [vmem:[%s2359_s7 + $0x68] sm:$0xff]  ;;  %v817_v42 = vld [vmem:[#allocation2 + $0x70] sm:$0xff] }
 0x183   : > { %1811 = vmatpush3.bf16.msra.mxu1 %v1808_v48  ;;  %v847_v39 = vmul.f32 %v831_v37, %v815_v36  ;;  %v833_v43 = vld [vmem:[%s2359_s7 + $0x70] sm:$0xff]  ;;  %v818_v46 = vld [vmem:[#allocation2 + $0x78] sm:$0xff]  ;;  %v2510_v51 = vld [vmem:[%s2756_s24] ss:$0 sm:$0xff] }
 0x184   : > { %1813 = vmatprep.subr.bf16.mxu1 %v1812_v54  ;;  %v849_v45 = vmul.f32 %v833_v43, %v817_v42  ;;  %v834_v47 = vld [vmem:[%s2359_s7 + $0x78] sm:$0xff] }
 0x185   : > { %1839 = vmatpush3.bf16.msra.mxu0 %v1836_v40  ;;  %v816_v40 = vld [vmem:[#allocation2 + $0x68] sm:$0xff]  ;;  %v850_v48 = vmul.f32 %v834_v47, %v818_v46 }
 0x186   : > { %1841 = vmatprep.subr.bf16.mxu0 %v1840_v49  ;;  %v848_v44 = vmul.f32 %v832_v41, %v816_v40 }
 0x187   : > { %1815 = vmatpush3.bf16.msra.mxu1 %v1812_v54 }
 0x188   : > { %1817 = vmatprep.subr.bf16.mxu1 %v1816_v60 }
 0x189   : > { %1843 = vmatpush3.bf16.msra.mxu0 %v1840_v49 }
 0x18a   : > { %1845 = vmatprep.subr.bf16.mxu0 %v1844_v55 }
 0x18b   : > { %1819 = vmatpush3.bf16.msra.mxu1 %v1816_v60 }
 0x18c   : > { %1821 = vmatprep.subr.bf16.mxu1 %v1820_v2 }
 0x18d   : > { %1847 = vmatpush3.bf16.msra.mxu0 %v1844_v55 }
 0x18e   : > { %1849 = vmatprep.subr.bf16.mxu0 %v1848_v61 }
 0x18f   : > { %1823 = vmatpush3.bf16.msra.mxu1 %v1820_v2 }
 0x191   : > { %1851 = vmatpush3.bf16.msra.mxu0 %v1848_v61 }
 0x192   : > { %1853 = vmatprep.subr.bf16.mxu0 %v1852_v3  ;;  %1713 = vmatmul.mubr.f32.vlgmr.msra.gmra.mrb[0].mxu1 %v836_v8 }
 0x193   : > { %1715 = vmatprep.mubr.f32.mxu1 %v837_v9 }
 0x195   : > { %1855 = vmatpush3.bf16.msra.mxu0 %v1852_v3 }
 0x196   : > { %1716 = vmatmul.mubr.f32.gmra.mrb[2].mxu1 %v838_v14 }
 0x197   : > { %1718 = vmatprep.mubr.f32.mxu1 %v839_v15 }
 0x198   : > { %1769 = vmatmul.mubr.f32.vlgmr.msra.gmra.mrb[0].mxu0 %v804_v4 }
 0x199   : > { %1771 = vmatprep.mubr.f32.mxu0 %v805_v6 }
 0x19a   : > { %1719 = vmatmul.mubr.f32.gmra.mrb[4].mxu1 %v840_v20 }
 0x19b   : > { %1721 = vmatprep.mubr.f32.mxu1 %v841_v21 }
 0x19c   : > { %1772 = vmatmul.mubr.f32.gmra.mrb[2].mxu0 %v806_v10 }
 0x19d   : > { %1774 = vmatprep.mubr.f32.mxu0 %v807_v12 }
 0x19e   : > { %1722 = vmatmul.mubr.f32.gmra.mrb[6].mxu1 %v842_v26 }
 0x19f   : > { %1724 = vmatprep.mubr.f32.mxu1 %v843_v27 }
 0x1a0   : > { %1775 = vmatmul.mubr.f32.gmra.mrb[4].mxu0 %v808_v16 }
 0x1a1   : > { %1777 = vmatprep.mubr.f32.mxu0 %v809_v18 }
 0x1a2   : > { %1725 = vmatmul.mubr.f32.gmra.mrb[8].mxu1 %v844_v32 }
 0x1a3   : > { %1727 = vmatprep.mubr.f32.mxu1 %v845_v33 }
 0x1a4   : > { %1778 = vmatmul.mubr.f32.gmra.mrb[6].mxu0 %v810_v22 }
 0x1a5   : > { %1780 = vmatprep.mubr.f32.mxu0 %v811_v24 }
 0x1a6   : > { %1728 = vmatmul.mubr.f32.gmra.mrb[10].mxu1 %v846_v38 }
 0x1a7   : > { %1730 = vmatprep.mubr.f32.mxu1 %v847_v39 }
 0x1a8   : > { %1781 = vmatmul.mubr.f32.gmra.mrb[8].mxu0 %v812_v28 }
 0x1a9   : > { %1783 = vmatprep.mubr.f32.mxu0 %v813_v30 }
 0x1aa   : > { %1731 = vmatmul.mubr.f32.gmra.mrb[12].mxu1 %v848_v44 }
 0x1ab   : > { %1733 = vmatprep.mubr.f32.mxu1 %v849_v45 }
 0x1ac   : > { %1784 = vmatmul.mubr.f32.gmra.mrb[10].mxu0 %v814_v34 }
 0x1ad   : > { %1786 = vmatprep.mubr.f32.mxu0 %v815_v36 }
 0x1ae   : > { %1734 = vmatmul.mubr.f32.gmra.mrb[14].mxu1 %v850_v48 }
 0x1b0   : > { %1787 = vmatmul.mubr.f32.gmra.mrb[12].mxu0 %v816_v40 }
 0x1b1   : > { %1789 = vmatprep.mubr.f32.mxu0 %v817_v42 }
 0x1b4   : > { %1790 = vmatmul.mubr.f32.gmra.mrb[14].mxu0 %v818_v46 }
 0x265   : > { %v1714_v49 = vpop.f32.mrb[0].mxu1 }
 0x266   : > { %v949_v52 = vpop.f32.mrb[1].mxu1 }
 0x269   : > { %v1717_v57 = vpop.f32.mrb[2].mxu1 }
 0x26a   : > { %v959_v60 = vpop.f32.mrb[3].mxu1 }
 0x26b   : > { %v1770_v50 = vpop.f32.mrb[0].mxu0 }
 0x26c   : > { %v1100_v53 = vadd.f32 %v1770_v50, %v1714_v49  ;;  %v1094_v54 = vpop.f32.mrb[1].mxu0 }
 0x26d   : > { %v1095_v55 = vadd.f32 %v1094_v54, %v949_v52  ;;  %v1720_v3 = vpop.f32.mrb[4].mxu1 }
 0x26e   : > { %v1181_v56 = vadd.f32 %v2510_v51, %v1100_v53  ;;  %v969_v7 = vpop.f32.mrb[5].mxu1 }
 0x26f   : > { %v1180_v58 = vadd.f32 %v2510_v51, %v1095_v55  ;;  %v1773_v59 = vpop.f32.mrb[2].mxu0 }
 0x270   : > { %v1110_v61 = vadd.f32 %v1773_v59, %v1717_v57  ;;  %v1104_v62 = vpop.f32.mrb[3].mxu0  ;;  %vm1197_vm0 = vcmp.ge.f32.partialorder %v1181_v56, 0.0  ;;  %v1213_v63 = vmul.f32 0.01, %v1181_v56 }
 0x271   : > { %v1212_v0 = vmul.f32 0.01, %v1180_v58  ;;  %v1105_v1 = vadd.f32 %v1104_v62, %v959_v60  ;;  %vm1196_vm1 = vcmp.ge.f32.partialorder %v1180_v58, 0.0  ;;  %v1723_v16 = vpop.f32.mrb[6].mxu1 }
 0x272   : > { %v1183_v2 = vadd.f32 %v2510_v51, %v1110_v61  ;;  %v2515_v4 = vsel %vm1197_vm0, %v1181_v56, %v1213_v63  ;;  %v979_v20 = vpop.f32.mrb[7].mxu1 }
 0x273   : > { %v1182_v5 = vadd.f32 %v2510_v51, %v1105_v1  ;;  %v1776_v6 = vpop.f32.mrb[4].mxu0  ;;  %v1261_v8 = vmul.f32 %v2515_v4, %v2515_v4  ;;  %1245 = vst [vmem:[%s2373_s15 + $0x8] sm:$0xff] %v2515_v4  ;;  %v2522_v9 = vsel %vm1196_vm1, %v1180_v58, %v1212_v0 }
 0x274   : > { %v1120_v10 = vadd.f32 %v1776_v6, %v1720_v3  ;;  %v1114_v11 = vpop.f32.mrb[5].mxu0  ;;  %1244 = vst [vmem:[%s2373_s15] sm:$0xff] %v2522_v9  ;;  %vm1199_vm2 = vcmp.ge.f32.partialorder %v1183_v2, 0.0  ;;  %v1215_v12 = vmul.f32 0.01, %v1183_v2  ;;  %v1260_v21 = vmul.f32 %v2522_v9, %v2522_v9 }
 0x275   : > { %v1214_v13 = vmul.f32 0.01, %v1182_v5  ;;  %v1115_v14 = vadd.f32 %v1114_v11, %v969_v7  ;;  %1278 = vadd.xlane.f32.xlu0 %v1261_v8  ;;  %vm1198_vm3 = vcmp.ge.f32.partialorder %v1182_v5, 0.0  ;;  %v1726_v30 = vpop.f32.mrb[8].mxu1 }
 0x276   : > { %v1185_v15 = vadd.f32 %v2510_v51, %v1120_v10  ;;  %v2527_v17 = vsel %vm1199_vm2, %v1183_v2, %v1215_v12  ;;  %v989_v34 = vpop.f32.mrb[9].mxu1 }
 0x277   : > { %v1184_v18 = vadd.f32 %v2510_v51, %v1115_v14  ;;  %v1779_v19 = vpop.f32.mrb[6].mxu0  ;;  %v1263_v22 = vmul.f32 %v2527_v17, %v2527_v17  ;;  %1247 = vst [vmem:[%s2373_s15 + $0x18] sm:$0xff] %v2527_v17  ;;  %v2536_v23 = vsel %vm1198_vm3, %v1182_v5, %v1214_v13 }
 0x278   : > { %v1217_v24 = vmul.f32 0.01, %v1185_v15  ;;  %v1130_v25 = vadd.f32 %v1779_v19, %v1723_v16  ;;  %v1124_v26 = vpop.f32.mrb[7].mxu0  ;;  %1246 = vst [vmem:[%s2373_s15 + $0x10] sm:$0xff] %v2536_v23  ;;  %vm1201_vm4 = vcmp.ge.f32.partialorder %v1185_v15, 0.0  ;;  %v1262_v35 = vmul.f32 %v2536_v23, %v2536_v23 }
 0x279   : > { %v1216_v27 = vmul.f32 0.01, %v1184_v18  ;;  %v1125_v28 = vadd.f32 %v1124_v26, %v979_v20  ;;  %1276 = vadd.xlane.f32.xlu0 %v1260_v21  ;;  %1282 = vadd.xlane.f32.xlu1 %v1263_v22  ;;  %vm1200_vm5 = vcmp.ge.f32.partialorder %v1184_v18, 0.0  ;;  %v1729_v44 = vpop.f32.mrb[10].mxu1 }
 0x27a   : > { %v1187_v29 = vadd.f32 %v2510_v51, %v1130_v25  ;;  %v2541_v31 = vsel %vm1201_vm4, %v1185_v15, %v1217_v24  ;;  %v999_v48 = vpop.f32.mrb[11].mxu1 }
 0x27b   : > { %v1186_v32 = vadd.f32 %v2510_v51, %v1125_v28  ;;  %v1782_v33 = vpop.f32.mrb[8].mxu0  ;;  %v2546_v36 = vsel %vm1200_vm5, %v1184_v18, %v1216_v27  ;;  %1249 = vst [vmem:[%s2373_s15 + $0x28] sm:$0xff] %v2541_v31  ;;  %v1265_v49 = vmul.f32 %v2541_v31, %v2541_v31 }
 0x27c   : > { %v1219_v37 = vmul.f32 0.01, %v1187_v29  ;;  %v1140_v38 = vadd.f32 %v1782_v33, %v1726_v30  ;;  %v1134_v39 = vpop.f32.mrb[9].mxu0  ;;  %v1264_v40 = vmul.f32 %v2546_v36, %v2546_v36  ;;  %1248 = vst [vmem:[%s2373_s15 + $0x20] sm:$0xff] %v2546_v36  ;;  %vm1203_vm6 = vcmp.ge.f32.partialorder %v1187_v29, 0.0 }
 0x27d   : > { %v1218_v41 = vmul.f32 0.01, %v1186_v32  ;;  %v1135_v42 = vadd.f32 %v1134_v39, %v989_v34  ;;  %1280 = vadd.xlane.f32.xlu1 %v1262_v35  ;;  %vm1202_vm7 = vcmp.ge.f32.partialorder %v1186_v32, 0.0  ;;  %v1732_v59 = vpop.f32.mrb[12].mxu1 }
 0x27e   : > { %v1189_v43 = vadd.f32 %v2510_v51, %v1140_v38  ;;  %1284 = vadd.xlane.f32.xlu0 %v1264_v40  ;;  %v2555_v45 = vsel %vm1203_vm6, %v1187_v29, %v1219_v37  ;;  %v1009_v63 = vpop.f32.mrb[13].mxu1 }
 0x27f   : > { %v1188_v46 = vadd.f32 %v2510_v51, %v1135_v42  ;;  %v1785_v47 = vpop.f32.mrb[10].mxu0  ;;  %v2560_v50 = vsel %vm1202_vm7, %v1186_v32, %v1218_v41  ;;  %1251 = vst [vmem:[%s2373_s15 + $0x38] sm:$0xff] %v2555_v45  ;;  %v1267_v0 = vmul.f32 %v2555_v45, %v2555_v45 }
 0x280   : > { %v1221_v52 = vmul.f32 0.01, %v1189_v43  ;;  %v1150_v53 = vadd.f32 %v1785_v47, %v1729_v44  ;;  %v1144_v54 = vpop.f32.mrb[11].mxu0  ;;  %v1266_v55 = vmul.f32 %v2560_v50, %v2560_v50  ;;  %1250 = vst [vmem:[%s2373_s15 + $0x30] sm:$0xff] %v2560_v50  ;;  %vm1205_vm8 = vcmp.ge.f32.partialorder %v1189_v43, 0.0 }
 0x281   : > { %v1220_v56 = vmul.f32 0.01, %v1188_v46  ;;  %v1145_v57 = vadd.f32 %v1144_v54, %v999_v48  ;;  %1286 = vadd.xlane.f32.xlu1 %v1265_v49  ;;  %vm1204_vm9 = vcmp.ge.f32.partialorder %v1188_v46, 0.0  ;;  %v1735_v11 = vpop.f32.mrb[14].mxu1 }
 0x282   : > { %v1191_v58 = vadd.f32 %v2510_v51, %v1150_v53  ;;  %1288 = vadd.xlane.f32.xlu0 %v1266_v55  ;;  %v2569_v60 = vsel %vm1205_vm8, %v1189_v43, %v1221_v52  ;;  %v1019_v15 = vpop.f32.mrb[15].mxu1 }
 0x283   : > { %v1190_v61 = vadd.f32 %v2510_v51, %v1145_v57  ;;  %v1788_v62 = vpop.f32.mrb[12].mxu0  ;;  %v2574_v1 = vsel %vm1204_vm9, %v1188_v46, %v1220_v56  ;;  %1253 = vst [vmem:[%s2373_s15 + $0x48] sm:$0xff] %v2569_v60  ;;  %v1269_v16 = vmul.f32 %v2569_v60, %v2569_v60 }
 0x284   : > { %v1223_v2 = vmul.f32 0.01, %v1191_v58  ;;  %v1160_v3 = vadd.f32 %v1788_v62, %v1732_v59  ;;  %v1154_v5 = vpop.f32.mrb[13].mxu0  ;;  %v1268_v6 = vmul.f32 %v2574_v1, %v2574_v1  ;;  %1252 = vst [vmem:[%s2373_s15 + $0x40] sm:$0xff] %v2574_v1  ;;  %vm1207_vm10 = vcmp.ge.f32.partialorder %v1191_v58, 0.0 }
 0x285   : > { %v1222_v7 = vmul.f32 0.01, %v1190_v61  ;;  %v1155_v8 = vadd.f32 %v1154_v5, %v1009_v63  ;;  %1290 = vadd.xlane.f32.xlu1 %v1267_v0  ;;  %vm1206_vm11 = vcmp.ge.f32.partialorder %v1190_v61, 0.0 }
 0x286   : > { %v1193_v10 = vadd.f32 %v2510_v51, %v1160_v3  ;;  %1292 = vadd.xlane.f32.xlu0 %v1268_v6  ;;  %v2583_v12 = vsel %vm1207_vm10, %v1191_v58, %v1223_v2 }
 0x287   : > { %v1192_v13 = vadd.f32 %v2510_v51, %v1155_v8  ;;  %v1791_v14 = vpop.f32.mrb[14].mxu0  ;;  %v2588_v18 = vsel %vm1206_vm11, %v1190_v61, %v1222_v7  ;;  %1255 = vst [vmem:[%s2373_s15 + $0x58] sm:$0xff] %v2583_v12  ;;  %v1271_v29 = vmul.f32 %v2583_v12, %v2583_v12 }
 0x288   : > { %v1225_v19 = vmul.f32 0.01, %v1193_v10  ;;  %v1170_v20 = vadd.f32 %v1791_v14, %v1735_v11  ;;  %v1164_v21 = vpop.f32.mrb[15].mxu0  ;;  %v1270_v22 = vmul.f32 %v2588_v18, %v2588_v18  ;;  %1254 = vst [vmem:[%s2373_s15 + $0x50] sm:$0xff] %v2588_v18  ;;  %vm1209_vm12 = vcmp.ge.f32.partialorder %v1193_v10, 0.0 }
 0x289   : > { %v1224_v24 = vmul.f32 0.01, %v1192_v13  ;;  %v1165_v25 = vadd.f32 %v1164_v21, %v1019_v15  ;;  %1294 = vadd.xlane.f32.xlu1 %v1269_v16  ;;  %vm1208_vm13 = vcmp.ge.f32.partialorder %v1192_v13, 0.0 }
 0x28a   : > { %v1195_v26 = vadd.f32 %v2510_v51, %v1170_v20  ;;  %1296 = vadd.xlane.f32.xlu0 %v1270_v22  ;;  %v2597_v27 = vsel %vm1209_vm12, %v1193_v10, %v1225_v19 }
 0x28b   : > { %v1194_v28 = vadd.f32 %v2510_v51, %v1165_v25  ;;  %v2602_v30 = vsel %vm1208_vm13, %v1192_v13, %v1224_v24  ;;  %1257 = vst [vmem:[%s2373_s15 + $0x68] sm:$0xff] %v2597_v27  ;;  %v1273_v35 = vmul.f32 %v2597_v27, %v2597_v27 }
 0x28c   : > { %v1227_v32 = vmul.f32 0.01, %v1195_v26  ;;  %v1272_v33 = vmul.f32 %v2602_v30, %v2602_v30  ;;  %1256 = vst [vmem:[%s2373_s15 + $0x60] sm:$0xff] %v2602_v30  ;;  %vm1211_vm14 = vcmp.ge.f32.partialorder %v1195_v26, 0.0 }
 0x28d   : > { %v1226_v34 = vmul.f32 0.01, %v1194_v28  ;;  %1298 = vadd.xlane.f32.xlu1 %v1271_v29  ;;  %vm1210_vm15 = vcmp.ge.f32.partialorder %v1194_v28, 0.0 }
 0x28e   : > { %1300 = vadd.xlane.f32.xlu0 %v1272_v33  ;;  %v2610_v51 = vsel %vm1211_vm14, %v1195_v26, %v1227_v32 }
 0x28f   : > { %v2614_v37 = vsel %vm1210_vm15, %v1194_v28, %v1226_v34  ;;  %1259 = vst [vmem:[%s2373_s15 + $0x78] sm:$0xff] %v2610_v51  ;;  %v1275_v39 = vmul.f32 %v2610_v51, %v2610_v51 }
 0x290   : > { %v1274_v38 = vmul.f32 %v2614_v37, %v2614_v37  ;;  %1258 = vst [vmem:[%s2373_s15 + $0x70] sm:$0xff] %v2614_v37 }
 0x291   : > { %1302 = vadd.xlane.f32.xlu1 %v1273_v35 }
 0x292   : > { %1304 = vadd.xlane.f32.xlu0 %v1274_v38 }
 0x295   : > { %1306 = vadd.xlane.f32.xlu1 %v1275_v39 }
 0x302   : > { %v1279_v40 = vpop.xlane.xlu0 %1278 }
 0x303   : > { %v1309_v41 = vmax.f32 %v1279_v40, 1e-24 }
 0x305   : > { %1997 = vrsqrt.f32 %v1309_v41 }
 0x306   : > { %v1277_v42 = vpop.xlane.xlu0 %1276  ;;  %v1283_v43 = vpop.xlane.xlu1 %1282 }
 0x307   : > { %v1308_v44 = vmax.f32 %v1277_v42, 1e-24  ;;  %v1311_v46 = vmax.f32 %v1283_v43, 1e-24 }
 0x309   : > { %1999 = vrsqrt.f32 %v1308_v44 }
 0x30a   : > { %2001 = vrsqrt.f32 %v1311_v46  ;;  %v1281_v47 = vpop.xlane.xlu1 %1280 }
 0x30b   : > { %v1310_v48 = vmax.f32 %v1281_v47, 1e-24  ;;  %v1285_v49 = vpop.xlane.xlu0 %1284 }
 0x30c   : > { %v1312_v52 = vmax.f32 %v1285_v49, 1e-24 }
 0x30d   : > { %2003 = vrsqrt.f32 %v1310_v48 }
 0x30e   : > { %2005 = vrsqrt.f32 %v1312_v52  ;;  %v1287_v53 = vpop.xlane.xlu1 %1286 }
 0x30f   : > { %v1998_v54 = vpop.eup %1997  ;;  %v1313_v55 = vmax.f32 %v1287_v53, 1e-24  ;;  %v1289_v56 = vpop.xlane.xlu0 %1288 }
 0x310   : > { %v1341_v57 = vmul.f32 %v1998_v54, %v2515_v4  ;;  %v1314_v58 = vmax.f32 %v1289_v56, 1e-24 }
 0x311   : > { %2007 = vrsqrt.f32 %v1313_v55 }
 0x312   : > { %1357 = vst [vmem:[%s2364_s20 + $0x8] sm:$0xff] %v1341_v57  ;;  %2009 = vrsqrt.f32 %v1314_v58  ;;  %v1291_v59 = vpop.xlane.xlu1 %1290 }
 0x313   : > { %v2000_v61 = vpop.eup %1999  ;;  %v1315_v62 = vmax.f32 %v1291_v59, 1e-24  ;;  %v1293_v63 = vpop.xlane.xlu0 %1292 }
 0x314   : > { %v2002_v0 = vpop.eup %2001  ;;  %v1340_v2 = vmul.f32 %v2000_v61, %v2522_v9  ;;  %v1316_v3 = vmax.f32 %v1293_v63, 1e-24 }
 0x315   : > { %v1343_v5 = vmul.f32 %v2002_v0, %v2527_v17  ;;  %2011 = vrsqrt.f32 %v1315_v62 }
 0x316   : > { %1356 = vst [vmem:[%s2364_s20] sm:$0xff] %v1340_v2  ;;  %2013 = vrsqrt.f32 %v1316_v3  ;;  %v1295_v4 = vpop.xlane.xlu1 %1294 }
 0x317   : > { %v2004_v6 = vpop.eup %2003  ;;  %1359 = vst [vmem:[%s2364_s20 + $0x18] sm:$0xff] %v1343_v5  ;;  %v1317_v7 = vmax.f32 %v1295_v4, 1e-24  ;;  %v1297_v8 = vpop.xlane.xlu0 %1296 }
 0x318   : > { %v2006_v10 = vpop.eup %2005  ;;  %v1342_v11 = vmul.f32 %v2004_v6, %v2536_v23  ;;  %v1318_v13 = vmax.f32 %v1297_v8, 1e-24 }
 0x319   : > { %v1344_v9 = vmul.f32 %v2006_v10, %v2546_v36  ;;  %2015 = vrsqrt.f32 %v1317_v7 }
 0x31a   : > { %1358 = vst [vmem:[%s2364_s20 + $0x10] sm:$0xff] %v1342_v11  ;;  %2017 = vrsqrt.f32 %v1318_v13  ;;  %v1299_v17 = vpop.xlane.xlu1 %1298 }
 0x31b   : > { %v2008_v14 = vpop.eup %2007  ;;  %1360 = vst [vmem:[%s2364_s20 + $0x20] sm:$0xff] %v1344_v9  ;;  %v1319_v15 = vmax.f32 %v1299_v17, 1e-24  ;;  %v1301_v16 = vpop.xlane.xlu0 %1300 }
 0x31c   : > { %v2010_v19 = vpop.eup %2009  ;;  %v1345_v20 = vmul.f32 %v2008_v14, %v2541_v31  ;;  %v1320_v21 = vmax.f32 %v1301_v16, 1e-24 }
 0x31d   : > { %v1346_v23 = vmul.f32 %v2010_v19, %v2560_v50  ;;  %2019 = vrsqrt.f32 %v1319_v15 }
 0x31e   : > { %1361 = vst [vmem:[%s2364_s20 + $0x28] sm:$0xff] %v1345_v20  ;;  %2021 = vrsqrt.f32 %v1320_v21  ;;  %v1303_v36 = vpop.xlane.xlu1 %1302 }
 0x31f   : > { %v2012_v22 = vpop.eup %2011  ;;  %1362 = vst [vmem:[%s2364_s20 + $0x30] sm:$0xff] %v1346_v23  ;;  %v1321_v24 = vmax.f32 %v1303_v36, 1e-24  ;;  %v1305_v25 = vpop.xlane.xlu0 %1304 }
 0x320   : > { %v2014_v26 = vpop.eup %2013  ;;  %v1347_v28 = vmul.f32 %v2012_v22, %v2555_v45  ;;  %v1322_v29 = vmax.f32 %v1305_v25, 1e-24 }
 0x321   : > { %v1348_v31 = vmul.f32 %v2014_v26, %v2574_v1  ;;  %2023 = vrsqrt.f32 %v1321_v24 }
 0x322   : > { %1363 = vst [vmem:[%s2364_s20 + $0x38] sm:$0xff] %v1347_v28  ;;  %2025 = vrsqrt.f32 %v1322_v29  ;;  %v1307_v50 = vpop.xlane.xlu1 %1306 }
 0x323   : > { %v2016_v32 = vpop.eup %2015  ;;  %1364 = vst [vmem:[%s2364_s20 + $0x40] sm:$0xff] %v1348_v31  ;;  %v1323_v33 = vmax.f32 %v1307_v50, 1e-24 }
 0x324   : > { %v2018_v34 = vpop.eup %2017  ;;  %v1349_v35 = vmul.f32 %v2016_v32, %v2569_v60 }
 0x325   : > { %v1350_v38 = vmul.f32 %v2018_v34, %v2588_v18  ;;  %2027 = vrsqrt.f32 %v1323_v33 }
 0x326   : > { %1365 = vst [vmem:[%s2364_s20 + $0x48] sm:$0xff] %v1349_v35 }
 0x327   : > { %v2020_v45 = vpop.eup %2019  ;;  %1366 = vst [vmem:[%s2364_s20 + $0x50] sm:$0xff] %v1350_v38 }
 0x328   : > { %v2022_v1 = vpop.eup %2021  ;;  %v1351_v39 = vmul.f32 %v2020_v45, %v2583_v12 }
 0x329   : > { %v1352_v40 = vmul.f32 %v2022_v1, %v2602_v30 }
 0x32a   : > { %1367 = vst [vmem:[%s2364_s20 + $0x58] sm:$0xff] %v1351_v39 }
 0x32b   : > { %v2024_v41 = vpop.eup %2023  ;;  %1368 = vst [vmem:[%s2364_s20 + $0x60] sm:$0xff] %v1352_v40 }
 0x32c   : > { %v2026_v42 = vpop.eup %2025  ;;  %v1353_v43 = vmul.f32 %v2024_v41, %v2597_v27 }
 0x32d   : > { %v1354_v60 = vmul.f32 %v2026_v42, %v2614_v37 }
 0x32e   : > { %1369 = vst [vmem:[%s2364_s20 + $0x68] sm:$0xff] %v1353_v43 }
 0x32f   : > { %v2028_v18 = vpop.eup %2027  ;;  %1370 = vst [vmem:[%s2364_s20 + $0x70] sm:$0xff] %v1354_v60 }
 0x330   : > { %v1355_v44 = vmul.f32 %v2028_v18, %v2610_v51 }
 0x332   : > { %1371 = vst [vmem:[%s2364_s20 + $0x78] sm:$0xff] %v1355_v44 }
 0x333 PF: > { %s1567_s7 = sshll.u32 %s2153_s23, 11  ;;  %s2757_s2 = sld [smem:[#allocation19_spill]] }
 0x334   : > { %s1391_s28 = sshll.u32 %s2373_s15, 4  ;;  %s2758_s13 = sand.u32 1, %s2133_s18   ;;  %s2663_s28 = int_to_ptr.vmem [resolvable:$true] %s1391_s28 }
 0x335   : > { %s2667_s16 = scalar_lea.sflag [#allocation8], %s2758_s13  ;;  %s2053_s20 = scalar_lea.vmem %s2663_s28, 2048 }
 0x336   : > { %p2054_p5 = scmp.ne.s32.totalorder %s2663_s28, %s2053_s20  ;;  %s2170_s23 = smov [#allocation7]  }
 0x337   : > { %s2057_s10 = sshll.u32 %s2170_s23, 4  ;;  %s2058_s10 = int_to_ptr.vmem [resolvable:$false] %s2057_s10 }
 0x338   : > { %p2055_p6 = pnand %p2054_p5, %p2303_p4  ;;  %s2059_s14 = scalar_lea.vmem %s2058_s10, 4096 }
 0x339   : > { %s2660_s25 = scalar_lea.hbm %s2757_s2, %s1567_s7  ;;  %p2060_p9 = scmp.lt.s32.totalorder %s2663_s28, %s2058_s10 }
 0x33a   : > { %p2056_p8 = pneg %p2055_p6  ;;  %p2061_p10 = scmp.lt.s32.totalorder %s2059_s14, %s2053_s20 }
 0x33c   : > { %p2062_p11 = por %p2061_p10, %p2060_p9 }
 0x33e   : > { %p2063_p12 = pnand %p2062_p11, %p2056_p8 }
 0x340   : > { %2066 = shalt.err (!%p2063_p12)
}
 0x341   : > { %s2067_s15 = scalar_lea.hbm %s2660_s25, 2048  ;;  %s2071_s11 = scalar_lea.hbm %s2757_s2, 6144 }
 0x342   : > { %p2068_p13 = scmp.ne.s32.totalorder %s2660_s25, %s2067_s15  ;;  %p2072_p2 = scmp.lt.u32.totalorder %s2660_s25, %s2757_s2 }
 0x343   : > { %p2073_p3 = scmp.lt.u32.totalorder %s2071_s11, %s2067_s15  ;;  %p2075_p6 = scmp.lt.u32.totalorder %s2067_s15, %s2660_s25 }
 0x344   : > { %p2069_p0 = pnand %p2068_p13, %p2303_p4 }
 0x345   : > { %p2074_p5 = por %p2073_p3, %p2072_p2 }
 0x346   : > { %p2070_p1 = pneg %p2069_p0 }
 0x347   : > { %p2076_p8 = por %p2075_p6, %p2074_p5 }
 0x349   : > { %p2077_p9 = pnand %p2076_p8, %p2070_p1 }
 0x34b   : > { %2080 = shalt.err (!%p2077_p9)
}
 0x34c   : > { %s2171_s7 = smov 128   ;;  %s2172_s30 = smov 8  }
 0x34d   : > { %1889 = dma.vmem_to_hbm [thread:$0]  (%p2303_p4), %s2663_s28, 2048, %s2660_s25, %s2667_s16, %s2171_s7, %s2171_s7, %s2172_s30  }
 0x34e PF: > { %p1895_p10 = scmp.ge.s32.totalorder %s2165_s26, 2  ;;  %s1410_s27 = sand.u32 1, %s2129_s1  }
 0x34f   : > { %s1411_s13 = scalar_lea.sflag [#allocation8], %s1410_s27 }
 0x350   : > { %p1892_p11 = pnand %p1895_p10, %p2313_p7 }
 0x352   : > { %2124 = dma.done.wait (!%p1892_p11), %s1411_s13, 2048  }
 0x353   : > { %2126 = vsyncadd (!%p1892_p11), %s1411_s13, 4294965248  ;;  %s33_s26 = sadd.s32 1, %s2165_s26   ;;  %s2759_s20 = sld [smem:[#allocation15_spill]] }
 0x354   : > { %p30_p12 = scmp.ge.s32.totalorder %s33_s26, 11   ;;  %s2760_s22 = sld [smem:[#allocation11_spill]] }
 0x355   : > { %s2761_s23 = sld [smem:[#allocation12_spill]]  ;;  %s2762_s24 = sld [smem:[#allocation13_spill]] }
 0x356   : > { %s2763_s25 = sld [smem:[#allocation14_spill]]  ;;  %s2764_s1 = smov %s2133_s18 }
 0x357   : > { %s2765_s18 = smov %s2137_s19  ;;  %32 = sbr.rel (!%p30_p12) target bundleno = 33 (0x21), region = 155 }
 0x359   : > { %s2766_s19 = smov %s2759_s20  ;;  %s2767_s20 = smov %s2145_s21 }
 0x35a   : > { %s2768_s21 = smov %s2319_s29 }
 0x35e   :  { %1424 = vsyncpa [#allocation8], 1 }
 0x35f   :  { %1426 = vsyncpa [#allocation8 + $0x1], 1 }

// kernel: ngcf_forward.3
= control target key start
LH: loop header
LB: loop body
LE: loop exit
PB: predicated region body
PF: predicated region fallthrough
CT: control target
= control target key end

     0   :  { %s2532_s0 = inlined_call_operand.vmem [shape: s32[9], index: 0, kind: input, shape index: {}]   ;;  %s2533_s2 = inlined_call_operand.vmem [shape: bf16[384,384], index: 2, kind: input, shape index: {}]   ;;  %s2534_s3 = inlined_call_operand.vmem [shape: bf16[384,128], index: 3, kind: input, shape index: {}]   ;;  %s2535_s4 = inlined_call_operand.vmem [shape: f32[384,128], index: 4, kind: input, shape index: {}]   ;;  %s2536_s5 = inlined_call_operand.vmem [shape: f32[128,128], index: 5, kind: input, shape index: {}]   ;;  %s2537_s6 = inlined_call_operand.vmem [shape: f32[128,128], index: 6, kind: input, shape index: {}]   ;;  %s2538_s7 = inlined_call_operand.vmem [shape: f32[1,128], index: 7, kind: input, shape index: {}]   ;;  %s2539_s8 = inlined_call_operand.vmem [shape: f32[384,128], index: 8, kind: output, shape index: {0}]   ;;  %s2540_s9 = inlined_call_operand.vmem [shape: f32[384,128], index: 9, kind: output, shape index: {1}]   ;;  %s2541_s1 = inlined_call_operand.vmem [shape: s32[3], index: 1, kind: input, shape index: {}]  }
   0x1   :  { %2543 = sst [smem:[#allocation9_spill]] %s2533_s2  ;;  %s15_s11 = sshll.u32 %s2532_s0, 4  ;;  %s16_s11 = int_to_ptr.vmem [resolvable:$true] %s15_s11 }
   0x2   :  { %s19_s14 = sshll.u32 %s2541_s1, 4  ;;  %s1976_s15 = scalar_lea.vmem %s16_s11, 16  ;;  %s20_s14 = int_to_ptr.vmem [resolvable:$true] %s19_s14 }
   0x3   :  { %p1977_p0 = scmp.ne.s32.totalorder %s16_s11, %s1976_s15  ;;  %p1981_p1 = scmp.lt.s32.totalorder %s16_s11, %s16_s11 }
   0x4   :  { %p1982_p2 = scmp.lt.s32.totalorder %s1976_s15, %s1976_s15 }
   0x6   :  { %p1983_p3 = por %p1982_p2, %p1981_p1 }
   0x8   :  { %p1984_p4 = pnand %p1983_p3, %p1977_p0 }
   0xa   :  { %1987 = shalt.err (!%p1984_p4)  }
   0xb   :  { %s2058_s16 = smov [#allocation4]   ;;  %s1988_s17 = scalar_lea.vmem %s20_s14, 16 }
   0xc   :  { %18 = dma.vmem_to_smem %s16_s11, 16, %s2058_s16, [#allocation3] }
   0xd   :  { %p1989_p5 = scmp.ne.s32.totalorder %s20_s14, %s1988_s17  ;;  %p1993_p6 = scmp.lt.s32.totalorder %s20_s14, %s20_s14 }
   0xe   :  { %p1994_p7 = scmp.lt.s32.totalorder %s1988_s17, %s1988_s17 }
  0x10   :  { %p1995_p8 = por %p1994_p7, %p1993_p6 }
  0x12   :  { %p1996_p9 = pnand %p1995_p8, %p1989_p5 }
  0x14   :  { %1999 = shalt.err (!%p1996_p9)  }
  0x15   :  { %s2059_s0 = smov [#allocation5]  }
  0x16   :  { %22 = dma.vmem_to_smem %s20_s14, 16, %s2059_s0, [#allocation3] }
  0x17   :  { %2028 = dma.done.wait [#allocation3], 32 }
  0x18   :  { %2029 = vsyncadd [#allocation3], 4294967264 }
  0x19   :  { %24 = sfence }
  0x1a   :  { %s2117_s1 = smov 0   ;;  %s2119_s18 = smov 0  }
  0x1b   :  { %s2121_s19 = smov 0   ;;  %s2123_s20 = smov 0  }
  0x1c   :  { %s2125_s21 = smov 0   ;;  %s2127_s22 = smov 0  }
  0x1d   :  { %s2129_s23 = smov 0  }
  0x1e LB: > { %s39_s24 = sadd.s32 1, %s2048_s21  ;;  %s42_s25 = sadd.s32 1, %s2052_s22  ;;  %s2056_s23 = sphi %s2129_s23, %s30_s23   ;;  %s2052_s22 = sphi %s2127_s22, %s2553_s22   ;;  %s2048_s21 = sphi %s2125_s21, %s2552_s21   ;;  %s2044_s20 = sphi %s2123_s20, %s2551_s20   ;;  %s2040_s19 = sphi %s2121_s19, %s2550_s19   ;;  %s2036_s18 = sphi %s2119_s18, %s2549_s18   ;;  %s2032_s1 = sphi %s2117_s1, %s2548_s1  }
  0x1f   : > { %p40_p10 = scmp.ge.s32.totalorder %s39_s24, 3  ;;  %s46_s26 = smul.u32 3, %s2052_s22 }
  0x20   : > { %p64_p11 = scmp.ne.s32.totalorder %s2036_s18, %s2032_s1  ;;  %p65_p12 = scmp.eq.s32.totalorder %s2056_s23, 0 }
  0x21   : > { %s2555_s24 = smov (%p40_p10, %s39_s24), 0  ;;  %s2557_s25 = smov (!%p40_p10, %s42_s25), %s2052_s22 }
  0x22   : > { %p44_p13 = scmp.ge.s32.totalorder %s2557_s25, 3  ;;  %s47_s27 = sadd.s32 %s2048_s21, %s46_s26 }
  0x23   : > { %p2162_p0 = por %p65_p12, %p64_p11  ;;  %s48_s30 = sld [smem:[#allocation4 + %s47_s27]] }
  0x24   : > { %s2559_s25 = smov (%p44_p13, %s2557_s25), 0  ;;  %s57_s15 = sadd.s32 1, %s2036_s18 }
  0x25   : > { %2545 = sst [smem:[#allocation8_spill]] %s2559_s25  ;;  %s49_s29 = smul.u32 3, %s2559_s25 }
  0x26   : > { %s52_s12 = ssub.s32 %s2052_s22, %s2559_s25  ;;  %p1511_p2 = scmp.ge.s32.totalorder %s2056_s23, 9 }
  0x27   : > { %s50_s10 = sadd.s32 %s49_s29, %s2555_s24 }
  0x28   : > { %s51_s11 = sld [smem:[#allocation4 + %s50_s10]] }
  0x2c   : > { %272 = sbr.rel (%p1511_p2) target bundleno = 71 (0x47), region = 28 }
  0x2e   : > { %s53_s13 = ssub.s32 %s48_s30, %s51_s11 }
  0x2f   : > { %s54_s14 = sor.u32 %s53_s13, %s52_s12 }
  0x30   : > { %p55_p1 = scmp.eq.s32.totalorder %s54_s14, 0 }
  0x32   : > { %s2174_s16 = scalar_select %p55_p1, %s2036_s18, %s57_s15  }
  0x33   : > { %275 = sbr.rel (!%p2162_p0) target bundleno = 71 (0x47), region = 32  ;;  %s282_s17 = sld [smem:[#allocation4 + %s47_s27]] (%p2162_p0) }
  0x34   : > { %s277_s0 = sand.u32 (%p2162_p0), 1, %s2036_s18   ;;  %s1868_s26 = smul.u32 (%p2162_p0), 48, %s2052_s22 }
  0x35   : > { %s1512_s29 = sshll.u32 (%p2162_p0), %s277_s0, 6  ;;  %s2546_s2 = sld [smem:[#allocation9_spill]] (%p2162_p0) }
  0x36   : > { %s279_s27 = scalar_lea.vmem (%p2162_p0), [#allocation6], %s1512_s29 }
  0x39   : > { %s285_s10 = sadd.s32 (%p2162_p0), %s1868_s26, %s282_s17 }
  0x3a   : > { %s1515_s25 = sshll.u32 %s285_s10, 2 }
  0x3b   : > { %s2184_s12 = scalar_lea.vmem %s2546_s2, %s1515_s25 }
  0x3c   : > { %v303_v0 = vld [vmem:[%s2184_s12] sm:$0xf]  ;;  %v305_v1 = vld [vmem:[%s2184_s12 + $0xc] sm:$0xf]  ;;  %v307_v2 = vld [vmem:[%s2184_s12 + $0x18] sm:$0xf] }
  0x3d   : > { %304 = vst [vmem:[%s279_s27] sm:$0xf] %v303_v0  ;;  %306 = vst [vmem:[%s279_s27 + $0x4] sm:$0xf] %v305_v1  ;;  %v309_v3 = vld [vmem:[%s2184_s12 + $0x24] sm:$0xf] }
  0x3e   : > { %308 = vst [vmem:[%s279_s27 + $0x8] sm:$0xf] %v307_v2  ;;  %v311_v4 = vld [vmem:[%s2184_s12 + $0x30] sm:$0xf]  ;;  %v313_v5 = vld [vmem:[%s2184_s12 + $0x3c] sm:$0xf] }
  0x3f   : > { %310 = vst [vmem:[%s279_s27 + $0xc] sm:$0xf] %v309_v3  ;;  %312 = vst [vmem:[%s279_s27 + $0x10] sm:$0xf] %v311_v4  ;;  %v315_v6 = vld [vmem:[%s2184_s12 + $0x48] sm:$0xf] }
  0x40   : > { %314 = vst [vmem:[%s279_s27 + $0x14] sm:$0xf] %v313_v5  ;;  %v317_v7 = vld [vmem:[%s2184_s12 + $0x54] sm:$0xf]  ;;  %v319_v8 = vld [vmem:[%s2184_s12 + $0x60] sm:$0xf] }
  0x41   : > { %316 = vst [vmem:[%s279_s27 + $0x18] sm:$0xf] %v315_v6  ;;  %318 = vst [vmem:[%s279_s27 + $0x1c] sm:$0xf] %v317_v7  ;;  %v321_v9 = vld [vmem:[%s2184_s12 + $0x6c] sm:$0xf] }
  0x42   : > { %320 = vst [vmem:[%s279_s27 + $0x20] sm:$0xf] %v319_v8  ;;  %v323_v10 = vld [vmem:[%s2184_s12 + $0x78] sm:$0xf]  ;;  %v325_v11 = vld [vmem:[%s2184_s12 + $0x84] sm:$0xf] }
  0x43   : > { %322 = vst [vmem:[%s279_s27 + $0x24] sm:$0xf] %v321_v9  ;;  %324 = vst [vmem:[%s279_s27 + $0x28] sm:$0xf] %v323_v10  ;;  %v327_v12 = vld [vmem:[%s2184_s12 + $0x90] sm:$0xf] }
  0x44   : > { %326 = vst [vmem:[%s279_s27 + $0x2c] sm:$0xf] %v325_v11  ;;  %v329_v13 = vld [vmem:[%s2184_s12 + $0x9c] sm:$0xf]  ;;  %v331_v14 = vld [vmem:[%s2184_s12 + $0xa8] sm:$0xf] }
  0x45   : > { %328 = vst [vmem:[%s279_s27 + $0x30] sm:$0xf] %v327_v12  ;;  %330 = vst [vmem:[%s279_s27 + $0x34] sm:$0xf] %v329_v13  ;;  %v333_v15 = vld [vmem:[%s2184_s12 + $0xb4] sm:$0xf] }
  0x46   : > { %332 = vst [vmem:[%s279_s27 + $0x38] sm:$0xf] %v331_v14  ;;  %334 = vst [vmem:[%s279_s27 + $0x3c] sm:$0xf] %v333_v15 }
  0x47 PF: > { %p1516_p3 = scmp.ge.s32.totalorder %s2056_s23, 1  ;;  %p412_p4 = scmp.lt.s32.totalorder %s2056_s23, 10 }
  0x49   : > { %p413_p5 = pnand %p1516_p3, %p412_p4 }
  0x4a   : > { %s419_s25 = sand.u32 (!%p413_p5), 1, %s2032_s1   ;;  %s472_s28 = smul.u32 (!%p413_p5), 3, %s2044_s20 }
  0x4b   : > { %416 = sbr.rel (%p413_p5) target bundleno = 807 (0x327), region = 81  ;;  %s1517_s13 = sshll.u32 (!%p413_p5), %s419_s25, 6 }
  0x4c   : > { %s1520_s14 = sshll.u32 (!%p413_p5), %s2044_s20, 4  ;;  %s473_s15 = sadd.s32 (!%p413_p5), %s2040_s19, %s472_s28 }
  0x4d   : > { %s474_s17 = sld [smem:[#allocation4 + %s473_s15]] (!%p413_p5)  ;;  %p485_p6 = scmp.lt.s32.totalorder (!%p413_p5), %s1520_s14, 47 }
  0x4e   : > { %s2228_s29 = scalar_lea.vmem (!%p413_p5), [#allocation6], %s1517_s13  ;;  %p1526_p8 = scmp.ne.s32.totalorder (!%p413_p5), %s2040_s19, 0 }
  0x52   : > { %s2561_s14 = smov (!%p485_p6, %s1520_s14), 47  ;;  %v2060_v16 = vmov (!%p1526_p8), 0.0  }
  0x53   : > { %s1521_s0 = sshll.u32 %s2561_s14, 3  ;;  %s1518_s27 = sshll.u32 %s474_s17, 4  ;;  %507 = vst [vmem:[#allocation2] sm:$0xff] (!%p1526_p8), %v2060_v16  ;;  %508 = vst [vmem:[#allocation2 + $0x8] sm:$0xff] (!%p1526_p8), %v2060_v16 }
  0x54   : > { %s2211_s10 = scalar_lea.vmem %s2535_s4, %s1521_s0  ;;  %s2216_s12 = scalar_lea.vmem %s2539_s8, %s1521_s0  ;;  %509 = vst [vmem:[#allocation2 + $0x10] sm:$0xff] (!%p1526_p8), %v2060_v16  ;;  %510 = vst [vmem:[#allocation2 + $0x18] sm:$0xff] (!%p1526_p8), %v2060_v16 }
  0x55   : > { %s2221_s25 = scalar_lea.vmem %s2540_s9, %s1521_s0  ;;  %p476_p7 = scmp.lt.s32.totalorder %s1518_s27, 47  ;;  %511 = vst [vmem:[#allocation2 + $0x20] sm:$0xff] (!%p1526_p8), %v2060_v16  ;;  %512 = vst [vmem:[#allocation2 + $0x28] sm:$0xff] (!%p1526_p8), %v2060_v16 }
  0x56   : > { %506 = sbr.rel (%p1526_p8) target bundleno = 93 (0x5d), region = 89  ;;  %513 = vst [vmem:[#allocation2 + $0x30] sm:$0xff] (!%p1526_p8), %v2060_v16  ;;  %514 = vst [vmem:[#allocation2 + $0x38] sm:$0xff] (!%p1526_p8), %v2060_v16 }
  0x57   : > { %s2563_s27 = smov (!%p476_p7, %s1518_s27), 47  ;;  %515 = vst [vmem:[#allocation2 + $0x40] sm:$0xff] (!%p1526_p8), %v2060_v16  ;;  %516 = vst [vmem:[#allocation2 + $0x48] sm:$0xff] (!%p1526_p8), %v2060_v16 }
  0x58   : > { %s1519_s28 = sshll.u32 %s2563_s27, 2  ;;  %517 = vst [vmem:[#allocation2 + $0x50] sm:$0xff] (!%p1526_p8), %v2060_v16  ;;  %518 = vst [vmem:[#allocation2 + $0x58] sm:$0xff] (!%p1526_p8), %v2060_v16 }
  0x59   : > { %s2226_s26 = scalar_lea.vmem %s2534_s3, %s1519_s28  ;;  %519 = vst [vmem:[#allocation2 + $0x60] sm:$0xff] (!%p1526_p8), %v2060_v16  ;;  %520 = vst [vmem:[#allocation2 + $0x68] sm:$0xff] (!%p1526_p8), %v2060_v16 }
  0x5a   : > { %521 = vst [vmem:[#allocation2 + $0x70] sm:$0xff] (!%p1526_p8), %v2060_v16  ;;  %522 = vst [vmem:[#allocation2 + $0x78] sm:$0xff] (!%p1526_p8), %v2060_v16 }
  0x5d PF: > { %s523_s2 = sld [smem:[#allocation5 + %s2044_s20]] }
  0x63   : > { %p1527_p9 = scmp.ge.s32.totalorder %s2040_s19, %s523_s2 }
  0x64   : > { %v1928_v17 = vld [vmem:[%s2226_s26] sm:$0xff] (!%p1527_p9)   ;;  %v1929_v18 = vld [vmem:[%s2226_s26 + $0x8] sm:$0xff] (!%p1527_p9)   ;;  %v1930_v19 = vld [vmem:[%s2226_s26 + $0x10] sm:$0xff] (!%p1527_p9)  }
  0x65   : > { %527 = sbr.rel (%p1527_p9) target bundleno = 359 (0x167), region = 93  ;;  %1628 = vmatprep.subr.bf16.mxu0 (!%p1527_p9), %v1928_v17  ;;  %1836 = vmatprep.subr.bf16.mxu1 (!%p1527_p9), %v1928_v17  ;;  %v1931_v20 = vld [vmem:[%s2226_s26 + $0x18] sm:$0xff] (!%p1527_p9)   ;;  %v1936_v21 = vld [vmem:[%s2228_s29] sm:$0xff] (!%p1527_p9)   ;;  %v1933_v24 = vld [vmem:[%s2226_s26 + $0x28] sm:$0xff] (!%p1527_p9)  }
  0x66   : > { %1629 = vmatpush3.bf16.msra.mxu0 (!%p1527_p9), %v1928_v17  ;;  %1844 = vmatpush3.bf16.msra.mxu1 (!%p1527_p9), %v1928_v17  ;;  %v1937_v22 = vld [vmem:[%s2228_s29 + $0x20] sm:$0xff] (!%p1527_p9)   ;;  %v1934_v25 = vld [vmem:[%s2226_s26 + $0x30] sm:$0xff] (!%p1527_p9)   ;;  %v1935_v26 = vld [vmem:[%s2226_s26 + $0x38] sm:$0xff] (!%p1527_p9)  }
  0x67   : > { %1630 = vmatprep.subr.bf16.mxu0 (!%p1527_p9), %v1929_v18  ;;  %1837 = vmatprep.subr.bf16.mxu1 (!%p1527_p9), %v1929_v18  ;;  %v1932_v23 = vld [vmem:[%s2226_s26 + $0x20] sm:$0xff] (!%p1527_p9)   ;;  %v1938_v27 = vld [vmem:[%s2228_s29 + $0x8] sm:$0xff] (!%p1527_p9)   ;;  %v1940_v29 = vld [vmem:[%s2228_s29 + $0x10] sm:$0xff] (!%p1527_p9)  }
  0x68   : > { %1644 = vmatprep.mubr.bf16.mxu0 (!%p1527_p9), %v1936_v21  ;;  %1652 = vmatprep.mubr.bf16.mxu1 (!%p1527_p9), %v1937_v22  ;;  %v1939_v28 = vld [vmem:[%s2228_s29 + $0x28] sm:$0xff] (!%p1527_p9)   ;;  %v1941_v30 = vld [vmem:[%s2228_s29 + $0x30] sm:$0xff] (!%p1527_p9)   ;;  %v1942_v31 = vld [vmem:[%s2228_s29 + $0x18] sm:$0xff] (!%p1527_p9)  }
  0x69   : > { %v1943_v32 = vld [vmem:[%s2228_s29 + $0x38] sm:$0xff] (!%p1527_p9)   ;;  %v530_v33 = vld [vmem:[#allocation2 + $0x10] sm:$0xff] (!%p1527_p9)  ;;  %v528_v35 = vld [vmem:[#allocation2] sm:$0xff] (!%p1527_p9) }
  0x6a   : > { %1631 = vmatpush3.bf16.msra.mxu0 (!%p1527_p9), %v1929_v18  ;;  %1845 = vmatpush3.bf16.msra.mxu1 (!%p1527_p9), %v1929_v18  ;;  %v538_v34 = vld [vmem:[#allocation2 + $0x50] sm:$0xff] (!%p1527_p9)  ;;  %v536_v36 = vld [vmem:[#allocation2 + $0x40] sm:$0xff] (!%p1527_p9)  ;;  %v531_v39 = vld [vmem:[#allocation2 + $0x18] sm:$0xff] (!%p1527_p9) }
  0x6b   : > { %1632 = vmatprep.subr.bf16.mxu0 (!%p1527_p9), %v1930_v19  ;;  %1838 = vmatprep.subr.bf16.mxu1 (!%p1527_p9), %v1930_v19  ;;  %v539_v40 = vld [vmem:[#allocation2 + $0x58] sm:$0xff] (!%p1527_p9)  ;;  %v529_v45 = vld [vmem:[#allocation2 + $0x8] sm:$0xff] (!%p1527_p9)  ;;  %v534_v57 = vld [vmem:[#allocation2 + $0x30] sm:$0xff] (!%p1527_p9) }
  0x6c   : > { %v537_v46 = vld [vmem:[#allocation2 + $0x48] sm:$0xff]  ;;  %v542_v58 = vld [vmem:[#allocation2 + $0x70] sm:$0xff]  ;;  %v532_v59 = vld [vmem:[#allocation2 + $0x20] sm:$0xff] }
  0x6d   : > { %v540_v60 = vld [vmem:[#allocation2 + $0x60] sm:$0xff]  ;;  %v535_v63 = vld [vmem:[#allocation2 + $0x38] sm:$0xff]  ;;  %v533_v5 = vld [vmem:[#allocation2 + $0x28] sm:$0xff] }
  0x6e   : > { %1633 = vmatpush3.bf16.msra.mxu0 %v1930_v19  ;;  %1846 = vmatpush3.bf16.msra.mxu1 %v1930_v19  ;;  %v543_v0 = vld [vmem:[#allocation2 + $0x78] sm:$0xff]  ;;  %v541_v6 = vld [vmem:[#allocation2 + $0x68] sm:$0xff] }
  0x6f   : > { %1634 = vmatprep.subr.bf16.mxu0 %v1931_v20  ;;  %1839 = vmatprep.subr.bf16.mxu1 %v1931_v20 }
  0x72   : > { %1635 = vmatpush3.bf16.msra.mxu0 %v1931_v20  ;;  %1847 = vmatpush3.bf16.msra.mxu1 %v1931_v20 }
  0x73   : > { %1636 = vmatprep.subr.bf16.mxu0 %v1932_v23  ;;  %1840 = vmatprep.subr.bf16.mxu1 %v1932_v23 }
  0x76   : > { %1637 = vmatpush3.bf16.msra.mxu0 %v1932_v23  ;;  %1848 = vmatpush3.bf16.msra.mxu1 %v1932_v23 }
  0x77   : > { %1638 = vmatprep.subr.bf16.mxu0 %v1933_v24  ;;  %1841 = vmatprep.subr.bf16.mxu1 %v1933_v24 }
  0x7a   : > { %1639 = vmatpush3.bf16.msra.mxu0 %v1933_v24  ;;  %1849 = vmatpush3.bf16.msra.mxu1 %v1933_v24 }
  0x7b   : > { %1640 = vmatprep.subr.bf16.mxu0 %v1934_v25  ;;  %1842 = vmatprep.subr.bf16.mxu1 %v1934_v25 }
  0x7e   : > { %1641 = vmatpush3.bf16.msra.mxu0 %v1934_v25  ;;  %1850 = vmatpush3.bf16.msra.mxu1 %v1934_v25 }
  0x7f   : > { %1642 = vmatprep.subr.bf16.mxu0 %v1935_v26  ;;  %1843 = vmatprep.subr.bf16.mxu1 %v1935_v26 }
  0x82   : > { %1643 = vmatpush3.bf16.msra.mxu0 %v1935_v26  ;;  %1851 = vmatpush3.bf16.msra.mxu1 %v1935_v26 }
  0x85   : > { %1645 = vmatmul.mubr.bf16.vlgmr.msra.gmra.mrb[0].mxu0 %v1938_v27  ;;  %1653 = vmatmul.mubr.bf16.vlgmr.msra.gmra.mrb[0].mxu1 %v1939_v28 }
  0x86   : > { %1648 = vmatprep.mubr.bf16.mxu0 %v1940_v29  ;;  %1656 = vmatprep.mubr.bf16.mxu1 %v1941_v30 }
  0x8d   : > { %1649 = vmatmul.mubr.bf16.gmra.mrb[4].mxu0 %v1942_v31  ;;  %1657 = vmatmul.mubr.bf16.gmra.mrb[4].mxu1 %v1943_v32 }
 0x158   : > { %v1646_v37 = vpop.f32.mrb[0].mxu0  ;;  %v1654_v38 = vpop.f32.mrb[0].mxu1 }
 0x159   : > { %v771_v41 = vadd.f32 %v1646_v37, %v530_v33  ;;  %v779_v42 = vadd.f32 %v1654_v38, %v538_v34  ;;  %v706_v43 = vpop.f32.mrb[1].mxu0  ;;  %v738_v44 = vpop.f32.mrb[1].mxu1 }
 0x15a   : > { %v769_v47 = vadd.f32 %v706_v43, %v528_v35  ;;  %v777_v48 = vadd.f32 %v738_v44, %v536_v36  ;;  %v1647_v49 = vpop.f32.mrb[2].mxu0  ;;  %v1655_v50 = vpop.f32.mrb[2].mxu1 }
 0x15b   : > { %787 = vst [vmem:[#allocation2 + $0x10] sm:$0xff] %v771_v41  ;;  %795 = vst [vmem:[#allocation2 + $0x50] sm:$0xff] %v779_v42  ;;  %v772_v51 = vadd.f32 %v1647_v49, %v531_v39  ;;  %v780_v52 = vadd.f32 %v1655_v50, %v539_v40  ;;  %v709_v53 = vpop.f32.mrb[3].mxu0  ;;  %v741_v54 = vpop.f32.mrb[3].mxu1 }
 0x15c   : > { %785 = vst [vmem:[#allocation2] sm:$0xff] %v769_v47  ;;  %793 = vst [vmem:[#allocation2 + $0x40] sm:$0xff] %v777_v48  ;;  %v770_v55 = vadd.f32 %v709_v53, %v529_v45  ;;  %v778_v56 = vadd.f32 %v741_v54, %v537_v46 }
 0x15d   : > { %788 = vst [vmem:[#allocation2 + $0x18] sm:$0xff] %v772_v51  ;;  %796 = vst [vmem:[#allocation2 + $0x58] sm:$0xff] %v780_v52 }
 0x15e   : > { %786 = vst [vmem:[#allocation2 + $0x8] sm:$0xff] %v770_v55  ;;  %794 = vst [vmem:[#allocation2 + $0x48] sm:$0xff] %v778_v56 }
 0x160   : > { %v1650_v61 = vpop.f32.mrb[4].mxu0  ;;  %v1658_v62 = vpop.f32.mrb[4].mxu1 }
 0x161   : > { %v775_v1 = vadd.f32 %v1650_v61, %v534_v57  ;;  %v783_v2 = vadd.f32 %v1658_v62, %v542_v58  ;;  %v722_v3 = vpop.f32.mrb[5].mxu0  ;;  %v754_v4 = vpop.f32.mrb[5].mxu1 }
 0x162   : > { %v773_v7 = vadd.f32 %v722_v3, %v532_v59  ;;  %v781_v8 = vadd.f32 %v754_v4, %v540_v60  ;;  %v1651_v9 = vpop.f32.mrb[6].mxu0  ;;  %v1659_v10 = vpop.f32.mrb[6].mxu1 }
 0x163   : > { %791 = vst [vmem:[#allocation2 + $0x30] sm:$0xff] %v775_v1  ;;  %799 = vst [vmem:[#allocation2 + $0x70] sm:$0xff] %v783_v2  ;;  %v776_v11 = vadd.f32 %v1651_v9, %v535_v63  ;;  %v784_v12 = vadd.f32 %v1659_v10, %v543_v0  ;;  %v725_v13 = vpop.f32.mrb[7].mxu0  ;;  %v757_v14 = vpop.f32.mrb[7].mxu1 }
 0x164   : > { %789 = vst [vmem:[#allocation2 + $0x20] sm:$0xff] %v773_v7  ;;  %797 = vst [vmem:[#allocation2 + $0x60] sm:$0xff] %v781_v8  ;;  %v774_v15 = vadd.f32 %v725_v13, %v533_v5  ;;  %v782_v16 = vadd.f32 %v757_v14, %v541_v6 }
 0x165   : > { %792 = vst [vmem:[#allocation2 + $0x38] sm:$0xff] %v776_v11  ;;  %800 = vst [vmem:[#allocation2 + $0x78] sm:$0xff] %v784_v12 }
 0x166   : > { %790 = vst [vmem:[#allocation2 + $0x28] sm:$0xff] %v774_v15  ;;  %798 = vst [vmem:[#allocation2 + $0x68] sm:$0xff] %v782_v16 }
 0x167 PF: > { %p1544_p10 = scmp.ne.s32.totalorder %s2040_s19, 2 }
 0x168   : > { %v869_v17 = vld [vmem:[%s2537_s6] sm:$0xff] (!%p1544_p10)  ;;  %v870_v18 = vld [vmem:[%s2537_s6 + $0x8] sm:$0xff] (!%p1544_p10)  ;;  %v871_v22 = vld [vmem:[%s2537_s6 + $0x10] sm:$0xff] (!%p1544_p10) }
 0x169   : > { %804 = sbr.rel (%p1544_p10) target bundleno = 807 (0x327), region = 97  ;;  %v853_v19 = vld [vmem:[%s2536_s5] sm:$0xff] (!%p1544_p10)  ;;  %v1772_v20 = vpack.c.bf16 (!%p1544_p10), %v870_v18, %v869_v17  ;;  %v854_v21 = vld [vmem:[%s2536_s5 + $0x8] sm:$0xff] (!%p1544_p10)  ;;  %v872_v23 = vld [vmem:[%s2537_s6 + $0x18] sm:$0xff] (!%p1544_p10) }
 0x16a   : > { %v1804_v24 = vpack.c.bf16 (!%p1544_p10), %v854_v21, %v853_v19  ;;  %v1776_v25 = vpack.c.bf16 (!%p1544_p10), %v872_v23, %v871_v22  ;;  %v855_v26 = vld [vmem:[%s2536_s5 + $0x10] sm:$0xff] (!%p1544_p10)  ;;  %v856_v27 = vld [vmem:[%s2536_s5 + $0x18] sm:$0xff] (!%p1544_p10)  ;;  %v873_v28 = vld [vmem:[%s2537_s6 + $0x20] sm:$0xff] (!%p1544_p10) }
 0x16b   : > { %1773 = vmatprep.subr.bf16.mxu1 (!%p1544_p10), %v1772_v20  ;;  %v1808_v29 = vpack.c.bf16 (!%p1544_p10), %v856_v27, %v855_v26  ;;  %v874_v30 = vld [vmem:[%s2537_s6 + $0x28] sm:$0xff] (!%p1544_p10)  ;;  %v857_v31 = vld [vmem:[%s2536_s5 + $0x20] sm:$0xff] (!%p1544_p10)  ;;  %v875_v35 = vld [vmem:[%s2537_s6 + $0x30] sm:$0xff] (!%p1544_p10) }
 0x16c   : > { %v858_v32 = vld [vmem:[%s2536_s5 + $0x28] sm:$0xff] (!%p1544_p10)  ;;  %1805 = vmatprep.subr.bf16.mxu0 (!%p1544_p10), %v1804_v24  ;;  %1775 = vmatpush3.bf16.msra.mxu1 (!%p1544_p10), %v1772_v20  ;;  %v1780_v33 = vpack.c.bf16 (!%p1544_p10), %v874_v30, %v873_v28  ;;  %v876_v36 = vld [vmem:[%s2537_s6 + $0x38] sm:$0xff] (!%p1544_p10)  ;;  %v859_v37 = vld [vmem:[%s2536_s5 + $0x30] sm:$0xff] (!%p1544_p10) }
 0x16d   : > { %1807 = vmatpush3.bf16.msra.mxu0 (!%p1544_p10), %v1804_v24  ;;  %1777 = vmatprep.subr.bf16.mxu1 (!%p1544_p10), %v1776_v25  ;;  %v1812_v34 = vpack.c.bf16 (!%p1544_p10), %v858_v32, %v857_v31  ;;  %v860_v38 = vld [vmem:[%s2536_s5 + $0x38] sm:$0xff] (!%p1544_p10)  ;;  %v1784_v39 = vpack.c.bf16 (!%p1544_p10), %v876_v36, %v875_v35  ;;  %v877_v41 = vld [vmem:[%s2537_s6 + $0x40] sm:$0xff] (!%p1544_p10)  ;;  %v878_v42 = vld [vmem:[%s2537_s6 + $0x48] sm:$0xff] (!%p1544_p10) }
 0x16e   : > { %1809 = vmatprep.subr.bf16.mxu0 (!%p1544_p10), %v1808_v29  ;;  %v1816_v40 = vpack.c.bf16 (!%p1544_p10), %v860_v38, %v859_v37  ;;  %v805_v43 = vld [vmem:[#allocation2] sm:$0xff] (!%p1544_p10)  ;;  %v862_v45 = vld [vmem:[%s2536_s5 + $0x48] sm:$0xff] (!%p1544_p10)  ;;  %v1788_v48 = vpack.c.bf16 (!%p1544_p10), %v878_v42, %v877_v41  ;;  %v879_v50 = vld [vmem:[%s2537_s6 + $0x50] sm:$0xff] (!%p1544_p10) }
 0x16f   : > { %v861_v44 = vld [vmem:[%s2536_s5 + $0x40] sm:$0xff] (!%p1544_p10)  ;;  %1748 = vmatprep.mubr.f32.mxu0 (!%p1544_p10), %v805_v43  ;;  %v880_v51 = vld [vmem:[%s2537_s6 + $0x58] sm:$0xff] (!%p1544_p10)  ;;  %v863_v52 = vld [vmem:[%s2536_s5 + $0x50] sm:$0xff] (!%p1544_p10) }
 0x170   : > { %1779 = vmatpush3.bf16.msra.mxu1 %v1776_v25  ;;  %v821_v46 = vld [vmem:[%s2211_s10] sm:$0xff]  ;;  %v1820_v49 = vpack.c.bf16 %v862_v45, %v861_v44  ;;  %v864_v53 = vld [vmem:[%s2536_s5 + $0x58] sm:$0xff]  ;;  %v1792_v54 = vpack.c.bf16 %v880_v51, %v879_v50  ;;  %v882_v57 = vld [vmem:[%s2537_s6 + $0x68] sm:$0xff] }
 0x171   : > { %1811 = vmatpush3.bf16.msra.mxu0 %v1808_v29  ;;  %1781 = vmatprep.subr.bf16.mxu1 %v1780_v33  ;;  %v837_v47 = vmul.f32 %v821_v46, %v805_v43  ;;  %v1824_v55 = vpack.c.bf16 %v864_v53, %v863_v52  ;;  %v881_v56 = vld [vmem:[%s2537_s6 + $0x60] sm:$0xff]  ;;  %v866_v59 = vld [vmem:[%s2536_s5 + $0x68] sm:$0xff]  ;;  %v883_v62 = vld [vmem:[%s2537_s6 + $0x70] sm:$0xff] }
 0x172   : > { %1813 = vmatprep.subr.bf16.mxu0 %v1812_v34  ;;  %v865_v58 = vld [vmem:[%s2536_s5 + $0x60] sm:$0xff]  ;;  %v1796_v60 = vpack.c.bf16 %v882_v57, %v881_v56  ;;  %v884_v63 = vld [vmem:[%s2537_s6 + $0x78] sm:$0xff]  ;;  %v867_v0 = vld [vmem:[%s2536_s5 + $0x70] sm:$0xff] }
 0x173   : > { %1692 = vmatprep.mubr.f32.mxu1 %v837_v47  ;;  %v1828_v61 = vpack.c.bf16 %v866_v59, %v865_v58  ;;  %v868_v1 = vld [vmem:[%s2536_s5 + $0x78] sm:$0xff]  ;;  %v1800_v2 = vpack.c.bf16 %v884_v63, %v883_v62  ;;  %v806_v4 = vld [vmem:[#allocation2 + $0x8] sm:$0xff]  ;;  %v807_v6 = vld [vmem:[#allocation2 + $0x10] sm:$0xff] }
 0x174   : > { %1783 = vmatpush3.bf16.msra.mxu1 %v1780_v33  ;;  %v1832_v3 = vpack.c.bf16 %v868_v1, %v867_v0  ;;  %v822_v5 = vld [vmem:[%s2211_s10 + $0x8] sm:$0xff]  ;;  %v823_v7 = vld [vmem:[%s2211_s10 + $0x10] sm:$0xff]  ;;  %v808_v10 = vld [vmem:[#allocation2 + $0x18] sm:$0xff] }
 0x175   : > { %1815 = vmatpush3.bf16.msra.mxu0 %v1812_v34  ;;  %1785 = vmatprep.subr.bf16.mxu1 %v1784_v39  ;;  %v838_v8 = vmul.f32 %v822_v5, %v806_v4  ;;  %v839_v9 = vmul.f32 %v823_v7, %v807_v6  ;;  %v824_v11 = vld [vmem:[%s2211_s10 + $0x18] sm:$0xff]  ;;  %v809_v12 = vld [vmem:[#allocation2 + $0x20] sm:$0xff]  ;;  %v810_v16 = vld [vmem:[#allocation2 + $0x28] sm:$0xff] }
 0x176   : > { %1817 = vmatprep.subr.bf16.mxu0 %v1816_v40  ;;  %v825_v13 = vld [vmem:[%s2211_s10 + $0x20] sm:$0xff]  ;;  %v840_v14 = vmul.f32 %v824_v11, %v808_v10  ;;  %v826_v17 = vld [vmem:[%s2211_s10 + $0x28] sm:$0xff]  ;;  %v811_v18 = vld [vmem:[#allocation2 + $0x30] sm:$0xff] }
 0x177   : > { %v841_v15 = vmul.f32 %v825_v13, %v809_v12  ;;  %v827_v19 = vld [vmem:[%s2211_s10 + $0x30] sm:$0xff]  ;;  %v842_v20 = vmul.f32 %v826_v17, %v810_v16  ;;  %v812_v22 = vld [vmem:[#allocation2 + $0x38] sm:$0xff]  ;;  %v813_v24 = vld [vmem:[#allocation2 + $0x40] sm:$0xff] }
 0x178   : > { %1787 = vmatpush3.bf16.msra.mxu1 %v1784_v39  ;;  %v843_v21 = vmul.f32 %v827_v19, %v811_v18  ;;  %v828_v23 = vld [vmem:[%s2211_s10 + $0x38] sm:$0xff]  ;;  %v829_v25 = vld [vmem:[%s2211_s10 + $0x40] sm:$0xff]  ;;  %v814_v28 = vld [vmem:[#allocation2 + $0x48] sm:$0xff] }
 0x179   : > { %1819 = vmatpush3.bf16.msra.mxu0 %v1816_v40  ;;  %1789 = vmatprep.subr.bf16.mxu1 %v1788_v48  ;;  %v844_v26 = vmul.f32 %v828_v23, %v812_v22  ;;  %v845_v27 = vmul.f32 %v829_v25, %v813_v24  ;;  %v830_v29 = vld [vmem:[%s2211_s10 + $0x48] sm:$0xff]  ;;  %v815_v30 = vld [vmem:[#allocation2 + $0x50] sm:$0xff]  ;;  %v816_v34 = vld [vmem:[#allocation2 + $0x58] sm:$0xff] }
 0x17a   : > { %1821 = vmatprep.subr.bf16.mxu0 %v1820_v49  ;;  %v831_v31 = vld [vmem:[%s2211_s10 + $0x50] sm:$0xff]  ;;  %v846_v32 = vmul.f32 %v830_v29, %v814_v28  ;;  %v832_v35 = vld [vmem:[%s2211_s10 + $0x58] sm:$0xff]  ;;  %v817_v36 = vld [vmem:[#allocation2 + $0x60] sm:$0xff] }
 0x17b   : > { %v847_v33 = vmul.f32 %v831_v31, %v815_v30  ;;  %v833_v37 = vld [vmem:[%s2211_s10 + $0x60] sm:$0xff]  ;;  %v848_v38 = vmul.f32 %v832_v35, %v816_v34  ;;  %v818_v40 = vld [vmem:[#allocation2 + $0x68] sm:$0xff]  ;;  %v819_v42 = vld [vmem:[#allocation2 + $0x70] sm:$0xff] }
 0x17c   : > { %1791 = vmatpush3.bf16.msra.mxu1 %v1788_v48  ;;  %v849_v39 = vmul.f32 %v833_v37, %v817_v36  ;;  %v834_v41 = vld [vmem:[%s2211_s10 + $0x68] sm:$0xff]  ;;  %v835_v43 = vld [vmem:[%s2211_s10 + $0x70] sm:$0xff]  ;;  %v820_v46 = vld [vmem:[#allocation2 + $0x78] sm:$0xff] }
 0x17d   : > { %1823 = vmatpush3.bf16.msra.mxu0 %v1820_v49  ;;  %1793 = vmatprep.subr.bf16.mxu1 %v1792_v54  ;;  %v850_v44 = vmul.f32 %v834_v41, %v818_v40  ;;  %v851_v45 = vmul.f32 %v835_v43, %v819_v42  ;;  %v836_v47 = vld [vmem:[%s2211_s10 + $0x78] sm:$0xff]  ;;  %v2365_v51 = vld [vmem:[%s2538_s7] ss:$0 sm:$0xff] }
 0x17e   : > { %1825 = vmatprep.subr.bf16.mxu0 %v1824_v55  ;;  %v852_v48 = vmul.f32 %v836_v47, %v820_v46 }
 0x180   : > { %1795 = vmatpush3.bf16.msra.mxu1 %v1792_v54 }
 0x181   : > { %1827 = vmatpush3.bf16.msra.mxu0 %v1824_v55  ;;  %1797 = vmatprep.subr.bf16.mxu1 %v1796_v60 }
 0x182   : > { %1829 = vmatprep.subr.bf16.mxu0 %v1828_v61 }
 0x184   : > { %1799 = vmatpush3.bf16.msra.mxu1 %v1796_v60 }
 0x185   : > { %1831 = vmatpush3.bf16.msra.mxu0 %v1828_v61  ;;  %1801 = vmatprep.subr.bf16.mxu1 %v1800_v2 }
 0x186   : > { %1833 = vmatprep.subr.bf16.mxu0 %v1832_v3 }
 0x188   : > { %1803 = vmatpush3.bf16.msra.mxu1 %v1800_v2 }
 0x189   : > { %1835 = vmatpush3.bf16.msra.mxu0 %v1832_v3 }
 0x18b   : > { %1693 = vmatmul.mubr.f32.vlgmr.msra.gmra.mrb[0].mxu1 %v838_v8 }
 0x18c   : > { %1749 = vmatmul.mubr.f32.vlgmr.msra.gmra.mrb[0].mxu0 %v806_v4  ;;  %1695 = vmatprep.mubr.f32.mxu1 %v839_v9 }
 0x18d   : > { %1751 = vmatprep.mubr.f32.mxu0 %v807_v6 }
 0x18f   : > { %1696 = vmatmul.mubr.f32.gmra.mrb[2].mxu1 %v840_v14 }
 0x190   : > { %1752 = vmatmul.mubr.f32.gmra.mrb[2].mxu0 %v808_v10  ;;  %1698 = vmatprep.mubr.f32.mxu1 %v841_v15 }
 0x191   : > { %1754 = vmatprep.mubr.f32.mxu0 %v809_v12 }
 0x193   : > { %1699 = vmatmul.mubr.f32.gmra.mrb[4].mxu1 %v842_v20 }
 0x194   : > { %1755 = vmatmul.mubr.f32.gmra.mrb[4].mxu0 %v810_v16  ;;  %1701 = vmatprep.mubr.f32.mxu1 %v843_v21 }
 0x195   : > { %1757 = vmatprep.mubr.f32.mxu0 %v811_v18 }
 0x197   : > { %1702 = vmatmul.mubr.f32.gmra.mrb[6].mxu1 %v844_v26 }
 0x198   : > { %1758 = vmatmul.mubr.f32.gmra.mrb[6].mxu0 %v812_v22  ;;  %1704 = vmatprep.mubr.f32.mxu1 %v845_v27 }
 0x199   : > { %1760 = vmatprep.mubr.f32.mxu0 %v813_v24 }
 0x19b   : > { %1705 = vmatmul.mubr.f32.gmra.mrb[8].mxu1 %v846_v32 }
 0x19c   : > { %1761 = vmatmul.mubr.f32.gmra.mrb[8].mxu0 %v814_v28  ;;  %1707 = vmatprep.mubr.f32.mxu1 %v847_v33 }
 0x19d   : > { %1763 = vmatprep.mubr.f32.mxu0 %v815_v30 }
 0x19f   : > { %1708 = vmatmul.mubr.f32.gmra.mrb[10].mxu1 %v848_v38 }
 0x1a0   : > { %1764 = vmatmul.mubr.f32.gmra.mrb[10].mxu0 %v816_v34  ;;  %1710 = vmatprep.mubr.f32.mxu1 %v849_v39 }
 0x1a1   : > { %1766 = vmatprep.mubr.f32.mxu0 %v817_v36 }
 0x1a3   : > { %1711 = vmatmul.mubr.f32.gmra.mrb[12].mxu1 %v850_v44 }
 0x1a4   : > { %1767 = vmatmul.mubr.f32.gmra.mrb[12].mxu0 %v818_v40  ;;  %1713 = vmatprep.mubr.f32.mxu1 %v851_v45 }
 0x1a5   : > { %1769 = vmatprep.mubr.f32.mxu0 %v819_v42 }
 0x1a7   : > { %1714 = vmatmul.mubr.f32.gmra.mrb[14].mxu1 %v852_v48 }
 0x1a8   : > { %1770 = vmatmul.mubr.f32.gmra.mrb[14].mxu0 %v820_v46 }
 0x25e   : > { %v1694_v49 = vpop.f32.mrb[0].mxu1 }
 0x25f   : > { %v1750_v50 = vpop.f32.mrb[0].mxu0  ;;  %v951_v52 = vpop.f32.mrb[1].mxu1 }
 0x260   : > { %v1102_v53 = vadd.f32 %v1750_v50, %v1694_v49  ;;  %v1096_v54 = vpop.f32.mrb[1].mxu0 }
 0x261   : > { %v1097_v55 = vadd.f32 %v1096_v54, %v951_v52 }
 0x262   : > { %v1183_v56 = vadd.f32 %v2365_v51, %v1102_v53  ;;  %v1697_v57 = vpop.f32.mrb[2].mxu1 }
 0x263   : > { %v1182_v58 = vadd.f32 %v2365_v51, %v1097_v55  ;;  %v1753_v59 = vpop.f32.mrb[2].mxu0  ;;  %v961_v60 = vpop.f32.mrb[3].mxu1 }
 0x264   : > { %v1112_v61 = vadd.f32 %v1753_v59, %v1697_v57  ;;  %v1106_v62 = vpop.f32.mrb[3].mxu0  ;;  %vm1199_vm0 = vcmp.ge.f32.partialorder %v1183_v56, 0.0  ;;  %v1215_v63 = vmul.f32 0.01, %v1183_v56 }
 0x265   : > { %v1214_v0 = vmul.f32 0.01, %v1182_v58  ;;  %v1107_v1 = vadd.f32 %v1106_v62, %v961_v60  ;;  %vm1198_vm1 = vcmp.ge.f32.partialorder %v1182_v58, 0.0 }
 0x266   : > { %v1185_v2 = vadd.f32 %v2365_v51, %v1112_v61  ;;  %v1700_v3 = vpop.f32.mrb[4].mxu1  ;;  %v2370_v4 = vsel %vm1199_vm0, %v1183_v56, %v1215_v63 }
 0x267   : > { %v1184_v5 = vadd.f32 %v2365_v51, %v1107_v1  ;;  %v1756_v6 = vpop.f32.mrb[4].mxu0  ;;  %v971_v7 = vpop.f32.mrb[5].mxu1  ;;  %v1263_v8 = vmul.f32 %v2370_v4, %v2370_v4  ;;  %1247 = vst [vmem:[%s2216_s12 + $0x8] sm:$0xff] %v2370_v4  ;;  %v2377_v9 = vsel %vm1198_vm1, %v1182_v58, %v1214_v0 }
 0x268   : > { %v1122_v10 = vadd.f32 %v1756_v6, %v1700_v3  ;;  %v1116_v11 = vpop.f32.mrb[5].mxu0  ;;  %1246 = vst [vmem:[%s2216_s12] sm:$0xff] %v2377_v9  ;;  %vm1201_vm2 = vcmp.ge.f32.partialorder %v1185_v2, 0.0  ;;  %v1217_v12 = vmul.f32 0.01, %v1185_v2  ;;  %v1262_v21 = vmul.f32 %v2377_v9, %v2377_v9 }
 0x269   : > { %v1216_v13 = vmul.f32 0.01, %v1184_v5  ;;  %v1117_v14 = vadd.f32 %v1116_v11, %v971_v7  ;;  %1280 = vadd.xlane.f32.xlu0 %v1263_v8  ;;  %vm1200_vm3 = vcmp.ge.f32.partialorder %v1184_v5, 0.0 }
 0x26a   : > { %v1187_v15 = vadd.f32 %v2365_v51, %v1122_v10  ;;  %v1703_v16 = vpop.f32.mrb[6].mxu1  ;;  %v2382_v17 = vsel %vm1201_vm2, %v1185_v2, %v1217_v12 }
 0x26b   : > { %v1186_v18 = vadd.f32 %v2365_v51, %v1117_v14  ;;  %v1759_v19 = vpop.f32.mrb[6].mxu0  ;;  %v981_v20 = vpop.f32.mrb[7].mxu1  ;;  %v1265_v22 = vmul.f32 %v2382_v17, %v2382_v17  ;;  %1249 = vst [vmem:[%s2216_s12 + $0x18] sm:$0xff] %v2382_v17  ;;  %v2391_v23 = vsel %vm1200_vm3, %v1184_v5, %v1216_v13 }
 0x26c   : > { %v1219_v24 = vmul.f32 0.01, %v1187_v15  ;;  %v1132_v25 = vadd.f32 %v1759_v19, %v1703_v16  ;;  %v1126_v26 = vpop.f32.mrb[7].mxu0  ;;  %1248 = vst [vmem:[%s2216_s12 + $0x10] sm:$0xff] %v2391_v23  ;;  %vm1203_vm4 = vcmp.ge.f32.partialorder %v1187_v15, 0.0  ;;  %v1264_v35 = vmul.f32 %v2391_v23, %v2391_v23 }
 0x26d   : > { %v1218_v27 = vmul.f32 0.01, %v1186_v18  ;;  %v1127_v28 = vadd.f32 %v1126_v26, %v981_v20  ;;  %1278 = vadd.xlane.f32.xlu0 %v1262_v21  ;;  %1284 = vadd.xlane.f32.xlu1 %v1265_v22  ;;  %vm1202_vm5 = vcmp.ge.f32.partialorder %v1186_v18, 0.0 }
 0x26e   : > { %v1189_v29 = vadd.f32 %v2365_v51, %v1132_v25  ;;  %v1706_v30 = vpop.f32.mrb[8].mxu1  ;;  %v2396_v31 = vsel %vm1203_vm4, %v1187_v15, %v1219_v24 }
 0x26f   : > { %v1188_v32 = vadd.f32 %v2365_v51, %v1127_v28  ;;  %v1762_v33 = vpop.f32.mrb[8].mxu0  ;;  %v991_v34 = vpop.f32.mrb[9].mxu1  ;;  %v2401_v36 = vsel %vm1202_vm5, %v1186_v18, %v1218_v27  ;;  %1251 = vst [vmem:[%s2216_s12 + $0x28] sm:$0xff] %v2396_v31  ;;  %v1267_v49 = vmul.f32 %v2396_v31, %v2396_v31 }
 0x270   : > { %v1221_v37 = vmul.f32 0.01, %v1189_v29  ;;  %v1142_v38 = vadd.f32 %v1762_v33, %v1706_v30  ;;  %v1136_v39 = vpop.f32.mrb[9].mxu0  ;;  %v1266_v40 = vmul.f32 %v2401_v36, %v2401_v36  ;;  %1250 = vst [vmem:[%s2216_s12 + $0x20] sm:$0xff] %v2401_v36  ;;  %vm1205_vm6 = vcmp.ge.f32.partialorder %v1189_v29, 0.0 }
 0x271   : > { %v1220_v41 = vmul.f32 0.01, %v1188_v32  ;;  %v1137_v42 = vadd.f32 %v1136_v39, %v991_v34  ;;  %1282 = vadd.xlane.f32.xlu1 %v1264_v35  ;;  %vm1204_vm7 = vcmp.ge.f32.partialorder %v1188_v32, 0.0 }
 0x272   : > { %v1191_v43 = vadd.f32 %v2365_v51, %v1142_v38  ;;  %1286 = vadd.xlane.f32.xlu0 %v1266_v40  ;;  %v1709_v44 = vpop.f32.mrb[10].mxu1  ;;  %v2410_v45 = vsel %vm1205_vm6, %v1189_v29, %v1221_v37 }
 0x273   : > { %v1190_v46 = vadd.f32 %v2365_v51, %v1137_v42  ;;  %v1765_v47 = vpop.f32.mrb[10].mxu0  ;;  %v1001_v48 = vpop.f32.mrb[11].mxu1  ;;  %v2415_v50 = vsel %vm1204_vm7, %v1188_v32, %v1220_v41  ;;  %1253 = vst [vmem:[%s2216_s12 + $0x38] sm:$0xff] %v2410_v45  ;;  %v1269_v0 = vmul.f32 %v2410_v45, %v2410_v45 }
 0x274   : > { %v1223_v52 = vmul.f32 0.01, %v1191_v43  ;;  %v1152_v53 = vadd.f32 %v1765_v47, %v1709_v44  ;;  %v1146_v54 = vpop.f32.mrb[11].mxu0  ;;  %v1268_v55 = vmul.f32 %v2415_v50, %v2415_v50  ;;  %1252 = vst [vmem:[%s2216_s12 + $0x30] sm:$0xff] %v2415_v50  ;;  %vm1207_vm8 = vcmp.ge.f32.partialorder %v1191_v43, 0.0 }
 0x275   : > { %v1222_v56 = vmul.f32 0.01, %v1190_v46  ;;  %v1147_v57 = vadd.f32 %v1146_v54, %v1001_v48  ;;  %1288 = vadd.xlane.f32.xlu1 %v1267_v49  ;;  %vm1206_vm9 = vcmp.ge.f32.partialorder %v1190_v46, 0.0 }
 0x276   : > { %v1193_v58 = vadd.f32 %v2365_v51, %v1152_v53  ;;  %1290 = vadd.xlane.f32.xlu0 %v1268_v55  ;;  %v1712_v59 = vpop.f32.mrb[12].mxu1  ;;  %v2424_v60 = vsel %vm1207_vm8, %v1191_v43, %v1223_v52 }
 0x277   : > { %v1192_v61 = vadd.f32 %v2365_v51, %v1147_v57  ;;  %v1768_v62 = vpop.f32.mrb[12].mxu0  ;;  %v1011_v63 = vpop.f32.mrb[13].mxu1  ;;  %v2429_v1 = vsel %vm1206_vm9, %v1190_v46, %v1222_v56  ;;  %1255 = vst [vmem:[%s2216_s12 + $0x48] sm:$0xff] %v2424_v60  ;;  %v1271_v16 = vmul.f32 %v2424_v60, %v2424_v60 }
 0x278   : > { %v1225_v2 = vmul.f32 0.01, %v1193_v58  ;;  %v1162_v3 = vadd.f32 %v1768_v62, %v1712_v59  ;;  %v1156_v5 = vpop.f32.mrb[13].mxu0  ;;  %v1270_v6 = vmul.f32 %v2429_v1, %v2429_v1  ;;  %1254 = vst [vmem:[%s2216_s12 + $0x40] sm:$0xff] %v2429_v1  ;;  %vm1209_vm10 = vcmp.ge.f32.partialorder %v1193_v58, 0.0 }
 0x279   : > { %v1224_v7 = vmul.f32 0.01, %v1192_v61  ;;  %v1157_v8 = vadd.f32 %v1156_v5, %v1011_v63  ;;  %1292 = vadd.xlane.f32.xlu1 %v1269_v0  ;;  %vm1208_vm11 = vcmp.ge.f32.partialorder %v1192_v61, 0.0 }
 0x27a   : > { %v1195_v10 = vadd.f32 %v2365_v51, %v1162_v3  ;;  %1294 = vadd.xlane.f32.xlu0 %v1270_v6  ;;  %v1715_v11 = vpop.f32.mrb[14].mxu1  ;;  %v2438_v12 = vsel %vm1209_vm10, %v1193_v58, %v1225_v2 }
 0x27b   : > { %v1194_v13 = vadd.f32 %v2365_v51, %v1157_v8  ;;  %v1771_v14 = vpop.f32.mrb[14].mxu0  ;;  %v1021_v15 = vpop.f32.mrb[15].mxu1  ;;  %v2443_v18 = vsel %vm1208_vm11, %v1192_v61, %v1224_v7  ;;  %1257 = vst [vmem:[%s2216_s12 + $0x58] sm:$0xff] %v2438_v12  ;;  %v1273_v29 = vmul.f32 %v2438_v12, %v2438_v12 }
 0x27c   : > { %v1227_v19 = vmul.f32 0.01, %v1195_v10  ;;  %v1172_v20 = vadd.f32 %v1771_v14, %v1715_v11  ;;  %v1166_v21 = vpop.f32.mrb[15].mxu0  ;;  %v1272_v22 = vmul.f32 %v2443_v18, %v2443_v18  ;;  %1256 = vst [vmem:[%s2216_s12 + $0x50] sm:$0xff] %v2443_v18  ;;  %vm1211_vm12 = vcmp.ge.f32.partialorder %v1195_v10, 0.0 }
 0x27d   : > { %v1226_v24 = vmul.f32 0.01, %v1194_v13  ;;  %v1167_v25 = vadd.f32 %v1166_v21, %v1021_v15  ;;  %1296 = vadd.xlane.f32.xlu1 %v1271_v16  ;;  %vm1210_vm13 = vcmp.ge.f32.partialorder %v1194_v13, 0.0 }
 0x27e   : > { %v1197_v26 = vadd.f32 %v2365_v51, %v1172_v20  ;;  %1298 = vadd.xlane.f32.xlu0 %v1272_v22  ;;  %v2452_v27 = vsel %vm1211_vm12, %v1195_v10, %v1227_v19 }
 0x27f   : > { %v1196_v28 = vadd.f32 %v2365_v51, %v1167_v25  ;;  %v2457_v30 = vsel %vm1210_vm13, %v1194_v13, %v1226_v24  ;;  %1259 = vst [vmem:[%s2216_s12 + $0x68] sm:$0xff] %v2452_v27  ;;  %v1275_v35 = vmul.f32 %v2452_v27, %v2452_v27 }
 0x280   : > { %v1229_v32 = vmul.f32 0.01, %v1197_v26  ;;  %v1274_v33 = vmul.f32 %v2457_v30, %v2457_v30  ;;  %1258 = vst [vmem:[%s2216_s12 + $0x60] sm:$0xff] %v2457_v30  ;;  %vm1213_vm14 = vcmp.ge.f32.partialorder %v1197_v26, 0.0 }
 0x281   : > { %v1228_v34 = vmul.f32 0.01, %v1196_v28  ;;  %1300 = vadd.xlane.f32.xlu1 %v1273_v29  ;;  %vm1212_vm15 = vcmp.ge.f32.partialorder %v1196_v28, 0.0 }
 0x282   : > { %1302 = vadd.xlane.f32.xlu0 %v1274_v33  ;;  %v2465_v51 = vsel %vm1213_vm14, %v1197_v26, %v1229_v32 }
 0x283   : > { %v2469_v37 = vsel %vm1212_vm15, %v1196_v28, %v1228_v34  ;;  %1261 = vst [vmem:[%s2216_s12 + $0x78] sm:$0xff] %v2465_v51  ;;  %v1277_v39 = vmul.f32 %v2465_v51, %v2465_v51 }
 0x284   : > { %v1276_v38 = vmul.f32 %v2469_v37, %v2469_v37  ;;  %1260 = vst [vmem:[%s2216_s12 + $0x70] sm:$0xff] %v2469_v37 }
 0x285   : > { %1304 = vadd.xlane.f32.xlu1 %v1275_v35 }
 0x286   : > { %1306 = vadd.xlane.f32.xlu0 %v1276_v38 }
 0x289   : > { %1308 = vadd.xlane.f32.xlu1 %v1277_v39 }
 0x2f6   : > { %v1281_v40 = vpop.xlane.xlu0 %1280 }
 0x2f7   : > { %v1311_v41 = vmax.f32 %v1281_v40, 1e-24 }
 0x2f9   : > { %1944 = vrsqrt.f32 %v1311_v41 }
 0x2fa   : > { %v1279_v42 = vpop.xlane.xlu0 %1278  ;;  %v1285_v43 = vpop.xlane.xlu1 %1284 }
 0x2fb   : > { %v1310_v44 = vmax.f32 %v1279_v42, 1e-24  ;;  %v1313_v46 = vmax.f32 %v1285_v43, 1e-24 }
 0x2fd   : > { %1946 = vrsqrt.f32 %v1310_v44 }
 0x2fe   : > { %1948 = vrsqrt.f32 %v1313_v46  ;;  %v1283_v47 = vpop.xlane.xlu1 %1282 }
 0x2ff   : > { %v1312_v48 = vmax.f32 %v1283_v47, 1e-24  ;;  %v1287_v49 = vpop.xlane.xlu0 %1286 }
 0x300   : > { %v1314_v52 = vmax.f32 %v1287_v49, 1e-24 }
 0x301   : > { %1950 = vrsqrt.f32 %v1312_v48 }
 0x302   : > { %1952 = vrsqrt.f32 %v1314_v52  ;;  %v1289_v53 = vpop.xlane.xlu1 %1288 }
 0x303   : > { %v1945_v54 = vpop.eup %1944  ;;  %v1315_v55 = vmax.f32 %v1289_v53, 1e-24  ;;  %v1291_v56 = vpop.xlane.xlu0 %1290 }
 0x304   : > { %v1343_v57 = vmul.f32 %v1945_v54, %v2370_v4  ;;  %v1316_v58 = vmax.f32 %v1291_v56, 1e-24 }
 0x305   : > { %1954 = vrsqrt.f32 %v1315_v55 }
 0x306   : > { %1359 = vst [vmem:[%s2221_s25 + $0x8] sm:$0xff] %v1343_v57  ;;  %1956 = vrsqrt.f32 %v1316_v58  ;;  %v1293_v59 = vpop.xlane.xlu1 %1292 }
 0x307   : > { %v1947_v61 = vpop.eup %1946  ;;  %v1317_v62 = vmax.f32 %v1293_v59, 1e-24  ;;  %v1295_v63 = vpop.xlane.xlu0 %1294 }
 0x308   : > { %v1949_v0 = vpop.eup %1948  ;;  %v1342_v2 = vmul.f32 %v1947_v61, %v2377_v9  ;;  %v1318_v3 = vmax.f32 %v1295_v63, 1e-24 }
 0x309   : > { %v1345_v5 = vmul.f32 %v1949_v0, %v2382_v17  ;;  %1958 = vrsqrt.f32 %v1317_v62 }
 0x30a   : > { %1358 = vst [vmem:[%s2221_s25] sm:$0xff] %v1342_v2  ;;  %1960 = vrsqrt.f32 %v1318_v3  ;;  %v1297_v4 = vpop.xlane.xlu1 %1296 }
 0x30b   : > { %v1951_v6 = vpop.eup %1950  ;;  %1361 = vst [vmem:[%s2221_s25 + $0x18] sm:$0xff] %v1345_v5  ;;  %v1319_v7 = vmax.f32 %v1297_v4, 1e-24  ;;  %v1299_v8 = vpop.xlane.xlu0 %1298 }
 0x30c   : > { %v1953_v10 = vpop.eup %1952  ;;  %v1344_v11 = vmul.f32 %v1951_v6, %v2391_v23  ;;  %v1320_v13 = vmax.f32 %v1299_v8, 1e-24 }
 0x30d   : > { %v1346_v9 = vmul.f32 %v1953_v10, %v2401_v36  ;;  %1962 = vrsqrt.f32 %v1319_v7 }
 0x30e   : > { %1360 = vst [vmem:[%s2221_s25 + $0x10] sm:$0xff] %v1344_v11  ;;  %1964 = vrsqrt.f32 %v1320_v13  ;;  %v1301_v17 = vpop.xlane.xlu1 %1300 }
 0x30f   : > { %v1955_v14 = vpop.eup %1954  ;;  %1362 = vst [vmem:[%s2221_s25 + $0x20] sm:$0xff] %v1346_v9  ;;  %v1321_v15 = vmax.f32 %v1301_v17, 1e-24  ;;  %v1303_v16 = vpop.xlane.xlu0 %1302 }
 0x310   : > { %v1957_v19 = vpop.eup %1956  ;;  %v1347_v20 = vmul.f32 %v1955_v14, %v2396_v31  ;;  %v1322_v21 = vmax.f32 %v1303_v16, 1e-24 }
 0x311   : > { %v1348_v23 = vmul.f32 %v1957_v19, %v2415_v50  ;;  %1966 = vrsqrt.f32 %v1321_v15 }
 0x312   : > { %1363 = vst [vmem:[%s2221_s25 + $0x28] sm:$0xff] %v1347_v20  ;;  %1968 = vrsqrt.f32 %v1322_v21  ;;  %v1305_v36 = vpop.xlane.xlu1 %1304 }
 0x313   : > { %v1959_v22 = vpop.eup %1958  ;;  %1364 = vst [vmem:[%s2221_s25 + $0x30] sm:$0xff] %v1348_v23  ;;  %v1323_v24 = vmax.f32 %v1305_v36, 1e-24  ;;  %v1307_v25 = vpop.xlane.xlu0 %1306 }
 0x314   : > { %v1961_v26 = vpop.eup %1960  ;;  %v1349_v28 = vmul.f32 %v1959_v22, %v2410_v45  ;;  %v1324_v29 = vmax.f32 %v1307_v25, 1e-24 }
 0x315   : > { %v1350_v31 = vmul.f32 %v1961_v26, %v2429_v1  ;;  %1970 = vrsqrt.f32 %v1323_v24 }
 0x316   : > { %1365 = vst [vmem:[%s2221_s25 + $0x38] sm:$0xff] %v1349_v28  ;;  %1972 = vrsqrt.f32 %v1324_v29  ;;  %v1309_v50 = vpop.xlane.xlu1 %1308 }
 0x317   : > { %v1963_v32 = vpop.eup %1962  ;;  %1366 = vst [vmem:[%s2221_s25 + $0x40] sm:$0xff] %v1350_v31  ;;  %v1325_v33 = vmax.f32 %v1309_v50, 1e-24 }
 0x318   : > { %v1965_v34 = vpop.eup %1964  ;;  %v1351_v35 = vmul.f32 %v1963_v32, %v2424_v60 }
 0x319   : > { %v1352_v38 = vmul.f32 %v1965_v34, %v2443_v18  ;;  %1974 = vrsqrt.f32 %v1325_v33 }
 0x31a   : > { %1367 = vst [vmem:[%s2221_s25 + $0x48] sm:$0xff] %v1351_v35 }
 0x31b   : > { %v1967_v45 = vpop.eup %1966  ;;  %1368 = vst [vmem:[%s2221_s25 + $0x50] sm:$0xff] %v1352_v38 }
 0x31c   : > { %v1969_v1 = vpop.eup %1968  ;;  %v1353_v39 = vmul.f32 %v1967_v45, %v2438_v12 }
 0x31d   : > { %v1354_v40 = vmul.f32 %v1969_v1, %v2457_v30 }
 0x31e   : > { %1369 = vst [vmem:[%s2221_s25 + $0x58] sm:$0xff] %v1353_v39 }
 0x31f   : > { %v1971_v41 = vpop.eup %1970  ;;  %1370 = vst [vmem:[%s2221_s25 + $0x60] sm:$0xff] %v1354_v40 }
 0x320   : > { %v1973_v42 = vpop.eup %1972  ;;  %v1355_v43 = vmul.f32 %v1971_v41, %v2452_v27 }
 0x321   : > { %v1356_v60 = vmul.f32 %v1973_v42, %v2469_v37 }
 0x322   : > { %1371 = vst [vmem:[%s2221_s25 + $0x68] sm:$0xff] %v1355_v43 }
 0x323   : > { %v1975_v18 = vpop.eup %1974  ;;  %1372 = vst [vmem:[%s2221_s25 + $0x70] sm:$0xff] %v1356_v60 }
 0x324   : > { %v1357_v44 = vmul.f32 %v1975_v18, %v2465_v51 }
 0x326   : > { %1373 = vst [vmem:[%s2221_s25 + $0x78] sm:$0xff] %v1357_v44 }
 0x327 PF: > { %s30_s23 = sadd.s32 1, %s2056_s23   ;;  %s2547_s10 = sld [smem:[#allocation8_spill]] }
 0x328   : > { %p27_p11 = scmp.ge.s32.totalorder %s30_s23, 11   ;;  %s2548_s1 = smov %s2036_s18 }
 0x329   : > { %s2549_s18 = smov %s2174_s16  ;;  %s2550_s19 = smov %s2048_s21 }
 0x32a   : > { %s2551_s20 = smov %s2052_s22  ;;  %s2552_s21 = smov %s2555_s24 }
 0x32b   :  { %29 = sbr.rel (!%p27_p11) target bundleno = 30 (0x1e), region = 150 }
 0x32d   : > { %s2553_s22 = smov %s2547_s10 }

</bundles_post_ra>
